<compile_context>
chip_gen: v5e
topology: v5e:2x2
jax: 0.10.0
libtpu: 0.0.40
codegen_flags: <defaults>
</compile_context>

<pallas_src>
import functools

import jax
import jax.numpy as jnp
from jax.experimental import pallas as pl
from jax.experimental.pallas import tpu as pltpu


# ----------------------------- glue (plain JAX) ------------------------------

def window_partition(x, ws):
    """x: (B, H, W, C) -> (num_windows*B, ws, ws, C)"""
    B, H, W, C = x.shape
    x = x.reshape(B, H // ws, ws, W // ws, ws, C)
    return jnp.transpose(x, (0, 1, 3, 2, 4, 5)).reshape(-1, ws, ws, C)


def window_reverse(windows, ws, H, W):
    """windows: (num_windows*B, ws, ws, C) -> (B, H, W, C)"""
    B = windows.shape[0] // (H * W // ws // ws)
    x = windows.reshape(B, H // ws, W // ws, ws, ws, -1)
    return jnp.transpose(x, (0, 1, 3, 2, 4, 5)).reshape(B, H, W, -1)


def double_step_seq(step1, len1, step2, len2):
    seq1 = jnp.arange(0, step1 * len1, step1)
    seq2 = jnp.arange(0, step2 * len2, step2)
    return (seq1[:, None] + seq2[None, :]).reshape(1, -1)


def relative_position_bias(table, window_size, num_heads):
    """table: ((2*ws-1)**2, num_heads) -> bias (num_heads, N, N); matches the
    reference (rel_position_index.flip(1)) construction."""
    Wh = Ww = window_size
    N = Wh * Ww
    rel_index_coords = double_step_seq(2 * Ww - 1, Wh, 1, Ww)        # (1, N)
    rel_position_index = rel_index_coords + rel_index_coords.T       # (N, N)
    rel_position_index = jnp.flip(rel_position_index, axis=1)
    bias = table[rel_position_index.reshape(-1)]                     # (N*N, nH)
    bias = bias.reshape(N, N, num_heads)
    return jnp.transpose(bias, (2, 0, 1)).astype(jnp.float32)        # (nH, N, N)


# --------------------------- hardware heuristics ------------------------------

def _device_kind():
    try:
        return jax.devices()[0].device_kind.lower()
    except Exception:
        return ""


def _num_tensorcores_per_chip(kind):
    # v7x exposes two TensorCores per chip; v5e / v6e have one.
    return 2 if "v7" in kind else 1


def _vmem_capacity_bytes(kind):
    return (64 * 2**20) if "v7" in kind else (128 * 2**20)


def _max_tokens_per_step(c, num_heads, n_tok, vmem_bytes):
    """VMEM-budget-derived token-slab size (bytes per token, rough)."""
    dma = 2 * (4 * c + 2 * c + 4 * c)                  # x f32, y bf16, out f32 (double-buffered)
    interm = 4 * 2 * c + 4 * c                         # qv f32, k f32
    interm += 3 * 2 * c                                # q/k/v bf16 head views
    interm += (4 + 2) * num_heads * n_tok              # scores f32 + probs bf16
    interm += 4 * c + 2 * c                            # ctx f32 + merged bf16
    interm += 4 * 4 * c                                # attn_out / xn / h1 / h2 f32
    per_tok = dma + interm
    budget = int(0.5 * vmem_bytes)                     # headroom for weights / compiler scratch
    return max(n_tok, budget // per_tok)


# ------------------------------- Pallas kernel --------------------------------

def _cascade_kernel(xw_ref, yw_ref, relb_ref,
                    wqv_ref, bqv_ref, wk_ref, bk_ref,
                    wp_ref, bp_ref, ln_g_ref, ln_b_ref,
                    w1_ref, b1_ref, w2_ref, b2_ref,
                    out_ref, *, wins, n_tok, num_heads, head_dim,
                    ln_eps, mxu_dtype):
    f32 = jnp.float32
    T = wins * n_tok                               # tokens handled this step
    C = num_heads * head_dim
    nb = num_heads * wins                          # batched (head, window) pairs

    x = xw_ref[0]                                  # (T, C) f32 (residual path)
    xb = x.astype(mxu_dtype)
    yb = yw_ref[0]                                 # (T, C) already bf16 (k-only input)

    # Fused q|v projection: ONE full-lane (T,C)@(C,2C) matmul (qk scale folded
    # into the q half at prep time); k: one (T,C)@(C,C) matmul.
    qv = jnp.dot(xb, wqv_ref[...], preferred_element_type=f32) + bqv_ref[...]
    k = jnp.dot(yb, wk_ref[...], preferred_element_type=f32) + bk_ref[...]
    q = qv[:, :C]
    v = qv[:, C:]

    # Split heads AFTER the big matmuls: static per-head lane slices stacked on
    # a new leading dim, then sublane-aligned reshapes to fold (head, window)
    # into one batch dim.
    def to_heads(t):                               # (T, C) -> (nb, N, hd)
        th = jnp.stack([t[:, h * head_dim:(h + 1) * head_dim]
                        for h in range(num_heads)], axis=0)          # (nH, T, hd)
        th = th.reshape(num_heads, wins, n_tok, head_dim)
        return th.reshape(nb, n_tok, head_dim)

    q3 = to_heads(q).astype(mxu_dtype)
    k3 = to_heads(k).astype(mxu_dtype)
    v3 = to_heads(v).astype(mxu_dtype)

    # Scores for every (head, window) pair in one batched contraction.
    scores = jax.lax.dot_general(q3, k3, (((2,), (2,)), ((0,), (0,))),
                                 preferred_element_type=f32)         # (nb, N, N)

    # Relative position bias: implicit broadcast on the 4-D view.
    scores = scores.reshape(num_heads, wins, n_tok, n_tok) + relb_ref[...][:, None]

    # Softmax in f32; divide goes through the EUP reciprocal.
    scores = scores - jnp.max(scores, axis=-1, keepdims=True)
    p = jnp.exp(scores)
    p = p * pl.reciprocal(jnp.sum(p, axis=-1, keepdims=True), approx=True)
    p = p.reshape(nb, n_tok, n_tok)

    # Weighted sum -> (nb, N, hd); re-merge heads onto the lane dim (cheap
    # hd-wide concat) so the output projection is one full-K (T,C)@(C,C) matmul.
    ctx = jax.lax.dot_general(p.astype(mxu_dtype), v3,
                              (((2,), (1,)), ((0,), (0,))),
                              preferred_element_type=f32)            # (nb, N, hd)
    ctx = ctx.reshape(num_heads, wins, n_tok, head_dim).reshape(num_heads, T, head_dim)
    ctx = jnp.concatenate([ctx[h] for h in range(num_heads)], axis=-1)  # (T, C)

    attn_out = jnp.dot(ctx.astype(mxu_dtype), wp_ref[...],
                       preferred_element_type=f32) + bp_ref[...] + x    # + residual
    identity = attn_out                                              # proj_drop = id (eval)

    # LayerNorm over channels (f32).
    # TODO(synk): norm_cfg assumed to be LayerNorm with eps=1e-5.
    mean = jnp.mean(attn_out, axis=-1, keepdims=True)
    var = jnp.mean(jnp.square(attn_out - mean), axis=-1, keepdims=True)
    xn = (attn_out - mean) * jax.lax.rsqrt(var + ln_eps)
    xn = xn * ln_g_ref[...] + ln_b_ref[...]

    # FFN (fc1 -> GELU -> fc2), add_identity with the pre-norm identity.
    h1 = jnp.dot(xn.astype(mxu_dtype), w1_ref[...],
                 preferred_element_type=f32) + b1_ref[...]
    # TODO(synk): act_cfg assumed GELU; tanh approximation used (mmcv default GELU is erf-exact).
    h1 = jax.nn.gelu(h1, approximate=True)
    h2 = jnp.dot(h1.astype(mxu_dtype), w2_ref[...],
                 preferred_element_type=f32) + b2_ref[...]

    # One contiguous slab store per grid step.
    # NOTE: at C < 128 this store runs at C/128 lane utilization (vst.msk);
    # production C >= 128 is lane-dense.
    out_ref[0] = (identity + h2).astype(out_ref.dtype)


# --------------------------------- wrapper ------------------------------------

def cascade_block_forward(x, y, params, *, window_size, num_heads,
                          mxu_dtype=jnp.bfloat16):
    """x, y: (B, C, H, W) float32 -> out: (B, C, H, W) float32."""
    b, c, h, w = x.shape
    ws = window_size
    N = ws * ws
    head_dim = c // num_heads
    scale = 32.0 ** (-0.5)       # matches the reference: self.scale = 32 ** (-0.5)

    x_hwc = jnp.transpose(x, (0, 2, 3, 1))                 # NCHW -> NHWC
    y_hwc = jnp.transpose(y, (0, 2, 3, 1))
    xw = window_partition(x_hwc, ws).reshape(-1, N, c)     # (nwin, N, C)
    yw = window_partition(y_hwc, ws).reshape(-1, N, c)
    nwin = xw.shape[0]

    # ---- generation-aware grid / slab sizing ----
    kind = _device_kind()
    n_tc = _num_tensorcores_per_chip(kind)
    vmem_cap = _vmem_capacity_bytes(kind)
    max_tok = _max_tokens_per_step(c, num_heads, N, vmem_cap)

    # v5e/v6e (single TC): one big step over all windows (no per-step overhead
    # for zero parallelism).  v7x: >=4 "parallel" steps (>=2 per TC) so the
    # token-slab DMA of step i+1 overlaps compute of step i.
    min_steps = 4 if n_tc >= 2 else 1
    grid_g = 1
    while grid_g < min_steps and nwin % (grid_g * 2) == 0:
        grid_g *= 2
    while (nwin // grid_g) * N > max_tok and nwin % (grid_g * 2) == 0:
        grid_g *= 2
    wins_per_step = nwin // grid_g
    T = wins_per_step * N

    xw = xw.reshape(grid_g, T, c)
    yw = yw.reshape(grid_g, T, c).astype(mxu_dtype)        # k-side only: DMA as bf16

    rel_bias = relative_position_bias(params["rel_table"], ws, num_heads)

    # ---- parameter prep (one-time, plain JAX) ----
    # Weights stored (in, out).  Fuse q|v into one (C, 2C) weight with the qk
    # scale folded into the q half; cast MXU operands to bf16 (f32 accumulate
    # in-kernel); biases stay f32.
    wqv = jnp.concatenate([params["wq"] * scale, params["wv"]], axis=1).astype(mxu_dtype)
    bqv = jnp.concatenate([params["bq"] * scale, params["bv"]], axis=1)
    wk = params["wk"].astype(mxu_dtype)
    wp = params["wp"].astype(mxu_dtype)
    w1 = params["w1"].astype(mxu_dtype)
    w2 = params["w2"].astype(mxu_dtype)

    kern = functools.partial(_cascade_kernel, wins=wins_per_step, n_tok=N,
                             num_heads=num_heads, head_dim=head_dim,
                             ln_eps=1e-5, mxu_dtype=mxu_dtype)

    tok_spec = pl.BlockSpec((1, T, c), lambda i: (i, 0, 0))

    def invariant_spec(shape):
        idx = lambda i, _n=len(shape): (0,) * _n
        if c >= 256:
            # Grid-invariant weights: single-buffer to save VMEM at production C.
            return pl.BlockSpec(shape, idx, pipeline_mode=pl.Buffered(1))
        return pl.BlockSpec(shape, idx)

    bias3_spec = invariant_spec((num_heads, N, N))
    wqv_spec = invariant_spec((c, 2 * c))
    bqv_spec = invariant_spec((1, 2 * c))
    mat_spec = invariant_spec((c, c))
    vec_spec = invariant_spec((1, c))

    vmem_limit = int(min(0.75 * vmem_cap, 96 * 2**20))

    out_w = pl.pallas_call(
        kern,
        out_shape=jax.ShapeDtypeStruct((grid_g, T, c), jnp.float32),
        grid_spec=pltpu.PrefetchScalarGridSpec(
            num_scalar_prefetch=0,
            grid=(grid_g,),
            in_specs=[tok_spec, tok_spec, bias3_spec,
                      wqv_spec, bqv_spec,     # fused x2q|x2v
                      mat_spec, vec_spec,     # y2k
                      mat_spec, vec_spec,     # proj
                      vec_spec, vec_spec,     # LN gamma / beta
                      mat_spec, vec_spec,     # FFN fc1
                      mat_spec, vec_spec],    # FFN fc2
            out_specs=tok_spec),
        compiler_params=pltpu.CompilerParams(
            dimension_semantics=("parallel",),
            vmem_limit_bytes=vmem_limit),
    )(xw, yw, rel_bias,
      wqv, bqv, wk, params["bk"],
      wp, params["bp"], params["ln_g"], params["ln_b"],
      w1, params["b1"], w2, params["b2"])

    out = window_reverse(out_w.reshape(-1, ws, ws, c), ws, h, w)   # (B, H, W, C)
    return jnp.transpose(out, (0, 3, 1, 2))                        # (B, C, H, W)


# ----------------------------------- main --------------------------------------

if __name__ == "__main__":
    B, C, H, W = 2, 32, 8, 8
    window_size, num_heads = 4, 4

    key = jax.random.PRNGKey(0)
    ks = jax.random.split(key, 16)

    # NOTE: weights stored (in, out); transpose PyTorch nn.Linear (out, in)
    # checkpoints before loading.
    def lin(kw, kb, din, dout):
        return (jax.random.normal(kw, (din, dout), jnp.float32) * 0.02,
                jax.random.normal(kb, (1, dout), jnp.float32) * 0.02)

    wq, bq = lin(ks[0], ks[1], C, C)
    wk, bk = lin(ks[2], ks[3], C, C)
    wv, bv = lin(ks[4], ks[5], C, C)
    wp, bp = lin(ks[6], ks[7], C, C)
    w1, b1 = lin(ks[8], ks[9], C, C)
    w2, b2 = lin(ks[10], ks[11], C, C)
    rel_table = jax.random.normal(
        ks[12], ((2 * window_size - 1) ** 2, num_heads), jnp.float32) * 0.02

    params = dict(wq=wq, bq=bq, wk=wk, bk=bk, wv=wv, bv=bv, wp=wp, bp=bp,
                  ln_g=jnp.ones((1, C), jnp.float32),
                  ln_b=jnp.zeros((1, C), jnp.float32),
                  w1=w1, b1=b1, w2=w2, b2=b2, rel_table=rel_table)

    x = jax.random.normal(ks[13], (B, C, H, W), jnp.float32)
    y = jax.random.normal(ks[14], (B, C, H, W), jnp.float32)

    out = cascade_block_forward(x, y, params,
                                window_size=window_size, num_heads=num_heads)
    jax.block_until_ready(out)
    assert out.shape == (B, C, H, W) and out.dtype == jnp.float32
    print("KERNEL_OK")
</pallas_src>

<mosaic_0001>
module attributes {stable_mosaic.version = 11 : i64} {
  func.func @_cascade_kernel(%arg0: i32, %arg1: memref<1x128x32xf32, #tpu.memory_space<vmem>>, %arg2: memref<1x128x32xbf16, #tpu.memory_space<vmem>>, %arg3: memref<4x16x16xf32, #tpu.memory_space<vmem>>, %arg4: memref<32x64xbf16, #tpu.memory_space<vmem>>, %arg5: memref<1x64xf32, #tpu.memory_space<vmem>>, %arg6: memref<32x32xbf16, #tpu.memory_space<vmem>>, %arg7: memref<1x32xf32, #tpu.memory_space<vmem>>, %arg8: memref<32x32xbf16, #tpu.memory_space<vmem>>, %arg9: memref<1x32xf32, #tpu.memory_space<vmem>>, %arg10: memref<1x32xf32, #tpu.memory_space<vmem>>, %arg11: memref<1x32xf32, #tpu.memory_space<vmem>>, %arg12: memref<32x32xbf16, #tpu.memory_space<vmem>>, %arg13: memref<1x32xf32, #tpu.memory_space<vmem>>, %arg14: memref<32x32xbf16, #tpu.memory_space<vmem>>, %arg15: memref<1x32xf32, #tpu.memory_space<vmem>>, %arg16: memref<1x128x32xf32, #tpu.memory_space<vmem>>) attributes {dimension_semantics = [#tpu.dimension_semantics<parallel>], iteration_bounds = array<i64: 1>, scalar_prefetch = 0 : i64, scratch_operands = 0 : i64, tpu.core_type = #tpu.core_type<tc>, window_params = [{transform_indices = @transform_0, window_bounds = array<i64: 1, 128, 32>}, {transform_indices = @transform_1, window_bounds = array<i64: 1, 128, 32>}, {pipeline_mode = #tpu.pipeline_mode<synchronous>, transform_indices = @transform_2, window_bounds = array<i64: 4, 16, 16>}, {pipeline_mode = #tpu.pipeline_mode<synchronous>, transform_indices = @transform_3, window_bounds = array<i64: 32, 64>}, {pipeline_mode = #tpu.pipeline_mode<synchronous>, transform_indices = @transform_4, window_bounds = array<i64: 1, 64>}, {pipeline_mode = #tpu.pipeline_mode<synchronous>, transform_indices = @transform_5, window_bounds = array<i64: 32, 32>}, {pipeline_mode = #tpu.pipeline_mode<synchronous>, transform_indices = @transform_6, window_bounds = array<i64: 1, 32>}, {pipeline_mode = #tpu.pipeline_mode<synchronous>, transform_indices = @transform_7, window_bounds = array<i64: 32, 32>}, {pipeline_mode = #tpu.pipeline_mode<synchronous>, transform_indices = @transform_8, window_bounds = array<i64: 1, 32>}, {pipeline_mode = #tpu.pipeline_mode<synchronous>, transform_indices = @transform_9, window_bounds = array<i64: 1, 32>}, {pipeline_mode = #tpu.pipeline_mode<synchronous>, transform_indices = @transform_10, window_bounds = array<i64: 1, 32>}, {pipeline_mode = #tpu.pipeline_mode<synchronous>, transform_indices = @transform_11, window_bounds = array<i64: 32, 32>}, {pipeline_mode = #tpu.pipeline_mode<synchronous>, transform_indices = @transform_12, window_bounds = array<i64: 1, 32>}, {pipeline_mode = #tpu.pipeline_mode<synchronous>, transform_indices = @transform_13, window_bounds = array<i64: 32, 32>}, {pipeline_mode = #tpu.pipeline_mode<synchronous>, transform_indices = @transform_14, window_bounds = array<i64: 1, 32>}, {transform_indices = @transform_15, window_bounds = array<i64: 1, 128, 32>}]} {
    %c0 = arith.constant 0 : index
    %c0_0 = arith.constant 0 : index
    %c0_1 = arith.constant 0 : index
    %0 = vector.load %arg1[%c0, %c0_0, %c0_1] : memref<1x128x32xf32, #tpu.memory_space<vmem>>, vector<1x128x32xf32>
    %1 = vector.shape_cast %0 : vector<1x128x32xf32> to vector<128x32xf32>
    %2 = arith.truncf %1 : vector<128x32xf32> to vector<128x32xbf16>
    %c0_2 = arith.constant 0 : index
    %c0_3 = arith.constant 0 : index
    %c0_4 = arith.constant 0 : index
    %3 = vector.load %arg2[%c0_2, %c0_3, %c0_4] : memref<1x128x32xbf16, #tpu.memory_space<vmem>>, vector<1x128x32xbf16>
    %4 = vector.shape_cast %3 : vector<1x128x32xbf16> to vector<128x32xbf16>
    %c0_5 = arith.constant 0 : index
    %c0_6 = arith.constant 0 : index
    %5 = vector.load %arg4[%c0_5, %c0_6] : memref<32x64xbf16, #tpu.memory_space<vmem>>, vector<32x64xbf16>
    %cst = arith.constant dense<0.000000e+00> : vector<128x64xf32>
    %6 = tpu.matmul %2, %5, %cst {dimension_numbers = #tpu.dot_dimension_numbers<[1], [0], [0], [1], [0, 0, 1, 1], [], []>} : vector<128x32xbf16>, vector<32x64xbf16>, vector<128x64xf32> -> vector<128x64xf32>
    %c0_7 = arith.constant 0 : index
    %c0_8 = arith.constant 0 : index
    %7 = vector.load %arg5[%c0_7, %c0_8] : memref<1x64xf32, #tpu.memory_space<vmem>>, vector<1x64xf32>
    %8 = vector.broadcast %7 : vector<1x64xf32> to vector<128x64xf32>
    %9 = arith.addf %6, %8 : vector<128x64xf32>
    %c0_9 = arith.constant 0 : index
    %c0_10 = arith.constant 0 : index
    %10 = vector.load %arg6[%c0_9, %c0_10] : memref<32x32xbf16, #tpu.memory_space<vmem>>, vector<32x32xbf16>
    %cst_11 = arith.constant dense<0.000000e+00> : vector<128x32xf32>
    %11 = tpu.matmul %4, %10, %cst_11 {dimension_numbers = #tpu.dot_dimension_numbers<[1], [0], [0], [1], [0, 0, 1, 1], [], []>} : vector<128x32xbf16>, vector<32x32xbf16>, vector<128x32xf32> -> vector<128x32xf32>
    %c0_12 = arith.constant 0 : index
    %c0_13 = arith.constant 0 : index
    %12 = vector.load %arg7[%c0_12, %c0_13] : memref<1x32xf32, #tpu.memory_space<vmem>>, vector<1x32xf32>
    %13 = vector.broadcast %12 : vector<1x32xf32> to vector<128x32xf32>
    %14 = arith.addf %11, %13 : vector<128x32xf32>
    %15 = vector.extract_strided_slice %9 {offsets = [0, 0], sizes = [128, 32], strides = [1, 1]} : vector<128x64xf32> to vector<128x32xf32>
    %16 = vector.extract_strided_slice %9 {offsets = [0, 32], sizes = [128, 32], strides = [1, 1]} : vector<128x64xf32> to vector<128x32xf32>
    %17 = vector.extract_strided_slice %15 {offsets = [0, 0], sizes = [128, 8], strides = [1, 1]} : vector<128x32xf32> to vector<128x8xf32>
    %18 = vector.extract_strided_slice %15 {offsets = [0, 8], sizes = [128, 8], strides = [1, 1]} : vector<128x32xf32> to vector<128x8xf32>
    %19 = vector.extract_strided_slice %15 {offsets = [0, 16], sizes = [128, 8], strides = [1, 1]} : vector<128x32xf32> to vector<128x8xf32>
    %20 = vector.extract_strided_slice %15 {offsets = [0, 24], sizes = [128, 8], strides = [1, 1]} : vector<128x32xf32> to vector<128x8xf32>
    %21 = vector.shape_cast %17 : vector<128x8xf32> to vector<1x128x8xf32>
    %22 = vector.shape_cast %18 : vector<128x8xf32> to vector<1x128x8xf32>
    %23 = vector.shape_cast %19 : vector<128x8xf32> to vector<1x128x8xf32>
    %24 = vector.shape_cast %20 : vector<128x8xf32> to vector<1x128x8xf32>
    %25 = tpu.concatenate %21, %22, %23, %24 in 0 : vector<1x128x8xf32>, vector<1x128x8xf32>, vector<1x128x8xf32>, vector<1x128x8xf32> -> vector<4x128x8xf32>
    %26 = vector.shape_cast %25 : vector<4x128x8xf32> to vector<4x8x16x8xf32>
    %27 = vector.shape_cast %26 : vector<4x8x16x8xf32> to vector<32x16x8xf32>
    %28 = arith.truncf %27 : vector<32x16x8xf32> to vector<32x16x8xbf16>
    %29 = vector.extract_strided_slice %14 {offsets = [0, 0], sizes = [128, 8], strides = [1, 1]} : vector<128x32xf32> to vector<128x8xf32>
    %30 = vector.extract_strided_slice %14 {offsets = [0, 8], sizes = [128, 8], strides = [1, 1]} : vector<128x32xf32> to vector<128x8xf32>
    %31 = vector.extract_strided_slice %14 {offsets = [0, 16], sizes = [128, 8], strides = [1, 1]} : vector<128x32xf32> to vector<128x8xf32>
    %32 = vector.extract_strided_slice %14 {offsets = [0, 24], sizes = [128, 8], strides = [1, 1]} : vector<128x32xf32> to vector<128x8xf32>
    %33 = vector.shape_cast %29 : vector<128x8xf32> to vector<1x128x8xf32>
    %34 = vector.shape_cast %30 : vector<128x8xf32> to vector<1x128x8xf32>
    %35 = vector.shape_cast %31 : vector<128x8xf32> to vector<1x128x8xf32>
    %36 = vector.shape_cast %32 : vector<128x8xf32> to vector<1x128x8xf32>
    %37 = tpu.concatenate %33, %34, %35, %36 in 0 : vector<1x128x8xf32>, vector<1x128x8xf32>, vector<1x128x8xf32>, vector<1x128x8xf32> -> vector<4x128x8xf32>
    %38 = vector.shape_cast %37 : vector<4x128x8xf32> to vector<4x8x16x8xf32>
    %39 = vector.shape_cast %38 : vector<4x8x16x8xf32> to vector<32x16x8xf32>
    %40 = arith.truncf %39 : vector<32x16x8xf32> to vector<32x16x8xbf16>
    %41 = vector.extract_strided_slice %16 {offsets = [0, 0], sizes = [128, 8], strides = [1, 1]} : vector<128x32xf32> to vector<128x8xf32>
    %42 = vector.extract_strided_slice %16 {offsets = [0, 8], sizes = [128, 8], strides = [1, 1]} : vector<128x32xf32> to vector<128x8xf32>
    %43 = vector.extract_strided_slice %16 {offsets = [0, 16], sizes = [128, 8], strides = [1, 1]} : vector<128x32xf32> to vector<128x8xf32>
    %44 = vector.extract_strided_slice %16 {offsets = [0, 24], sizes = [128, 8], strides = [1, 1]} : vector<128x32xf32> to vector<128x8xf32>
    %45 = vector.shape_cast %41 : vector<128x8xf32> to vector<1x128x8xf32>
    %46 = vector.shape_cast %42 : vector<128x8xf32> to vector<1x128x8xf32>
    %47 = vector.shape_cast %43 : vector<128x8xf32> to vector<1x128x8xf32>
    %48 = vector.shape_cast %44 : vector<128x8xf32> to vector<1x128x8xf32>
    %49 = tpu.concatenate %45, %46, %47, %48 in 0 : vector<1x128x8xf32>, vector<1x128x8xf32>, vector<1x128x8xf32>, vector<1x128x8xf32> -> vector<4x128x8xf32>
    %50 = vector.shape_cast %49 : vector<4x128x8xf32> to vector<4x8x16x8xf32>
    %51 = vector.shape_cast %50 : vector<4x8x16x8xf32> to vector<32x16x8xf32>
    %52 = arith.truncf %51 : vector<32x16x8xf32> to vector<32x16x8xbf16>
    %cst_14 = arith.constant dense<0.000000e+00> : vector<32x16x16xf32>
    %53 = tpu.matmul %28, %40, %cst_14 {dimension_numbers = #tpu.dot_dimension_numbers<[2], [2], [1], [1], [0, 0, 0, 1, 1, 1], [0], [0]>} : vector<32x16x8xbf16>, vector<32x16x8xbf16>, vector<32x16x16xf32> -> vector<32x16x16xf32>
    %54 = vector.shape_cast %53 : vector<32x16x16xf32> to vector<4x8x16x16xf32>
    %c0_15 = arith.constant 0 : index
    %c0_16 = arith.constant 0 : index
    %c0_17 = arith.constant 0 : index
    %55 = vector.load %arg3[%c0_15, %c0_16, %c0_17] : memref<4x16x16xf32, #tpu.memory_space<vmem>>, vector<4x16x16xf32>
    %56 = vector.shape_cast %55 : vector<4x16x16xf32> to vector<4x1x16x16xf32>
    %57 = vector.broadcast %56 : vector<4x1x16x16xf32> to vector<4x8x16x16xf32>
    %58 = arith.addf %54, %57 : vector<4x8x16x16xf32>
    %cst_18 = arith.constant dense<0xFF800000> : vector<4x8x16xf32>
    %59 = vector.multi_reduction <maximumf>, %58, %cst_18 [3] : vector<4x8x16x16xf32> to vector<4x8x16xf32>
    %60 = vector.shape_cast %59 : vector<4x8x16xf32> to vector<4x8x16x1xf32>
    %61 = vector.broadcast %60 : vector<4x8x16x1xf32> to vector<4x8x16x16xf32>
    %62 = arith.subf %58, %61 : vector<4x8x16x16xf32>
    %63 = math.exp %62 : vector<4x8x16x16xf32>
    %cst_19 = arith.constant dense<0.000000e+00> : vector<4x8x16xf32>
    %64 = vector.multi_reduction <add>, %63, %cst_19 [3] : vector<4x8x16x16xf32> to vector<4x8x16xf32>
    %65 = vector.shape_cast %64 : vector<4x8x16xf32> to vector<4x8x16x1xf32>
    %66 = tpu.reciprocal %65 {approx = true} : vector<4x8x16x1xf32> -> vector<4x8x16x1xf32>
    %67 = vector.broadcast %66 : vector<4x8x16x1xf32> to vector<4x8x16x16xf32>
    %68 = arith.mulf %63, %67 : vector<4x8x16x16xf32>
    %69 = vector.shape_cast %68 : vector<4x8x16x16xf32> to vector<32x16x16xf32>
    %70 = arith.truncf %69 : vector<32x16x16xf32> to vector<32x16x16xbf16>
    %cst_20 = arith.constant dense<0.000000e+00> : vector<32x16x8xf32>
    %71 = tpu.matmul %70, %52, %cst_20 {dimension_numbers = #tpu.dot_dimension_numbers<[2], [1], [1], [2], [0, 0, 0, 1, 1, 2], [0], [0]>} : vector<32x16x16xbf16>, vector<32x16x8xbf16>, vector<32x16x8xf32> -> vector<32x16x8xf32>
    %72 = vector.shape_cast %71 : vector<32x16x8xf32> to vector<4x8x16x8xf32>
    %73 = vector.shape_cast %72 : vector<4x8x16x8xf32> to vector<4x128x8xf32>
    %74 = vector.extract_strided_slice %73 {offsets = [0, 0, 0], sizes = [1, 128, 8], strides = [1, 1, 1]} : vector<4x128x8xf32> to vector<1x128x8xf32>
    %75 = vector.shape_cast %74 : vector<1x128x8xf32> to vector<128x8xf32>
    %76 = vector.extract_strided_slice %73 {offsets = [1, 0, 0], sizes = [1, 128, 8], strides = [1, 1, 1]} : vector<4x128x8xf32> to vector<1x128x8xf32>
    %77 = vector.shape_cast %76 : vector<1x128x8xf32> to vector<128x8xf32>
    %78 = vector.extract_strided_slice %73 {offsets = [2, 0, 0], sizes = [1, 128, 8], strides = [1, 1, 1]} : vector<4x128x8xf32> to vector<1x128x8xf32>
    %79 = vector.shape_cast %78 : vector<1x128x8xf32> to vector<128x8xf32>
    %80 = vector.extract_strided_slice %73 {offsets = [3, 0, 0], sizes = [1, 128, 8], strides = [1, 1, 1]} : vector<4x128x8xf32> to vector<1x128x8xf32>
    %81 = vector.shape_cast %80 : vector<1x128x8xf32> to vector<128x8xf32>
    %82 = tpu.concatenate %75, %77, %79, %81 in 1 : vector<128x8xf32>, vector<128x8xf32>, vector<128x8xf32>, vector<128x8xf32> -> vector<128x32xf32>
    %83 = arith.truncf %82 : vector<128x32xf32> to vector<128x32xbf16>
    %c0_21 = arith.constant 0 : index
    %c0_22 = arith.constant 0 : index
    %84 = vector.load %arg8[%c0_21, %c0_22] : memref<32x32xbf16, #tpu.memory_space<vmem>>, vector<32x32xbf16>
    %cst_23 = arith.constant dense<0.000000e+00> : vector<128x32xf32>
    %85 = tpu.matmul %83, %84, %cst_23 {dimension_numbers = #tpu.dot_dimension_numbers<[1], [0], [0], [1], [0, 0, 1, 1], [], []>} : vector<128x32xbf16>, vector<32x32xbf16>, vector<128x32xf32> -> vector<128x32xf32>
    %c0_24 = arith.constant 0 : index
    %c0_25 = arith.constant 0 : index
    %86 = vector.load %arg9[%c0_24, %c0_25] : memref<1x32xf32, #tpu.memory_space<vmem>>, vector<1x32xf32>
    %87 = vector.broadcast %86 : vector<1x32xf32> to vector<128x32xf32>
    %88 = arith.addf %85, %87 : vector<128x32xf32>
    %89 = arith.addf %88, %1 : vector<128x32xf32>
    %cst_26 = arith.constant dense<0.000000e+00> : vector<128xf32>
    %90 = vector.multi_reduction <add>, %89, %cst_26 [1] : vector<128x32xf32> to vector<128xf32>
    %91 = vector.shape_cast %90 : vector<128xf32> to vector<128x1xf32>
    %cst_27 = arith.constant 3.200000e+01 : f32
    %92 = vector.broadcast %cst_27 : f32 to vector<128x1xf32>
    %93 = arith.divf %91, %92 : vector<128x1xf32>
    %94 = vector.broadcast %93 : vector<128x1xf32> to vector<128x32xf32>
    %95 = arith.subf %89, %94 : vector<128x32xf32>
    %96 = arith.mulf %95, %95 : vector<128x32xf32>
    %cst_28 = arith.constant dense<0.000000e+00> : vector<128xf32>
    %97 = vector.multi_reduction <add>, %96, %cst_28 [1] : vector<128x32xf32> to vector<128xf32>
    %98 = vector.shape_cast %97 : vector<128xf32> to vector<128x1xf32>
    %cst_29 = arith.constant 3.200000e+01 : f32
    %99 = vector.broadcast %cst_29 : f32 to vector<128x1xf32>
    %100 = arith.divf %98, %99 : vector<128x1xf32>
    %101 = vector.broadcast %93 : vector<128x1xf32> to vector<128x32xf32>
    %102 = arith.subf %89, %101 : vector<128x32xf32>
    %cst_30 = arith.constant 9.99999974E-6 : f32
    %103 = vector.broadcast %cst_30 : f32 to vector<128x1xf32>
    %104 = arith.addf %100, %103 : vector<128x1xf32>
    %105 = math.rsqrt %104 : vector<128x1xf32>
    %106 = vector.broadcast %105 : vector<128x1xf32> to vector<128x32xf32>
    %107 = arith.mulf %102, %106 : vector<128x32xf32>
    %c0_31 = arith.constant 0 : index
    %c0_32 = arith.constant 0 : index
    %108 = vector.load %arg10[%c0_31, %c0_32] : memref<1x32xf32, #tpu.memory_space<vmem>>, vector<1x32xf32>
    %109 = vector.broadcast %108 : vector<1x32xf32> to vector<128x32xf32>
    %110 = arith.mulf %107, %109 : vector<128x32xf32>
    %c0_33 = arith.constant 0 : index
    %c0_34 = arith.constant 0 : index
    %111 = vector.load %arg11[%c0_33, %c0_34] : memref<1x32xf32, #tpu.memory_space<vmem>>, vector<1x32xf32>
    %112 = vector.broadcast %111 : vector<1x32xf32> to vector<128x32xf32>
    %113 = arith.addf %110, %112 : vector<128x32xf32>
    %114 = arith.truncf %113 : vector<128x32xf32> to vector<128x32xbf16>
    %c0_35 = arith.constant 0 : index
    %c0_36 = arith.constant 0 : index
    %115 = vector.load %arg12[%c0_35, %c0_36] : memref<32x32xbf16, #tpu.memory_space<vmem>>, vector<32x32xbf16>
    %cst_37 = arith.constant dense<0.000000e+00> : vector<128x32xf32>
    %116 = tpu.matmul %114, %115, %cst_37 {dimension_numbers = #tpu.dot_dimension_numbers<[1], [0], [0], [1], [0, 0, 1, 1], [], []>} : vector<128x32xbf16>, vector<32x32xbf16>, vector<128x32xf32> -> vector<128x32xf32>
    %c0_38 = arith.constant 0 : index
    %c0_39 = arith.constant 0 : index
    %117 = vector.load %arg13[%c0_38, %c0_39] : memref<1x32xf32, #tpu.memory_space<vmem>>, vector<1x32xf32>
    %118 = vector.broadcast %117 : vector<1x32xf32> to vector<128x32xf32>
    %119 = arith.addf %116, %118 : vector<128x32xf32>
    %120 = arith.mulf %119, %119 : vector<128x32xf32>
    %121 = arith.mulf %119, %120 : vector<128x32xf32>
    %cst_40 = arith.constant 4.471500e-02 : f32
    %122 = vector.broadcast %cst_40 : f32 to vector<128x32xf32>
    %123 = arith.mulf %122, %121 : vector<128x32xf32>
    %124 = arith.addf %119, %123 : vector<128x32xf32>
    %cst_41 = arith.constant 0.797884583 : f32
    %125 = vector.broadcast %cst_41 : f32 to vector<128x32xf32>
    %126 = arith.mulf %125, %124 : vector<128x32xf32>
    %127 = math.tanh %126 : vector<128x32xf32>
    %cst_42 = arith.constant 1.000000e+00 : f32
    %128 = vector.broadcast %cst_42 : f32 to vector<128x32xf32>
    %129 = arith.addf %128, %127 : vector<128x32xf32>
    %cst_43 = arith.constant 5.000000e-01 : f32
    %130 = vector.broadcast %cst_43 : f32 to vector<128x32xf32>
    %131 = arith.mulf %130, %129 : vector<128x32xf32>
    %132 = arith.mulf %119, %131 : vector<128x32xf32>
    %133 = arith.truncf %132 : vector<128x32xf32> to vector<128x32xbf16>
    %c0_44 = arith.constant 0 : index
    %c0_45 = arith.constant 0 : index
    %134 = vector.load %arg14[%c0_44, %c0_45] : memref<32x32xbf16, #tpu.memory_space<vmem>>, vector<32x32xbf16>
    %cst_46 = arith.constant dense<0.000000e+00> : vector<128x32xf32>
    %135 = tpu.matmul %133, %134, %cst_46 {dimension_numbers = #tpu.dot_dimension_numbers<[1], [0], [0], [1], [0, 0, 1, 1], [], []>} : vector<128x32xbf16>, vector<32x32xbf16>, vector<128x32xf32> -> vector<128x32xf32>
    %c0_47 = arith.constant 0 : index
    %c0_48 = arith.constant 0 : index
    %136 = vector.load %arg15[%c0_47, %c0_48] : memref<1x32xf32, #tpu.memory_space<vmem>>, vector<1x32xf32>
    %137 = vector.broadcast %136 : vector<1x32xf32> to vector<128x32xf32>
    %138 = arith.addf %135, %137 : vector<128x32xf32>
    %139 = arith.addf %89, %138 : vector<128x32xf32>
    %c0_49 = arith.constant 0 : index
    %c0_50 = arith.constant 0 : index
    %c0_51 = arith.constant 0 : index
    %140 = vector.load %arg16[%c0_49, %c0_50, %c0_51] : memref<1x128x32xf32, #tpu.memory_space<vmem>>, vector<1x128x32xf32>
    %141 = vector.shape_cast %140 : vector<1x128x32xf32> to vector<128x32xf32>
    %142 = vector.shape_cast %139 : vector<128x32xf32> to vector<1x128x32xf32>
    tpu.vector_store %arg16[%c0_49, %c0_50, %c0_51], %142 {strides = array<i32>} : memref<1x128x32xf32, #tpu.memory_space<vmem>>, vector<1x128x32xf32>,
    return
  }
  func.func @transform_0(%arg0: i32) -> (i32, i32, i32) {
    %c0_i32 = arith.constant 0 : i32
    %c0_i32_0 = arith.constant 0 : i32
    %c0_i32_1 = arith.constant 0 : i32
    return %arg0, %c0_i32, %c0_i32_0 : i32, i32, i32
  }
  func.func @transform_1(%arg0: i32) -> (i32, i32, i32) {
    %c0_i32 = arith.constant 0 : i32
    %c0_i32_0 = arith.constant 0 : i32
    %c0_i32_1 = arith.constant 0 : i32
    return %arg0, %c0_i32, %c0_i32_0 : i32, i32, i32
  }
  func.func @transform_2(%arg0: i32) -> (i32, i32, i32) {
    %c0_i32 = arith.constant 0 : i32
    %c0_i32_0 = arith.constant 0 : i32
    %c0_i32_1 = arith.constant 0 : i32
    %c0_i32_2 = arith.constant 0 : i32
    return %c0_i32, %c0_i32_0, %c0_i32_1 : i32, i32, i32
  }
  func.func @transform_3(%arg0: i32) -> (i32, i32) {
    %c0_i32 = arith.constant 0 : i32
    %c0_i32_0 = arith.constant 0 : i32
    %c0_i32_1 = arith.constant 0 : i32
    return %c0_i32, %c0_i32_0 : i32, i32
  }
  func.func @transform_4(%arg0: i32) -> (i32, i32) {
    %c0_i32 = arith.constant 0 : i32
    %c0_i32_0 = arith.constant 0 : i32
    %c0_i32_1 = arith.constant 0 : i32
    return %c0_i32, %c0_i32_0 : i32, i32
  }
  func.func @transform_5(%arg0: i32) -> (i32, i32) {
    %c0_i32 = arith.constant 0 : i32
    %c0_i32_0 = arith.constant 0 : i32
    %c0_i32_1 = arith.constant 0 : i32
    return %c0_i32, %c0_i32_0 : i32, i32
  }
  func.func @transform_6(%arg0: i32) -> (i32, i32) {
    %c0_i32 = arith.constant 0 : i32
    %c0_i32_0 = arith.constant 0 : i32
    %c0_i32_1 = arith.constant 0 : i32
    return %c0_i32, %c0_i32_0 : i32, i32
  }
  func.func @transform_7(%arg0: i32) -> (i32, i32) {
    %c0_i32 = arith.constant 0 : i32
    %c0_i32_0 = arith.constant 0 : i32
    %c0_i32_1 = arith.constant 0 : i32
    return %c0_i32, %c0_i32_0 : i32, i32
  }
  func.func @transform_8(%arg0: i32) -> (i32, i32) {
    %c0_i32 = arith.constant 0 : i32
    %c0_i32_0 = arith.constant 0 : i32
    %c0_i32_1 = arith.constant 0 : i32
    return %c0_i32, %c0_i32_0 : i32, i32
  }
  func.func @transform_9(%arg0: i32) -> (i32, i32) {
    %c0_i32 = arith.constant 0 : i32
    %c0_i32_0 = arith.constant 0 : i32
    %c0_i32_1 = arith.constant 0 : i32
    return %c0_i32, %c0_i32_0 : i32, i32
  }
  func.func @transform_10(%arg0: i32) -> (i32, i32) {
    %c0_i32 = arith.constant 0 : i32
    %c0_i32_0 = arith.constant 0 : i32
    %c0_i32_1 = arith.constant 0 : i32
    return %c0_i32, %c0_i32_0 : i32, i32
  }
  func.func @transform_11(%arg0: i32) -> (i32, i32) {
    %c0_i32 = arith.constant 0 : i32
    %c0_i32_0 = arith.constant 0 : i32
    %c0_i32_1 = arith.constant 0 : i32
    return %c0_i32, %c0_i32_0 : i32, i32
  }
  func.func @transform_12(%arg0: i32) -> (i32, i32) {
    %c0_i32 = arith.constant 0 : i32
    %c0_i32_0 = arith.constant 0 : i32
    %c0_i32_1 = arith.constant 0 : i32
    return %c0_i32, %c0_i32_0 : i32, i32
  }
  func.func @transform_13(%arg0: i32) -> (i32, i32) {
    %c0_i32 = arith.constant 0 : i32
    %c0_i32_0 = arith.constant 0 : i32
    %c0_i32_1 = arith.constant 0 : i32
    return %c0_i32, %c0_i32_0 : i32, i32
  }
  func.func @transform_14(%arg0: i32) -> (i32, i32) {
    %c0_i32 = arith.constant 0 : i32
    %c0_i32_0 = arith.constant 0 : i32
    %c0_i32_1 = arith.constant 0 : i32
    return %c0_i32, %c0_i32_0 : i32, i32
  }
  func.func @transform_15(%arg0: i32) -> (i32, i32, i32) {
    %c0_i32 = arith.constant 0 : i32
    %c0_i32_0 = arith.constant 0 : i32
    %c0_i32_1 = arith.constant 0 : i32
    return %arg0, %c0_i32, %c0_i32_0 : i32, i32, i32
  }
}

</mosaic_0001>

<bundles_post_ra>
// kernel: tpu_custom_call.1
= control target key start
LH: loop header
LB: loop body
LE: loop exit
PB: predicated region body
PF: predicated region fallthrough
CT: control target
= control target key end

     0   :  { %vm111_vm0 = vcmask 261120   ;;  %vm776_vm1 = vcmask 64512   ;;  %s5427_s27 = smov 96   ;;  %vm1799_vm2 = vcmask 130048   ;;  %s5429_s17 = smov 8   ;;  %vm3592_vm3 = vcmask 195584   ;;  %s7743_s3 = inlined_call_operand.vmem [shape: bf16[32,64], index: 3, kind: input, shape index: {}]   ;;  %s7744_s5 = inlined_call_operand.vmem [shape: bf16[32,32], index: 5, kind: input, shape index: {}]   ;;  %s7745_s0 = inlined_call_operand.vmem [shape: f32[1,128,32], index: 0, kind: input, shape index: {}]   ;;  %s7746_s1 = inlined_call_operand.vmem [shape: bf16[1,128,32], index: 1, kind: input, shape index: {}]   ;;  %s7747_s6 = inlined_call_operand.vmem [shape: f32[1,32], index: 6, kind: input, shape index: {}]   ;;  %s7748_s4 = inlined_call_operand.vmem [shape: f32[1,64], index: 4, kind: input, shape index: {}]   ;;  %s7749_s2 = inlined_call_operand.vmem [shape: f32[4,16,16], index: 2, kind: input, shape index: {}]   ;;  %s7750_s7 = inlined_call_operand.vmem [shape: bf16[32,32], index: 7, kind: input, shape index: {}]   ;;  %s7751_s8 = inlined_call_operand.vmem [shape: f32[1,32], index: 8, kind: input, shape index: {}]   ;;  %s7752_s9 = inlined_call_operand.vmem [shape: f32[1,32], index: 9, kind: input, shape index: {}]   ;;  %s7753_s10 = inlined_call_operand.vmem [shape: f32[1,32], index: 10, kind: input, shape index: {}]   ;;  %s7754_s11 = inlined_call_operand.vmem [shape: bf16[32,32], index: 11, kind: input, shape index: {}]   ;;  %s7755_s12 = inlined_call_operand.vmem [shape: f32[1,32], index: 12, kind: input, shape index: {}]   ;;  %s7756_s13 = inlined_call_operand.vmem [shape: bf16[32,32], index: 13, kind: input, shape index: {}]   ;;  %s7757_s14 = inlined_call_operand.vmem [shape: f32[1,32], index: 14, kind: input, shape index: {}]   ;;  %s7758_s15 = inlined_call_operand.vmem [shape: f32[1,128,32], index: 15, kind: output, shape index: {}]  }
   0x1   :  { %v4692_v0 = vld [vmem:[%s7743_s3 + $0x8] sm:$0xff]  ;;  %v4691_v2 = vld [vmem:[%s7743_s3] sm:$0xff]  ;;  %v65_v11 = vld [vmem:[%s7745_s0 + $0x70] sm:$0xff] }
   0x2   :  { %v4694_v1 = vld [vmem:[%s7744_s5 + $0x8] sm:$0xff]  ;;  %4701 = vmatpush.bf16.msra.mxu3 %v4692_v0  ;;  %v4693_v3 = vld [vmem:[%s7744_s5] sm:$0xff]  ;;  %142 = vmatpush.bf16.msra.mxu0 %v4692_v0  ;;  %v66_v12 = vld [vmem:[%s7745_s0 + $0x78] sm:$0xff] }
   0x3   :  { %275 = vmatpush.bf16.msra.mxu1 %v4694_v1  ;;  %v63_v4 = vld [vmem:[%s7745_s0 + $0x60] sm:$0xff]  ;;  %v64_v5 = vld [vmem:[%s7745_s0 + $0x68] sm:$0xff]  ;;  %v53_v13 = vld [vmem:[%s7745_s0 + $0x10] sm:$0xff]  ;;  %v74_v16 = vpack.c.bf16 %v66_v12, %v65_v11 }
   0x4   :  { %v51_v6 = vld [vmem:[%s7745_s0] sm:$0xff]  ;;  %v52_v7 = vld [vmem:[%s7745_s0 + $0x8] sm:$0xff]  ;;  %v73_v8 = vpack.c.bf16 %v64_v5, %v63_v4  ;;  %v54_v14 = vld [vmem:[%s7745_s0 + $0x18] sm:$0xff] }
   0x5   :  { %v4683_v9 = vld [vmem:[%s7746_s1] sm:$0xff]  ;;  %v67_v10 = vpack.c.bf16 %v52_v7, %v51_v6  ;;  %v4684_v15 = vld [vmem:[%s7746_s1 + $0x8] sm:$0xff]  ;;  %v68_v17 = vpack.c.bf16 %v54_v14, %v53_v13  ;;  %v4685_v20 = vld [vmem:[%s7746_s1 + $0x10] sm:$0xff] }
   0x6   :  { %4702 = vmatpush.bf16.msra.mxu3 %v4691_v2  ;;  %143 = vmatpush.bf16.msra.mxu0 %v4691_v2  ;;  %v55_v18 = vld [vmem:[%s7745_s0 + $0x20] sm:$0xff]  ;;  %v56_v19 = vld [vmem:[%s7745_s0 + $0x28] sm:$0xff]  ;;  %v4689_v21 = vld [vmem:[%s7746_s1 + $0x30] sm:$0xff] }
   0x7   :  { %276 = vmatpush.bf16.msra.mxu1 %v4693_v3  ;;  %v69_v22 = vpack.c.bf16 %v56_v19, %v55_v18  ;;  %v57_v23 = vld [vmem:[%s7745_s0 + $0x30] sm:$0xff]  ;;  %v58_v24 = vld [vmem:[%s7745_s0 + $0x38] sm:$0xff]  ;;  %v59_v28 = vld [vmem:[%s7745_s0 + $0x40] sm:$0xff] }
   0x8   :  { %v4686_v25 = vld [vmem:[%s7746_s1 + $0x18] sm:$0xff]  ;;  %v70_v27 = vpack.c.bf16 %v58_v24, %v57_v23  ;;  %v60_v29 = vld [vmem:[%s7745_s0 + $0x48] sm:$0xff]  ;;  %v4687_v30 = vld [vmem:[%s7746_s1 + $0x20] sm:$0xff] }
   0x9   :  { %4521 = vmatmul.msk.bf16.vlgmr.msra.gmra.mxu3 %vm111_vm0, %v73_v8  ;;  %4515 = vmatmul.msk.bf16.vlgmr.msra.gmra.mxu0 %vm111_vm0, %v67_v10  ;;  %v4690_v26 = vld [vmem:[%s7746_s1 + $0x38] sm:$0xff]  ;;  %v71_v31 = vpack.c.bf16 %v60_v29, %v59_v28  ;;  %v61_v32 = vld [vmem:[%s7745_s0 + $0x50] sm:$0xff]  ;;  %v4688_v34 = vld [vmem:[%s7746_s1 + $0x28] sm:$0xff]  ;;  %s5424_s1 = smov 104  }
   0xa   :  { %4703 = vmatpush.bf16.msrb.mxu3 %v4694_v1  ;;  %4563 = vmatmul.msk.bf16.vlgmr.msra.gmra.mxu1 %vm111_vm0, %v4683_v9  ;;  %v62_v33 = vld [vmem:[%s7745_s0 + $0x58] sm:$0xff]  ;;  %v5615_v37 = vld [vmem:[%s7747_s6] ss:$0 sm:$0xff]  ;;  %s5425_s6 = smov 112  }
   0xb   :  { %v72_v35 = vpack.c.bf16 %v62_v33, %v61_v32  ;;  %v5621_v40 = vld [vmem:[%s7748_s4] ss:$0 sm:$0xff]  ;;  %s5426_s4 = smov 120  }
   0xe   :  { %4704 = vmatpush.bf16.msrb.mxu3 %v4693_v3 }
  0x19   :  { %4522 = vmatmul.msk.bf16.gmra.mxu3 %vm111_vm0, %v74_v16  ;;  %4516 = vmatmul.msk.bf16.gmra.mxu0 %vm111_vm0, %v68_v17 }
  0x1a   :  { %4564 = vmatmul.msk.bf16.gmra.mxu1 %vm111_vm0, %v4684_v15 }
  0x29   :  { %4569 = vmatmul.msk.bf16.vlgmr.msrb.gmra.mxu3 %vm111_vm0, %v4689_v21  ;;  %4517 = vmatmul.msk.bf16.gmra.mxu0 %vm111_vm0, %v69_v22 }
  0x2a   :  { %4565 = vmatmul.msk.bf16.gmra.mxu1 %vm111_vm0, %v4685_v20 }
  0x39   :  { %4570 = vmatmul.msk.bf16.gmra.mxu3 %vm111_vm0, %v4690_v26  ;;  %4518 = vmatmul.msk.bf16.gmra.mxu0 %vm111_vm0, %v70_v27 }
  0x3a   :  { %4566 = vmatmul.msk.bf16.gmra.mxu1 %vm111_vm0, %v4686_v25 }
  0x49   :  { %4519 = vmatmul.msk.bf16.gmra.mxu0 %vm111_vm0, %v71_v31 }
  0x4a   :  { %4567 = vmatmul.msk.bf16.gmra.mxu1 %vm111_vm0, %v4687_v30 }
  0x59   :  { %4520 = vmatmul.msk.bf16.gmra.mxu0 %vm111_vm0, %v72_v35 }
  0x5a   :  { %4568 = vmatmul.msk.bf16.gmra.mxu1 %vm111_vm0, %v4688_v34 }
  0x86   :  { %v145_v38 = vpop.f32.mrf.mxu0 }
  0x87   :  { %v278_v36 = vpop.f32.mrf.mxu1  ;;  %v146_v46 = vadd.f32 %v5621_v40, %v145_v38 }
  0x88   :  { %v279_v39 = vadd.f32 %v5615_v37, %v278_v36 }
  0x89   :  { %v478_v53 = vpack.c.bf16 %v146_v46, %v146_v46 }
  0x8a   :  { %v702_v45 = vpack.c.bf16 %v279_v39, %v279_v39 }
  0x8b   :  { %v768_v62 = vunpack.c.l.b16 %v478_v53 }
  0x8c   :  { %v175_v41 = vpop.f32.mrf.mxu3  ;;  %v773_v50 = vunpack.c.l.b16 %v702_v45 }
  0x8d   :  { %v176_v58 = vadd.f32 %v5621_v40, %v175_v41 }
  0x8e   :  { %v147_v44 = vpop.f32.mrf.mxu0 }
  0x8f   :  { %v280_v42 = vpop.f32.mrf.mxu1  ;;  %v148_v47 = vadd.f32 %v5621_v40, %v147_v44  ;;  %v490_v3 = vpack.c.bf16 %v176_v58, %v176_v58 }
  0x90   :  { %v281_v43 = vadd.f32 %v5615_v37, %v280_v42 }
  0x91   :  { %v479_v56 = vpack.c.bf16 %v148_v47, %v148_v47  ;;  %v4730_v61 = vpack.i.bf16 %v148_v47, %v146_v46  ;;  %v949_v11 = vunpack.c.l.b16 %v490_v3 }
  0x92   :  { %v4735_v48 = vpack.i.bf16 %v281_v43, %v279_v39  ;;  %v703_v49 = vpack.c.bf16 %v281_v43, %v281_v43 }
  0x93   :  { %v769_v1 = vunpack.c.l.b16 %v479_v56 }
  0x94   :  { %4736 = vrot.lane.b32.xlu1 %v4735_v48, %s5424_s1  ;;  %4726 = vrot.lane.b32.xlu2 %v4735_v48, %s5425_s6  ;;  %v774_v51 = vunpack.c.l.b16 %v703_v49  ;;  %v177_v52 = vpop.f32.mrf.mxu3 }
  0x95   :  { %4716 = vrot.lane.b32.xlu0 %v4735_v48, %s5426_s4  ;;  %v178_v54 = vadd.f32 %v5621_v40, %v177_v52  ;;  %v770_v4 = vpack.c.b16 %v769_v1, %v768_v62 }
  0x96   :  { %v775_v55 = vpack.c.b16 %v774_v51, %v773_v50  ;;  %v150_v60 = vpop.f32.mrf.mxu0 }
  0x97   :  { %v283_v57 = vpop.f32.mrf.mxu1  ;;  %v4750_v0 = vpack.i.bf16 %v178_v54, %v176_v58  ;;  %v491_v2 = vpack.c.bf16 %v178_v54, %v178_v54  ;;  %v151_v9 = vadd.f32 %v5621_v40, %v150_v60 }
  0x98   :  { %v781_v59 = vsel %vm776_vm1, %v775_v55, 0  ;;  %v284_v63 = vadd.f32 %v5615_v37, %v283_v57 }
  0x99   :  { %790 = vmatpush.bf16.xpose.msra.mxu2 %v781_v59  ;;  %v950_v5 = vunpack.c.l.b16 %v491_v2  ;;  %v480_v17 = vpack.c.bf16 %v151_v9, %v151_v9 }
  0x9a   :  { %v704_v7 = vpack.c.bf16 %v284_v63, %v284_v63 }
  0x9b   :  { %v5640_v14 = vpack.c.b16 %v950_v5, %v949_v11  ;;  %v799_v22 = vunpack.c.l.b16 %v480_v17 }
  0x9c   :  { %4751 = vrot.lane.b32.xlu1 %v4750_v0, %s5425_s6  ;;  %4731 = vrot.lane.b32.xlu2 %v4730_v61, %s5425_s6  ;;  %v180_v6 = vpop.f32.mrf.mxu3  ;;  %v804_v16 = vunpack.c.l.b16 %v704_v7 }
  0x9d   :  { %4721 = vrot.lane.b32.xlu0 %v4730_v61, %s5426_s4  ;;  %v181_v31 = vadd.f32 %v5621_v40, %v180_v6 }
  0x9e   :  { %v152_v12 = vpop.f32.mrf.mxu0 }
  0x9f   :  { %v285_v8 = vpop.f32.mrf.mxu1  ;;  %v153_v13 = vadd.f32 %v5621_v40, %v152_v12  ;;  %v492_v1 = vpack.c.bf16 %v181_v31, %v181_v31 }
  0xa0   :  { %v286_v10 = vadd.f32 %v5615_v37, %v285_v8  ;;  %4571 = vmatmul.msk.bf16.vlgmr.msra.gmra.mxu2 %vm776_vm1, %v770_v4 }
  0xa1   :  { %v481_v18 = vpack.c.bf16 %v153_v13, %v153_v13  ;;  %v4765_v39 = vpack.i.bf16 %v153_v13, %v151_v9 }
  0xa2   :  { %v705_v15 = vpack.c.bf16 %v286_v10, %v286_v10  ;;  %v4760_v28 = vpack.i.bf16 %v286_v10, %v284_v63  ;;  %v979_v10 = vunpack.c.l.b16 %v492_v1 }
  0xa3   :  { %v800_v23 = vunpack.c.l.b16 %v481_v18 }
  0xa4   :  { %2723 = vrot.lane.b32.xlu1 %v5640_v14, %s5427_s27  ;;  %4741 = vrot.lane.b32.xlu2 %v4730_v61, %s5424_s1  ;;  %v805_v19 = vunpack.c.l.b16 %v705_v15  ;;  %v182_v25 = vpop.f32.mrf.mxu3 }
  0xa5   :  { %4746 = vrot.lane.b32.xlu0 %v4750_v0, %s5426_s4  ;;  %v801_v29 = vpack.c.b16 %v800_v23, %v799_v22  ;;  %v183_v32 = vadd.f32 %v5621_v40, %v182_v25 }
  0xa6   :  { %v806_v20 = vpack.c.b16 %v805_v19, %v804_v16  ;;  %v155_v26 = vpop.f32.mrf.mxu0 }
  0xa7   :  { %v288_v21 = vpop.f32.mrf.mxu1  ;;  %v5658_v34 = vadd.f32 %v5621_v40, %v155_v26  ;;  %v4795_v44 = vpack.i.bf16 %v183_v32, %v181_v31 }
  0xa8   :  { %v811_v24 = vsel %vm776_vm1, %v806_v20, 0  ;;  %v5648_v27 = vadd.f32 %v5615_v37, %v288_v21 }
  0xa9   :  { %820 = vmatpush.bf16.xpose.msra.mxu3 %v811_v24  ;;  %v482_v45 = vpack.c.bf16 %v5658_v34, %v5658_v34 }
  0xaa   :  { %v706_v30 = vpack.c.bf16 %v5648_v27, %v5648_v27 }
  0xab   :  { %v829_v50 = vunpack.c.l.b16 %v482_v45 }
  0xac   :  { %4761 = vrot.lane.b32.xlu1 %v4760_v28, %s5426_s4  ;;  %2573 = vrot.lane.b32.xlu2 %v770_v4, %s5427_s27  ;;  %v308_v41 = vpop.f32.mrf.mxu3  ;;  %v834_v43 = vunpack.c.l.b16 %v706_v30  ;;  %v493_v4 = vpack.c.bf16 %v183_v32, %v183_v32 }
  0xad   :  { %4756 = vrot.lane.b32.xlu0 %v4750_v0, %s5424_s1  ;;  %v309_v58 = vadd.f32 %v5615_v37, %v308_v41 }
  0xae   :  { %v157_v36 = vpop.f32.mrf.mxu0  ;;  %v980_v11 = vunpack.c.l.b16 %v493_v4 }
  0xaf   :  { %v290_v33 = vpop.f32.mrf.mxu1  ;;  %v5665_v38 = vadd.f32 %v5621_v40, %v157_v36  ;;  %v714_v23 = vpack.c.bf16 %v309_v58, %v309_v58 }
  0xb0   :  { %v5661_v35 = vadd.f32 %v5615_v37, %v290_v33  ;;  %4572 = vmatmul.msk.bf16.vlgmr.msra.gmra.mxu3 %vm776_vm1, %v801_v29  ;;  %v5700_v19 = vpack.c.b16 %v980_v11, %v979_v10 }
  0xb1   :  { %v483_v46 = vpack.c.bf16 %v5665_v38, %v5665_v38  ;;  %v954_v32 = vunpack.c.l.b16 %v714_v23 }
  0xb2   :  { %v707_v42 = vpack.c.bf16 %v5661_v35, %v5661_v35  ;;  %v4805_v36 = vpack.i.bf16 %v5661_v35, %v5648_v27 }
  0xb3   :  { %v830_v53 = vunpack.c.l.b16 %v483_v46 }
  0xb4   :  { %4771 = vrot.lane.b32.xlu1 %v4760_v28, %s5425_s6  ;;  %4766 = vrot.lane.b32.xlu2 %v4765_v39, %s5426_s4  ;;  %v835_v47 = vunpack.c.l.b16 %v707_v42  ;;  %v310_v55 = vpop.f32.mrf.mxu3 }
  0xb5   :  { %4796 = vrot.lane.b32.xlu0 %v4795_v44, %s5425_s6  ;;  %v5680_v56 = vpack.c.b16 %v830_v53, %v829_v50  ;;  %v311_v59 = vadd.f32 %v5615_v37, %v310_v55 }
  0xb6   :  { %v836_v48 = vpack.c.b16 %v835_v47, %v834_v43  ;;  %v160_v52 = vpop.f32.mrf.mxu0 }
  0xb7   :  { %v293_v49 = vpop.f32.mrf.mxu1  ;;  %v161_v61 = vadd.f32 %v5621_v40, %v160_v52  ;;  %v5690_v5 = vpack.i.bf16 %v311_v59, %v309_v58  ;;  %v715_v24 = vpack.c.bf16 %v311_v59, %v311_v59 }
  0xb8   :  { %v841_v51 = vsel %vm776_vm1, %v836_v48, 0  ;;  %v294_v54 = vadd.f32 %v5615_v37, %v293_v49 }
  0xb9   :  { %850 = vmatpush.bf16.xpose.msrb.mxu2 %v841_v51  ;;  %v484_v6 = vpack.c.bf16 %v161_v61, %v161_v61  ;;  %v955_v33 = vunpack.c.l.b16 %v715_v24 }
  0xba   :  { %v708_v57 = vpack.c.bf16 %v294_v54, %v294_v54 }
  0xbb   :  { %v859_v13 = vunpack.c.l.b16 %v484_v6  ;;  %v956_v27 = vpack.c.b16 %v955_v33, %v954_v32 }
  0xbc   :  { %4791 = vrot.lane.b32.xlu1 %v4795_v44, %s5426_s4  ;;  %4776 = vrot.lane.b32.xlu2 %v4765_v39, %s5425_s6  ;;  %v864_v3 = vunpack.c.l.b16 %v708_v57  ;;  %v313_v22 = vpop.f32.mrf.mxu3 }
  0xbd   :  { %4801 = vrot.lane.b32.xlu0 %v4795_v44, %s5424_s1  ;;  %v314_v51 = vadd.f32 %v5615_v37, %v313_v22  ;;  %v961_v52 = vsel %vm776_vm1, %v956_v27, 0 }
  0xbe   :  { %v162_v63 = vpop.f32.mrf.mxu0 }
  0xbf   :  { %v295_v60 = vpop.f32.mrf.mxu1  ;;  %v163_v0 = vadd.f32 %v5621_v40, %v162_v63  ;;  %v716_v57 = vpack.c.bf16 %v314_v51, %v314_v51 }
  0xc0   :  { %v296_v62 = vadd.f32 %v5615_v37, %v295_v60  ;;  %4573 = vmatmul.msk.bf16.vlgmr.msrb.gmra.mxu2 %vm776_vm1, %v5680_v56 }
  0xc1   :  { %v485_v7 = vpack.c.bf16 %v163_v0, %v163_v0  ;;  %v4865_v43 = vpack.i.bf16 %v163_v0, %v161_v61  ;;  %v984_v1 = vunpack.c.l.b16 %v716_v57 }
  0xc2   :  { %v709_v2 = vpack.c.bf16 %v296_v62, %v296_v62  ;;  %v5702_v20 = vpack.i.bf16 %v296_v62, %v294_v54 }
  0xc3   :  { %v860_v15 = vunpack.c.l.b16 %v485_v7 }
  0xc4   :  { %2598 = vrot.lane.b32.xlu1 %v801_v29, %s5427_s27  ;;  %4781 = vrot.lane.b32.xlu2 %v4760_v28, %s5424_s1  ;;  %v865_v8 = vunpack.c.l.b16 %v709_v2  ;;  %v315_v35 = vpop.f32.mrf.mxu3 }
  0xc5   :  { %4841 = vrot.lane.b32.xlu0 %v5690_v5, %s5425_s6  ;;  %v5707_v21 = vpack.c.b16 %v860_v15, %v859_v13  ;;  %v316_v53 = vadd.f32 %v5615_v37, %v315_v35 }
  0xc6   :  { %v866_v9 = vpack.c.b16 %v865_v8, %v864_v3  ;;  %v165_v17 = vpop.f32.mrf.mxu0 }
  0xc7   :  { %v298_v12 = vpop.f32.mrf.mxu1  ;;  %v5714_v28 = vadd.f32 %v5621_v40, %v165_v17  ;;  %v717_v58 = vpack.c.bf16 %v316_v53, %v316_v53  ;;  %v4880_v6 = vpack.i.bf16 %v316_v53, %v314_v51 }
  0xc8   :  { %v871_v16 = vsel %vm776_vm1, %v866_v9, 0  ;;  %v5698_v18 = vadd.f32 %v5615_v37, %v298_v12 }
  0xc9   :  { %880 = vmatpush.bf16.xpose.msrb.mxu3 %v871_v16  ;;  %v486_v44 = vpack.c.bf16 %v5714_v28, %v5714_v28  ;;  %v985_v2 = vunpack.c.l.b16 %v717_v58 }
  0xca   :  { %v710_v25 = vpack.c.bf16 %v5698_v18, %v5698_v18 }
  0xcb   :  { %v889_v47 = vunpack.c.l.b16 %v486_v44 }
  0xcc   :  { %2748 = vrot.lane.b32.xlu1 %v5700_v19, %s5427_s27  ;;  %4786 = vrot.lane.b32.xlu2 %v4765_v39, %s5424_s1  ;;  %v4810_v39 = vpack.i.bf16 %v5665_v38, %v5658_v34  ;;  %v894_v42 = vunpack.c.l.b16 %v710_v25 }
  0xcd   :  { %4851 = vrot.lane.b32.xlu0 %v5702_v20, %s5426_s4 }
  0xce   :  { %v167_v30 = vpop.f32.mrf.mxu0 }
  0xcf   :  { %v300_v26 = vpop.f32.mrf.mxu1  ;;  %v5722_v31 = vadd.f32 %v5621_v40, %v167_v30 }
  0xd0   :  { %v5717_v29 = vadd.f32 %v5615_v37, %v300_v26  ;;  %4574 = vmatmul.msk.bf16.vlgmr.msrb.gmra.mxu3 %vm776_vm1, %v5707_v21 }
  0xd1   :  { %v487_v45 = vpack.c.bf16 %v5722_v31, %v5722_v31 }
  0xd2   :  { %v711_v41 = vpack.c.bf16 %v5717_v29, %v5717_v29 }
  0xd3   :  { %v890_v48 = vunpack.c.l.b16 %v487_v45 }
  0xd4   :  { %4806 = vrot.lane.b32.xlu1 %v4805_v36, %s5426_s4  ;;  %4811 = vrot.lane.b32.xlu2 %v4810_v39, %s5426_s4  ;;  %v895_v46 = vunpack.c.l.b16 %v711_v41 }
  0xd5   :  { %4866 = vrot.lane.b32.xlu0 %v4865_v43, %s5425_s6  ;;  %v5744_v55 = vpack.c.b16 %v890_v48, %v889_v47 }
  0xd6   :  { %v896_v34 = vpack.c.b16 %v895_v46, %v894_v42  ;;  %v170_v50 = vpop.f32.mrf.mxu0  ;;  %v4895_v46 = vpack.i.bf16 %v5717_v29, %v5698_v18 }
  0xd7   :  { %v303_v38 = vpop.f32.mrf.mxu1  ;;  %v5748_v61 = vadd.f32 %v5621_v40, %v170_v50 }
  0xd8   :  { %v901_v49 = vsel %vm776_vm1, %v896_v34, 0  ;;  %v304_v54 = vadd.f32 %v5615_v37, %v303_v38 }
  0xd9   :  { %910 = vmatpush.bf16.xpose.msra.mxu2 %v901_v49  ;;  %v488_v7 = vpack.c.bf16 %v5748_v61, %v5748_v61 }
  0xda   :  { %v712_v59 = vpack.c.bf16 %v304_v54, %v304_v54 }
  0xdb   :  { %v919_v10 = vunpack.c.l.b16 %v488_v7 }
  0xdc   :  { %4816 = vrot.lane.b32.xlu1 %v4805_v36, %s5425_s6  ;;  %4821 = vrot.lane.b32.xlu2 %v4810_v39, %s5425_s6  ;;  %v924_v4 = vunpack.c.l.b16 %v712_v59 }
  0xdd   :  { %4876 = vrot.lane.b32.xlu0 %v4865_v43, %s5424_s1 }
  0xde   :  { %v172_v63 = vpop.f32.mrf.mxu0 }
  0xdf   :  { %v305_v60 = vpop.f32.mrf.mxu1  ;;  %v5754_v0 = vadd.f32 %v5621_v40, %v172_v63  ;;  %v986_v40 = vpack.c.b16 %v985_v2, %v984_v1 }
  0xe0   :  { %v306_v62 = vadd.f32 %v5615_v37, %v305_v60  ;;  %4575 = vmatmul.msk.bf16.vlgmr.msra.gmra.mxu2 %vm776_vm1, %v5744_v55 }
  0xe1   :  { %970 = vmatpush.bf16.xpose.msrb.mxu2 %v961_v52  ;;  %v489_v37 = vpack.c.bf16 %v5754_v0, %v5754_v0  ;;  %v991_v13 = vsel %vm776_vm1, %v986_v40, 0 }
  0xe2   :  { %v713_v3 = vpack.c.bf16 %v306_v62, %v306_v62  ;;  %v5771_v16 = vpack.i.bf16 %v306_v62, %v304_v54  ;;  %v4950_v54 = vpack.i.bf16 %v5754_v0, %v5748_v61 }
  0xe3   :  { %v920_v11 = vunpack.c.l.b16 %v489_v37 }
  0xe4   :  { %4826 = vrot.lane.b32.xlu1 %v4805_v36, %s5424_s1  ;;  %2623 = vrot.lane.b32.xlu2 %v5680_v56, %s5427_s27  ;;  %v925_v8 = vunpack.c.l.b16 %v713_v3 }
  0xe5   :  { %4881 = vrot.lane.b32.xlu0 %v4880_v6, %s5426_s4  ;;  %v5768_v56 = vpack.c.b16 %v920_v11, %v919_v10 }
  0xe6   :  { %v926_v9 = vpack.c.b16 %v925_v8, %v924_v4 }
  0xe8   :  { %v931_v12 = vsel %vm776_vm1, %v926_v9, 0 }
  0xe9   :  { %940 = vmatpush.bf16.xpose.msra.mxu3 %v931_v12 }
  0xec   :  { %4831 = vrot.lane.b32.xlu1 %v4810_v39, %s5424_s1  ;;  %4856 = vrot.lane.b32.xlu2 %v4865_v43, %s5426_s4 }
  0xed   :  { %4886 = vrot.lane.b32.xlu0 %v4880_v6, %s5425_s6 }
  0xee   :  { %v4727_v15 = vpop.permute.xlu2 %4726 }
  0xef   :  { %v4729_v17 = vunpack.i.h.bf16 %v4727_v15  ;;  %v4728_v22 = vunpack.i.l.bf16 %v4727_v15 }
  0xf0   :  { %4576 = vmatmul.msk.bf16.vlgmr.msra.gmra.mxu3 %vm776_vm1, %v5768_v56  ;;  %4577 = vmatmul.msk.bf16.vlgmr.msrb.gmra.mxu2 %vm776_vm1, %v5640_v14 }
  0xf1   :  { %1000 = vmatpush.bf16.xpose.msrb.mxu3 %v991_v13  ;;  %v735_v23 = vpack.c.bf16 %v4729_v17, %v4729_v17  ;;  %v734_v24 = vpack.c.bf16 %v4728_v22, %v4728_v22 }
  0xf3   :  { %v1254_v25 = vunpack.c.l.b16 %v734_v24  ;;  %v1255_v26 = vunpack.c.l.b16 %v735_v23 }
  0xf4   :  { %4836 = vrot.lane.b32.xlu1 %v5690_v5, %s5426_s4  ;;  %4861 = vrot.lane.b32.xlu2 %v5702_v20, %s5425_s6 }
  0xf5   :  { %4891 = vrot.lane.b32.xlu0 %v4880_v6, %s5424_s1  ;;  %v1256_v30 = vpack.c.b16 %v1255_v26, %v1254_v25 }
  0xf6   :  { %v4732_v32 = vpop.permute.xlu2 %4731 }
  0xf7   :  { %v4734_v33 = vunpack.i.h.bf16 %v4732_v32  ;;  %v4733_v36 = vunpack.i.l.bf16 %v4732_v32  ;;  %v1261_v39 = vsel %vm776_vm1, %v1256_v30, 0 }
  0xf8   :  { %1270 = vmatpush.bf16.xpose.msrb.mxu0 %v1261_v39 }
  0xf9   :  { %v511_v14 = vpack.c.bf16 %v4734_v33, %v4734_v33  ;;  %v510_v41 = vpack.c.bf16 %v4733_v36, %v4733_v36 }
  0xfb   :  { %v1250_v42 = vunpack.c.l.b16 %v511_v14  ;;  %v1249_v43 = vunpack.c.l.b16 %v510_v41 }
  0xfc   :  { %4846 = vrot.lane.b32.xlu1 %v5690_v5, %s5424_s1  ;;  %4871 = vrot.lane.b32.xlu2 %v5702_v20, %s5424_s1  ;;  %v4900_v5 = vpack.i.bf16 %v5722_v31, %v5714_v28 }
  0xfd   :  { %v5787_v44 = vpack.c.b16 %v1250_v42, %v1249_v43  ;;  %2648 = vrot.lane.b32.xlu0 %v5707_v21, %s5427_s27 }
  0xfe   :  { %v5791_v45 = vpop.permute.xlu2 %4741 }
  0xff   :  { %7797 = vst [vmem:[#allocation2_spill] sm:$0xff] %v5787_v44  ;;  %4587 = vmatmul.msk.bf16.vlgmr.msrb.gmra.mxu0 %vm776_vm1, %v5787_v44 }
 0x100   :  { %4578 = vmatmul.msk.bf16.vlgmr.msrb.gmra.mxu3 %vm776_vm1, %v5700_v19 }
 0x104   :  { %4896 = vrot.lane.b32.xlu1 %v4895_v46, %s5426_s4  ;;  %4906 = vrot.lane.b32.xlu2 %v4895_v46, %s5425_s6 }
 0x105   :  { %4901 = vrot.lane.b32.xlu0 %v4900_v5, %s5426_s4 }
 0x106   :  { %v5804_v20 = vpop.permute.xlu1 %4736  ;;  %v5806_v21 = vpop.permute.xlu2 %2573 }
 0x107   :  { %v4717_v27 = vpop.permute.xlu0 %4716 }
 0x108   :  { %v4719_v34 = vunpack.i.h.bf16 %v4717_v27  ;;  %v4718_v35 = vunpack.i.l.bf16 %v4717_v27 }
 0x10a   :  { %v719_v19 = vpack.c.bf16 %v4719_v34, %v4719_v34  ;;  %v718_v38 = vpack.c.bf16 %v4718_v35, %v4718_v35 }
 0x10c   :  { %v1015_v47 = vunpack.c.l.b16 %v719_v19  ;;  %v1014_v18 = vunpack.c.l.b16 %v718_v38  ;;  %4916 = vrot.lane.b32.xlu1 %v4895_v46, %s5424_s1  ;;  %4921 = vrot.lane.b32.xlu2 %v4900_v5, %s5424_s1 }
 0x10d   :  { %4911 = vrot.lane.b32.xlu0 %v4900_v5, %s5425_s6 }
 0x10e   :  { %v5811_v28 = vpop.permute.xlu1 %4751  ;;  %v4767_v29 = vpop.permute.xlu2 %4766  ;;  %v1016_v31 = vpack.c.b16 %v1015_v47, %v1014_v18 }
 0x10f   :  { %v4722_v48 = vpop.permute.xlu0 %4721  ;;  %v4769_v49 = vunpack.i.h.bf16 %v4767_v29  ;;  %v4768_v50 = vunpack.i.l.bf16 %v4767_v29 }
 0x110   :  { %v4724_v51 = vunpack.i.h.bf16 %v4722_v48  ;;  %v4723_v52 = vunpack.i.l.bf16 %v4722_v48  ;;  %v1021_v53 = vsel %vm776_vm1, %v1016_v31, 0 }
 0x111   :  { %1030 = vmatpush.bf16.xpose.msra.mxu2 %v1021_v53  ;;  %v497_v59 = vpack.c.bf16 %v4769_v49, %v4769_v49  ;;  %v496_v60 = vpack.c.bf16 %v4768_v50, %v4768_v50 }
 0x112   :  { %v495_v57 = vpack.c.bf16 %v4724_v51, %v4724_v51  ;;  %v494_v58 = vpack.c.bf16 %v4723_v52, %v4723_v52 }
 0x113   :  { %v1040_v2 = vunpack.c.l.b16 %v497_v59  ;;  %v1039_v3 = vunpack.c.l.b16 %v496_v60 }
 0x114   :  { %v1010_v62 = vunpack.c.l.b16 %v495_v57  ;;  %v1009_v63 = vunpack.c.l.b16 %v494_v58  ;;  %4926 = vrot.lane.b32.xlu1 %v5771_v16, %s5426_s4  ;;  %4951 = vrot.lane.b32.xlu2 %v4950_v54, %s5424_s1 }
 0x115   :  { %2673 = vrot.lane.b32.xlu0 %v5744_v55, %s5427_s27  ;;  %v1041_v6 = vpack.c.b16 %v1040_v2, %v1039_v3 }
 0x116   :  { %v1011_v1 = vpack.c.b16 %v1010_v62, %v1009_v63  ;;  %v5821_v4 = vpop.permute.xlu1 %2723  ;;  %v4777_v61 = vpop.permute.xlu2 %4776 }
 0x117   :  { %v5823_v0 = vpop.permute.xlu0 %4746  ;;  %v4779_v32 = vunpack.i.h.bf16 %v4777_v61  ;;  %v4778_v33 = vunpack.i.l.bf16 %v4777_v61 }
 0x118   :  { %4579 = vmatmul.msk.bf16.vlgmr.msra.gmra.mxu2 %vm776_vm1, %v1011_v1 }
 0x119   :  { %v513_v41 = vpack.c.bf16 %v4779_v32, %v4779_v32  ;;  %v512_v42 = vpack.c.bf16 %v4778_v33, %v4778_v33 }
 0x11b   :  { %v1280_v19 = vunpack.c.l.b16 %v513_v41  ;;  %v1279_v38 = vunpack.c.l.b16 %v512_v42 }
 0x11c   :  { %4941 = vrot.lane.b32.xlu1 %v4950_v54, %s5425_s6  ;;  %2798 = vrot.lane.b32.xlu2 %v1041_v6, %s5427_s27 }
 0x11d   :  { %4931 = vrot.lane.b32.xlu0 %v4950_v54, %s5426_s4  ;;  %v5851_v29 = vpack.c.b16 %v1280_v19, %v1279_v38 }
 0x11e   :  { %v4762_v7 = vpop.permute.xlu1 %4761  ;;  %v5829_v37 = vpop.permute.xlu2 %4781 }
 0x11f   :  { %v4764_v55 = vunpack.i.h.bf16 %v4762_v7  ;;  %v4763_v8 = vunpack.i.l.bf16 %v4762_v7  ;;  %v5831_v40 = vpop.permute.xlu0 %4756  ;;  %7798 = vst [vmem:[#allocation3_spill] sm:$0xff] %v5851_v29  ;;  %v5881_v7 = vld [vmem:[%s7749_s2] sm:$0xff] }
 0x121   :  { %v721_v9 = vpack.c.bf16 %v4764_v55, %v4764_v55  ;;  %v720_v10 = vpack.c.bf16 %v4763_v8, %v4763_v8 }
 0x123   :  { %v1045_v11 = vunpack.c.l.b16 %v721_v9  ;;  %v1044_v12 = vunpack.c.l.b16 %v720_v10  ;;  %v792_v47 = vpop.f32.mrf.mxu2 }
 0x124   :  { %2773 = vrot.lane.b32.xlu1 %v1011_v1, %s5427_s27 }
 0x125   :  { %4936 = vrot.lane.b32.xlu0 %v5771_v16, %s5425_s6  ;;  %v1046_v13 = vpack.c.b16 %v1045_v11, %v1044_v12 }
 0x126   :  { %v4772_v15 = vpop.permute.xlu1 %4771  ;;  %v5836_v17 = vpop.permute.xlu2 %4786 }
 0x127   :  { %v4774_v22 = vunpack.i.h.bf16 %v4772_v15  ;;  %v4773_v23 = vunpack.i.l.bf16 %v4772_v15  ;;  %v5838_v24 = vpop.permute.xlu0 %4796  ;;  %v1051_v25 = vsel %vm776_vm1, %v1046_v13, 0 }
 0x128   :  { %1060 = vmatpush.bf16.xpose.msra.mxu3 %v1051_v25 }
 0x129   :  { %v737_v26 = vpack.c.bf16 %v4774_v22, %v4774_v22  ;;  %v736_v30 = vpack.c.bf16 %v4773_v23, %v4773_v23  ;;  %v5886_v23 = vadd.f32 %v5881_v7, %v792_v47 }
 0x12b   :  { %v1284_v36 = vunpack.c.l.b16 %v736_v30  ;;  %v1285_v39 = vunpack.c.l.b16 %v737_v26  ;;  %v794_v54 = vpop.f32.mrf.mxu2 }
 0x12d   :  { %4946 = vrot.lane.b32.xlu0 %v5771_v16, %s5424_s1  ;;  %v1286_v14 = vpack.c.b16 %v1285_v39, %v1284_v36 }
 0x12e   :  { %v5843_v43 = vpop.permute.xlu1 %4791  ;;  %v4812_v46 = vpop.permute.xlu2 %4811 }
 0x12f   :  { %v5845_v5 = vpop.permute.xlu0 %4801  ;;  %v4814_v27 = vunpack.i.h.bf16 %v4812_v46  ;;  %v4813_v34 = vunpack.i.l.bf16 %v4812_v46  ;;  %4580 = vmatmul.msk.bf16.vlgmr.msra.gmra.mxu3 %vm776_vm1, %v1041_v6  ;;  %v1291_v35 = vsel %vm776_vm1, %v1286_v14, 0 }
 0x130   :  { %1300 = vmatpush.bf16.xpose.msrb.mxu1 %v1291_v35  ;;  %v1800_v35 = vsel %vm1799_vm2, %v5886_v23, -inf }
 0x131   :  { %v499_v18 = vpack.c.bf16 %v4814_v27, %v4814_v27  ;;  %v498_v16 = vpack.c.bf16 %v4813_v34, %v4813_v34 }
 0x133   :  { %v1070_v49 = vunpack.c.l.b16 %v499_v18  ;;  %v1069_v50 = vunpack.c.l.b16 %v498_v16  ;;  %v5861_v52 = vpop.f32.mrf.mxu3 }
 0x135   :  { %2698 = vrot.lane.b32.xlu0 %v5768_v56, %s5427_s27  ;;  %v1071_v53 = vpack.c.b16 %v1070_v49, %v1069_v50  ;;  %v5866_v56 = vld [vmem:[%s7749_s2 + $0x8] sm:$0xff] }
 0x136   :  { %v5853_v31 = vpop.permute.xlu1 %2598  ;;  %v5855_v48 = vpop.permute.xlu2 %4821  ;;  %v5874_v60 = vadd.f32 %v5866_v56, %v794_v54 }
 0x137   :  { %v5857_v51 = vpop.permute.xlu0 %4841  ;;  %4588 = vmatmul.msk.bf16.vlgmr.msrb.gmra.mxu1 %vm776_vm1, %v5851_v29 }
 0x138   :  { %v1803_v6 = vsel %vm1799_vm2, %v5874_v60, -inf }
 0x13b   :  { %v824_v55 = vpop.f32.mrf.mxu3 }
 0x13c   :  { %v5889_v25 = vadd.f32 %v5866_v56, %v824_v55 }
 0x13d   :  { %2823 = vrot.lane.b32.xlu0 %v1071_v53, %s5427_s27 }
 0x13e   :  { %v5869_v57 = vpop.permute.xlu1 %2748  ;;  %v5871_v58 = vpop.permute.xlu2 %2623  ;;  %v1809_v46 = vsel %vm1799_vm2, %v5889_v25, -inf }
 0x13f   :  { %7799 = vst [vmem:[#allocation4_spill] sm:$0xff] %v5869_v57  ;;  %v4852_v59 = vpop.permute.xlu0 %4851 }
 0x140   :  { %v4854_v62 = vunpack.i.h.bf16 %v4852_v59  ;;  %v4853_v63 = vunpack.i.l.bf16 %v4852_v59 }
 0x142   :  { %v725_v1 = vpack.c.bf16 %v4854_v62, %v4854_v62  ;;  %v724_v2 = vpack.c.bf16 %v4853_v63, %v4853_v63  ;;  %v4739_v63 = vunpack.i.h.bf16 %v5804_v20 }
 0x143   :  { %v852_v27 = vpop.f32.mrf.mxu2 }
 0x144   :  { %v1105_v3 = vunpack.c.l.b16 %v725_v1  ;;  %v1104_v61 = vunpack.c.l.b16 %v724_v2  ;;  %v5908_v49 = vadd.f32 %v5881_v7, %v852_v27  ;;  %v4738_v1 = vunpack.i.l.bf16 %v5804_v20 }
 0x145   :  { %1804 = vmax.xlane.f32.xlu2 %v1803_v6  ;;  %v5931_v20 = vadd.f32 %v5881_v7, %v5861_v52 }
 0x146   :  { %v4807_v8 = vpop.permute.xlu1 %4806  ;;  %v4857_v9 = vpop.permute.xlu2 %4856  ;;  %v1106_v10 = vpack.c.b16 %v1105_v3, %v1104_v61  ;;  %v1812_v50 = vsel %vm1799_vm2, %v5908_v49, -inf  ;;  %v751_v3 = vpack.c.bf16 %v4739_v63, %v4739_v63  ;;  %v750_v61 = vpack.c.bf16 %v4738_v1, %v4738_v1 }
 0x147   :  { %v4809_v11 = vunpack.i.h.bf16 %v4807_v8  ;;  %v4808_v12 = vunpack.i.l.bf16 %v4807_v8  ;;  %v5883_v13 = vpop.permute.xlu0 %4866  ;;  %v4859_v15 = vunpack.i.h.bf16 %v4857_v9  ;;  %v4858_v22 = vunpack.i.l.bf16 %v4857_v9 }
 0x148   :  { %v1111_v26 = vsel %vm776_vm1, %v1106_v10, 0 }
 0x149   :  { %v723_v30 = vpack.c.bf16 %v4809_v11, %v4809_v11  ;;  %v722_v32 = vpack.c.bf16 %v4808_v12, %v4808_v12  ;;  %v501_v33 = vpack.c.bf16 %v4859_v15, %v4859_v15  ;;  %v500_v36 = vpack.c.bf16 %v4858_v22, %v4858_v22  ;;  %1120 = vmatpush.bf16.xpose.msrb.mxu3 %v1111_v26 }
 0x14a   :  { %v1495_v12 = vunpack.c.l.b16 %v751_v3  ;;  %v1494_v15 = vunpack.c.l.b16 %v750_v61 }
 0x14b   :  { %v1075_v39 = vunpack.c.l.b16 %v723_v30  ;;  %v1074_v14 = vunpack.c.l.b16 %v722_v32  ;;  %v1100_v41 = vunpack.c.l.b16 %v501_v33  ;;  %v1099_v42 = vunpack.c.l.b16 %v500_v36  ;;  %v5921_v2 = vpop.f32.mrf.mxu2 }
 0x14d   :  { %v5894_v34 = vpack.c.b16 %v1100_v41, %v1099_v42  ;;  %1810 = vmax.xlane.f32.xlu2 %v1809_v46  ;;  %v1076_v19 = vpack.c.b16 %v1075_v39, %v1074_v14  ;;  %v1496_v39 = vpack.c.b16 %v1495_v12, %v1494_v15  ;;  %v1806_v41 = vsel %vm1799_vm2, %v5931_v20, -inf }
 0x14e   :  { %v5898_v38 = vpop.permute.xlu1 %4816  ;;  %v5900_v47 = vpop.permute.xlu2 %4861  ;;  %1801 = vmax.xlane.f32.xlu1 %v1800_v35 }
 0x14f   :  { %7800 = vst [vmem:[#allocation5_spill] sm:$0xff] %v5894_v34  ;;  %v5902_v18 = vpop.permute.xlu0 %4876  ;;  %v1081_v16 = vsel %vm776_vm1, %v1076_v19, 0  ;;  %v1501_v35 = vsel %vm776_vm1, %v1496_v39, 0  ;;  %v4819_v15 = vunpack.i.h.bf16 %v5898_v38 }
 0x150   :  { %4582 = vmatmul.msk.bf16.vlgmr.msrb.gmra.mxu3 %vm776_vm1, %v5894_v34  ;;  %1090 = vmatpush.bf16.xpose.msrb.mxu2 %v1081_v16 }
 0x153   :  { %v5923_v6 = vpop.f32.mrf.mxu3 }
 0x156   :  { %v5912_v54 = vpop.permute.xlu1 %4826  ;;  %v5914_v59 = vpop.permute.xlu2 %4871  ;;  %1813 = vmax.xlane.f32.xlu1 %v1812_v50 }
 0x157   :  { %v5916_v62 = vpop.permute.xlu0 %4881  ;;  %4581 = vmatmul.msk.bf16.vlgmr.msrb.gmra.mxu2 %vm776_vm1, %v1071_v53 }
 0x15b   :  { %v884_v46 = vpop.f32.mrf.mxu3 }
 0x15c   :  { %v5945_v19 = vadd.f32 %v5866_v56, %v884_v46 }
 0x15e   :  { %v5925_v55 = vpop.permute.xlu1 %4831  ;;  %v4907_v8 = vpop.permute.xlu2 %4906  ;;  %7802 = vst [vmem:[#allocation7_spill] sm:$0xff] %v5945_v19  ;;  %v1821_v63 = vsel %vm1799_vm2, %v5945_v19, -inf }
 0x15f   :  { %v5927_v9 = vpop.permute.xlu0 %4886  ;;  %v4909_v10 = vunpack.i.h.bf16 %v4907_v8  ;;  %v4908_v11 = vunpack.i.l.bf16 %v4907_v8 }
 0x161   :  { %v743_v53 = vpack.c.bf16 %v4909_v10, %v4909_v10  ;;  %v742_v22 = vpack.c.bf16 %v4908_v11, %v4908_v11 }
 0x163   :  { %v1375_v26 = vunpack.c.l.b16 %v743_v53  ;;  %v1374_v30 = vunpack.c.l.b16 %v742_v22  ;;  %v912_v32 = vpop.f32.mrf.mxu2  ;;  %v4818_v53 = vunpack.i.l.bf16 %v5898_v38 }
 0x164   :  { %v5934_v33 = vadd.f32 %v5881_v7, %v912_v32 }
 0x165   :  { %v1376_v36 = vpack.c.b16 %v1375_v26, %v1374_v30 }
 0x166   :  { %7801 = vst [vmem:[#allocation6_spill] sm:$0xff] %v5934_v33  ;;  %v4837_v14 = vpop.permute.xlu1 %4836  ;;  %v1824_v42 = vsel %vm1799_vm2, %v5934_v33, -inf }
 0x167   :  { %v5940_v27 = vpop.permute.xlu0 %4891  ;;  %1807 = vmax.xlane.f32.xlu0 %v1806_v41  ;;  %1825 = vmax.xlane.f32.xlu1 %v1824_v42  ;;  %v1381_v52 = vsel %vm776_vm1, %v1376_v36, 0  ;;  %v4839_v3 = vunpack.i.h.bf16 %v4837_v14  ;;  %v4838_v61 = vunpack.i.l.bf16 %v4837_v14 }
 0x168   :  { %1390 = vmatpush.bf16.xpose.msra.mxu0 %v1381_v52  ;;  %v739_v52 = vpack.c.bf16 %v4819_v15, %v4819_v15 }
 0x169   :  { %v731_v10 = vpack.c.bf16 %v4839_v3, %v4839_v3  ;;  %v730_v11 = vpack.c.bf16 %v4838_v61, %v4838_v61  ;;  %v738_v3 = vpack.c.bf16 %v4818_v53, %v4818_v53 }
 0x16b   :  { %v5947_v16 = vpop.f32.mrf.mxu2  ;;  %v1195_v14 = vunpack.c.l.b16 %v731_v10  ;;  %v1194_v41 = vunpack.c.l.b16 %v730_v11  ;;  %v1315_v11 = vunpack.c.l.b16 %v739_v52  ;;  %v1314_v19 = vunpack.c.l.b16 %v738_v3 }
 0x16e   :  { %v5949_v50 = vpop.permute.xlu1 %4846 }
 0x16f   :  { %v5953_v1 = vpop.permute.xlu0 %2648  ;;  %1822 = vmax.xlane.f32.xlu0 %v1821_v63 }
 0x170   :  { %1510 = vmatpush.bf16.xpose.msrb.mxu0 %v1501_v35 }
 0x173   :  { %v942_v8 = vpop.f32.mrf.mxu3  ;;  %v972_v30 = vpop.f32.mrf.mxu2 }
 0x174   :  { %v5956_v12 = vadd.f32 %v5881_v7, %v942_v8  ;;  %v5963_v61 = vadd.f32 %v5881_v7, %v972_v30  ;;  %v4884_v30 = vunpack.i.h.bf16 %v5916_v62 }
 0x176   :  { %7803 = vst [vmem:[#allocation8_spill] sm:$0xff] %v5956_v12  ;;  %v4897_v22 = vpop.permute.xlu1 %4896  ;;  %v1830_v26 = vsel %vm1799_vm2, %v5956_v12, -inf  ;;  %v1836_v53 = vsel %vm1799_vm2, %v5963_v61, -inf }
 0x177   :  { %v4899_v32 = vunpack.i.h.bf16 %v4897_v22  ;;  %v4898_v36 = vunpack.i.l.bf16 %v4897_v22  ;;  %v4902_v39 = vpop.permute.xlu0 %4901  ;;  %1831 = vmax.xlane.f32.xlu1 %v1830_v26  ;;  %7804 = vst [vmem:[#allocation9_spill] sm:$0xff] %v5963_v61  ;;  %v1196_v26 = vpack.c.b16 %v1195_v14, %v1194_v41  ;;  %v4744_v41 = vunpack.i.h.bf16 %v5791_v45 }
 0x178   :  { %v4904_v42 = vunpack.i.h.bf16 %v4902_v39  ;;  %v4903_v46 = vunpack.i.l.bf16 %v4902_v39 }
 0x179   :  { %v727_v35 = vpack.c.bf16 %v4899_v32, %v4899_v32  ;;  %v726_v63 = vpack.c.bf16 %v4898_v36, %v4898_v36 }
 0x17a   :  { %v503_v38 = vpack.c.bf16 %v4904_v42, %v4904_v42  ;;  %v502_v8 = vpack.c.bf16 %v4903_v46, %v4903_v46 }
 0x17b   :  { %v1135_v29 = vunpack.c.l.b16 %v727_v35  ;;  %v1134_v34 = vunpack.c.l.b16 %v726_v63  ;;  %v5965_v44 = vpop.f32.mrf.mxu3  ;;  %v4883_v35 = vunpack.i.l.bf16 %v5916_v62 }
 0x17c   :  { %v1130_v22 = vunpack.c.l.b16 %v503_v38  ;;  %v1129_v33 = vunpack.c.l.b16 %v502_v8  ;;  %v733_v38 = vpack.c.bf16 %v4884_v30, %v4884_v30  ;;  %v4843_v30 = vunpack.i.l.bf16 %v5857_v51 }
 0x17d   :  { %v1136_v10 = vpack.c.b16 %v1135_v29, %v1134_v34  ;;  %v1201_v29 = vsel %vm776_vm1, %v1196_v26, 0  ;;  %v732_v62 = vpack.c.bf16 %v4883_v35, %v4883_v35  ;;  %v4784_v26 = vunpack.i.h.bf16 %v5829_v37  ;;  %v5990_v35 = vld [vmem:[%s7749_s2 + $0x20] sm:$0xff] }
 0x17e   :  { %v4917_v39 = vpop.permute.xlu1 %4916  ;;  %v1131_v15 = vpack.c.b16 %v1130_v22, %v1129_v33 }
 0x17f   :  { %v4919_v32 = vunpack.i.h.bf16 %v4917_v39  ;;  %v4918_v36 = vunpack.i.l.bf16 %v4917_v39  ;;  %v4912_v42 = vpop.permute.xlu0 %4911  ;;  %1837 = vmax.xlane.f32.xlu1 %v1836_v53  ;;  %v1141_v46 = vsel %vm776_vm1, %v1136_v10, 0  ;;  %v1316_v39 = vpack.c.b16 %v1315_v11, %v1314_v19 }
 0x180   :  { %v4914_v63 = vunpack.i.h.bf16 %v4912_v42  ;;  %v4913_v14 = vunpack.i.l.bf16 %v4912_v42  ;;  %2873 = vrot.lane.b32.xlu2 %v1131_v15, %s5427_s27  ;;  %1150 = vmatpush.bf16.xpose.msra.mxu2 %v1141_v46  ;;  %v1272_v46 = vpop.f32.mrf.mxu0 }
 0x181   :  { %v759_v34 = vpack.c.bf16 %v4919_v32, %v4919_v32  ;;  %v758_v33 = vpack.c.bf16 %v4918_v36, %v4918_v36  ;;  %v4783_v32 = vunpack.i.l.bf16 %v5829_v37  ;;  %v4844_v36 = vunpack.i.h.bf16 %v5857_v51 }
 0x182   :  { %v519_v52 = vpack.c.bf16 %v4914_v63, %v4914_v63  ;;  %v518_v3 = vpack.c.bf16 %v4913_v14, %v4913_v14  ;;  %v4864_v14 = vunpack.i.h.bf16 %v5900_v47  ;;  %v1321_v51 = vsel %vm776_vm1, %v1316_v39, 0 }
 0x183   :  { %v1615_v8 = vunpack.c.l.b16 %v759_v34  ;;  %v1614_v22 = vunpack.c.l.b16 %v758_v33  ;;  %v1002_v10 = vpop.f32.mrf.mxu3  ;;  %v753_v39 = vpack.c.bf16 %v4784_v26, %v4784_v26 }
 0x184   :  { %v1370_v53 = vunpack.c.l.b16 %v519_v52  ;;  %v1369_v42 = vunpack.c.l.b16 %v518_v3  ;;  %v5976_v61 = vadd.f32 %v5881_v7, %v1002_v10  ;;  %v4743_v3 = vunpack.i.l.bf16 %v5791_v45 }
 0x185   :  { %v1616_v63 = vpack.c.b16 %v1615_v8, %v1614_v22  ;;  %v4863_v8 = vunpack.i.l.bf16 %v5900_v47  ;;  %v1225_v22 = vunpack.c.l.b16 %v733_v38  ;;  %v1224_v10 = vunpack.c.l.b16 %v732_v62 }
 0x186   :  { %7805 = vst [vmem:[#allocation10_spill] sm:$0xff] %v5976_v61  ;;  %v4927_v19 = vpop.permute.xlu1 %4926  ;;  %v1842_v11 = vsel %vm1799_vm2, %v5976_v61, -inf  ;;  %v6004_v45 = vadd.f32 %v5990_v35, %v1272_v46  ;;  %v746_v47 = vpack.c.bf16 %v4843_v30, %v4843_v30  ;;  %v741_v38 = vpack.c.bf16 %v4864_v14, %v4864_v14 }
 0x187   :  { %v4929_v37 = vunpack.i.h.bf16 %v4927_v19  ;;  %v4928_v34 = vunpack.i.l.bf16 %v4927_v19  ;;  %v5992_v33 = vpop.permute.xlu0 %2673  ;;  %1843 = vmax.xlane.f32.xlu0 %v1842_v11  ;;  %4583 = vmatmul.msk.bf16.vlgmr.msra.gmra.mxu2 %vm776_vm1, %v1131_v15  ;;  %v1621_v52 = vsel %vm776_vm1, %v1616_v63, 0  ;;  %v752_v11 = vpack.c.bf16 %v4783_v32, %v4783_v32 }
 0x188   :  { %1210 = vmatpush.bf16.xpose.msrb.mxu2 %v1201_v29  ;;  %v5983_v29 = vpack.c.b16 %v1370_v53, %v1369_v42  ;;  %v4749_v53 = vunpack.i.h.bf16 %v5823_v0  ;;  %v4748_v42 = vunpack.i.l.bf16 %v5823_v0  ;;  %v747_v63 = vpack.c.bf16 %v4844_v36, %v4844_v36  ;;  %7807 = vst [vmem:[#allocation12_spill] sm:$0xff] %v6004_v45 }
 0x189   :  { %v729_v19 = vpack.c.bf16 %v4929_v37, %v4929_v37  ;;  %v728_v15 = vpack.c.bf16 %v4928_v34, %v4928_v34  ;;  %v1226_v0 = vpack.c.b16 %v1225_v22, %v1224_v10  ;;  %v526_v37 = vpack.c.bf16 %v4743_v3, %v4743_v3 }
 0x18a   :  { %7806 = vst [vmem:[#allocation11_spill] sm:$0xff] %v5983_v29  ;;  %4591 = vmatmul.msk.bf16.vlgmr.msra.gmra.mxu0 %vm776_vm1, %v5983_v29  ;;  %v527_v29 = vpack.c.bf16 %v4744_v41, %v4744_v41  ;;  %v507_v34 = vpack.c.bf16 %v4749_v53, %v4749_v53  ;;  %v1525_v32 = vunpack.c.l.b16 %v753_v39  ;;  %v1524_v36 = vunpack.c.l.b16 %v752_v11 }
 0x18b   :  { %1630 = vmatpush.bf16.xpose.msra.mxu0 %v1621_v52  ;;  %v1165_v62 = vunpack.c.l.b16 %v729_v19  ;;  %v1164_v61 = vunpack.c.l.b16 %v728_v15  ;;  %v1004_v12 = vpop.f32.mrf.mxu3  ;;  %v506_v52 = vpack.c.bf16 %v4748_v42, %v4748_v42  ;;  %v1896_v46 = vsel %vm1799_vm2, %v6004_v45, -inf }
 0x18c   :  { %v6007_v57 = vadd.f32 %v5866_v56, %v1004_v12  ;;  %v1435_v14 = vunpack.c.l.b16 %v747_v63  ;;  %v1434_v19 = vunpack.c.l.b16 %v746_v47  ;;  %v1345_v41 = vunpack.c.l.b16 %v741_v38  ;;  %v6016_v12 = vld [vmem:[%s7749_s2 + $0x28] sm:$0xff] }
 0x18d   :  { %v1166_v26 = vpack.c.b16 %v1165_v62, %v1164_v61  ;;  %v1231_v42 = vsel %vm776_vm1, %v1226_v0, 0  ;;  %v1490_v15 = vunpack.c.l.b16 %v527_v29  ;;  %v1489_v39 = vunpack.c.l.b16 %v526_v37 }
 0x18e   :  { %7808 = vst [vmem:[#allocation13_spill] sm:$0xff] %v6007_v57  ;;  %v1845_v30 = vsel %vm1799_vm2, %v6007_v57, -inf  ;;  %v1190_v11 = vunpack.c.l.b16 %v507_v34  ;;  %v1189_v63 = vunpack.c.l.b16 %v506_v52  ;;  %v4794_v29 = vunpack.i.h.bf16 %v5843_v43 }
 0x18f   :  { %v4932_v3 = vpop.permute.xlu0 %4931  ;;  %1897 = vmax.xlane.f32.xlu0 %v1896_v46  ;;  %1846 = vmax.xlane.f32.xlu1 %v1845_v30  ;;  %v1171_v61 = vsel %vm776_vm1, %v1166_v26, 0  ;;  %v1526_v46 = vpack.c.b16 %v1525_v32, %v1524_v36  ;;  %v6023_v30 = vpop.f32.mrf.mxu2  ;;  %v1436_v26 = vpack.c.b16 %v1435_v14, %v1434_v19  ;;  %v4829_v0 = vunpack.i.h.bf16 %v5912_v54 }
 0x190   :  { %1330 = vmatpush.bf16.xpose.msra.mxu2 %v1321_v51  ;;  %v740_v51 = vpack.c.bf16 %v4863_v8, %v4863_v8  ;;  %v1274_v8 = vpop.f32.mrf.mxu0  ;;  %v4934_v10 = vunpack.i.h.bf16 %v4932_v3  ;;  %v4933_v53 = vunpack.i.l.bf16 %v4932_v3  ;;  %1180 = vmatpush.bf16.xpose.msra.mxu3 %v1171_v61  ;;  %v6025_v61 = vpack.c.b16 %v1190_v11, %v1189_v63 }
 0x191   :  { %v6021_v47 = vadd.f32 %v6016_v12, %v1274_v8  ;;  %v6029_v37 = vpack.c.b16 %v1490_v15, %v1489_v39  ;;  %v6036_v32 = vsel %vm776_vm1, %v1526_v46, 0  ;;  %v4828_v36 = vunpack.i.l.bf16 %v5912_v54 }
 0x192   :  { %v1344_v22 = vunpack.c.l.b16 %v740_v51  ;;  %v505_v38 = vpack.c.bf16 %v4934_v10, %v4934_v10  ;;  %v504_v62 = vpack.c.bf16 %v4933_v53, %v4933_v53  ;;  %7809 = vst [vmem:[#allocation14_spill] sm:$0xff] %v6025_v61  ;;  %v4889_v14 = vunpack.i.h.bf16 %v5927_v9  ;;  %v4922_v10 = vpop.permute.xlu2 %4921 }
 0x193   :  { %7810 = vst [vmem:[#allocation15_spill] sm:$0xff] %v6029_v37  ;;  %v1899_v52 = vsel %vm1799_vm2, %v6021_v47, -inf  ;;  %v4888_v19 = vunpack.i.l.bf16 %v5927_v9  ;;  %v509_v9 = vpack.c.bf16 %v4794_v29, %v4794_v29  ;;  %v4824_v15 = vunpack.i.h.bf16 %v5855_v48 }
 0x194   :  { %v1160_v51 = vunpack.c.l.b16 %v505_v38  ;;  %v1159_v45 = vunpack.c.l.b16 %v504_v62  ;;  %v1346_v3 = vpack.c.b16 %v1345_v41, %v1344_v22  ;;  %v4942_v41 = vpop.permute.xlu1 %4941  ;;  %v4793_v22 = vunpack.i.l.bf16 %v5843_v43  ;;  %v6055_v43 = vld [vmem:[%s7749_s2 + $0x10] sm:$0xff] }
 0x195   :  { %v4823_v39 = vunpack.i.l.bf16 %v5855_v48  ;;  %v755_v11 = vpack.c.bf16 %v4829_v0, %v4829_v0  ;;  %v4944_v63 = vunpack.i.h.bf16 %v4942_v41  ;;  %v4943_v38 = vunpack.i.l.bf16 %v4942_v41 }
 0x196   :  { %v6031_v34 = vpack.c.b16 %v1160_v51, %v1159_v45  ;;  %v1441_v45 = vsel %vm776_vm1, %v1436_v26, 0  ;;  %v1351_v54 = vsel %vm776_vm1, %v1346_v3, 0  ;;  %v754_v26 = vpack.c.bf16 %v4828_v36, %v4828_v36 }
 0x197   :  { %v4937_v8 = vpop.permute.xlu0 %4936  ;;  %4585 = vmatmul.msk.bf16.vlgmr.msrb.gmra.mxu2 %vm776_vm1, %v6025_v61  ;;  %1900 = vmax.xlane.f32.xlu1 %v1899_v52  ;;  %v749_v51 = vpack.c.bf16 %v4889_v14, %v4889_v14  ;;  %v748_v3 = vpack.c.bf16 %v4888_v19, %v4888_v19  ;;  %v4924_v48 = vunpack.i.h.bf16 %v4922_v10  ;;  %v4923_v0 = vunpack.i.l.bf16 %v4922_v10 }
 0x198   :  { %1240 = vmatpush.bf16.xpose.msrb.mxu3 %v1231_v42  ;;  %7811 = vst [vmem:[#allocation16_spill] sm:$0xff] %v6031_v34  ;;  %v4939_v53 = vunpack.i.h.bf16 %v4937_v8  ;;  %v4938_v42 = vunpack.i.l.bf16 %v4937_v8  ;;  %1450 = vmatpush.bf16.xpose.msrb.mxu2 %v1441_v45  ;;  %v514_v61 = vpack.c.bf16 %v4823_v39, %v4823_v39  ;;  %v521_v41 = vpack.c.bf16 %v4944_v63, %v4944_v63 }
 0x199   :  { %4584 = vmatmul.msk.bf16.vlgmr.msra.gmra.mxu3 %vm776_vm1, %v6031_v34  ;;  %v1555_v34 = vunpack.c.l.b16 %v755_v11  ;;  %v1554_v14 = vunpack.c.l.b16 %v754_v26  ;;  %v1465_v19 = vunpack.c.l.b16 %v749_v51  ;;  %v535_v57 = vpack.c.bf16 %v4924_v48, %v4924_v48 }
 0x19a   :  { %4595 = vmatmul.msk.bf16.vlgmr.msrb.gmra.mxu0 %vm776_vm1, %v6029_v37  ;;  %v745_v62 = vpack.c.bf16 %v4939_v53, %v4939_v53  ;;  %v744_v46 = vpack.c.bf16 %v4938_v42, %v4938_v42  ;;  %v515_v37 = vpack.c.bf16 %v4824_v15, %v4824_v15  ;;  %v520_v53 = vpack.c.bf16 %v4943_v38, %v4943_v38  ;;  %v6067_v38 = vld [vmem:[%s7749_s2 + $0x18] sm:$0xff] }
 0x19b   :  { %2586 = vmatpush.bf16.msrb.mxu0 %v5806_v21  ;;  %v1032_v29 = vpop.f32.mrf.mxu2  ;;  %v1464_v42 = vunpack.c.l.b16 %v748_v3  ;;  %v1220_v15 = vunpack.c.l.b16 %v509_v9  ;;  %v1309_v63 = vunpack.c.l.b16 %v514_v61  ;;  %v1400_v26 = vunpack.c.l.b16 %v521_v41 }
 0x19c   :  { %v1405_v52 = vunpack.c.l.b16 %v745_v62  ;;  %v1404_v8 = vunpack.c.l.b16 %v744_v46  ;;  %v6059_v45 = vadd.f32 %v6055_v43, %v1032_v29  ;;  %v534_v62 = vpack.c.bf16 %v4923_v0, %v4923_v0 }
 0x19d   :  { %v1310_v11 = vunpack.c.l.b16 %v515_v37  ;;  %v1399_v51 = vunpack.c.l.b16 %v520_v53  ;;  %v1610_v0 = vunpack.c.l.b16 %v535_v57  ;;  %v6079_v41 = vadd.f32 %v5866_v56, %v5921_v2 }
 0x19e   :  { %v1848_v21 = vsel %vm1799_vm2, %v6059_v45, -inf  ;;  %v1406_v36 = vpack.c.b16 %v1405_v52, %v1404_v8  ;;  %v1466_v8 = vpack.c.b16 %v1465_v19, %v1464_v42  ;;  %v1609_v9 = vunpack.c.l.b16 %v534_v62 }
 0x19f   :  { %v4947_v10 = vpop.permute.xlu0 %4946  ;;  %1849 = vmax.xlane.f32.xlu0 %v1848_v21  ;;  %v1556_v21 = vpack.c.b16 %v1555_v34, %v1554_v14  ;;  %v6081_v53 = vpack.c.b16 %v1400_v26, %v1399_v51  ;;  %v4873_v14 = vunpack.i.l.bf16 %v5914_v59  ;;  %v4849_v62 = vunpack.i.h.bf16 %v5949_v50 }
 0x1a0   :  { %1360 = vmatpush.bf16.xpose.msra.mxu3 %v1351_v54  ;;  %v508_v54 = vpack.c.bf16 %v4793_v22, %v4793_v22  ;;  %v4949_v46 = vunpack.i.h.bf16 %v4947_v10  ;;  %v4948_v29 = vunpack.i.l.bf16 %v4947_v10  ;;  %v1411_v22 = vsel %vm776_vm1, %v1406_v36, 0 }
 0x1a1   :  { %1420 = vmatpush.bf16.xpose.msra.mxu1 %v1411_v22  ;;  %v6075_v10 = vpack.c.b16 %v1310_v11, %v1309_v63  ;;  %7814 = vst [vmem:[#allocation19_spill] sm:$0xff] %v6081_v53  ;;  %v1471_v19 = vsel %vm776_vm1, %v1466_v8, 0  ;;  %v1561_v42 = vsel %vm776_vm1, %v1556_v21, 0  ;;  %v6091_v2 = vpack.c.b16 %v1610_v0, %v1609_v9 }
 0x1a2   :  { %v1219_v39 = vunpack.c.l.b16 %v508_v54  ;;  %v761_v3 = vpack.c.bf16 %v4949_v46, %v4949_v46  ;;  %v760_v48 = vpack.c.bf16 %v4948_v29, %v4948_v29  ;;  %v4848_v46 = vunpack.i.l.bf16 %v5949_v50 }
 0x1a3   :  { %v1034_v52 = vpop.f32.mrf.mxu2  ;;  %7813 = vst [vmem:[#allocation18_spill] sm:$0xff] %v6075_v10  ;;  %v4754_v29 = vunpack.i.h.bf16 %v5811_v28  ;;  %v4753_v22 = vunpack.i.l.bf16 %v5811_v28  ;;  %v4869_v50 = vunpack.i.h.bf16 %v5883_v13  ;;  %v4868_v11 = vunpack.i.l.bf16 %v5883_v13 }
 0x1a4   :  { %v1645_v54 = vunpack.c.l.b16 %v761_v3  ;;  %v1644_v37 = vunpack.c.l.b16 %v760_v48  ;;  %v6071_v61 = vadd.f32 %v6067_v38, %v1034_v52  ;;  %v6073_v36 = vpack.c.b16 %v1220_v15, %v1219_v39  ;;  %7815 = vst [vmem:[#allocation20_spill] sm:$0xff] %v6091_v2  ;;  %v6111_v3 = vpop.permute.xlu2 %4951 }
 0x1a5   :  { %v4789_v15 = vunpack.i.h.bf16 %v5836_v17  ;;  %v4788_v39 = vunpack.i.l.bf16 %v5836_v17  ;;  %v1815_v63 = vsel %vm1799_vm2, %v6079_v41, -inf  ;;  %v756_v51 = vpack.c.bf16 %v4873_v14, %v4873_v14 }
 0x1a6   :  { %7812 = vst [vmem:[#allocation17_spill] sm:$0xff] %v6073_v36  ;;  %v1851_v57 = vsel %vm1799_vm2, %v6071_v61, -inf  ;;  %v1646_v34 = vpack.c.b16 %v1645_v54, %v1644_v37  ;;  %v763_v28 = vpack.c.bf16 %v4849_v62, %v4849_v62  ;;  %v762_v17 = vpack.c.bf16 %v4848_v46, %v4848_v46 }
 0x1a7   :  { %1852 = vmax.xlane.f32.xlu1 %v1851_v57  ;;  %4589 = vmatmul.msk.bf16.vlgmr.msra.gmra.mxu2 %vm776_vm1, %v6075_v10  ;;  %v523_v48 = vpack.c.bf16 %v4754_v29, %v4754_v29  ;;  %v522_v0 = vpack.c.bf16 %v4753_v22, %v4753_v22  ;;  %v529_v52 = vpack.c.bf16 %v4789_v15, %v4789_v15  ;;  %v1584_v37 = vunpack.c.l.b16 %v756_v51 }
 0x1a8   :  { %4592 = vmatmul.msk.bf16.vlgmr.msra.gmra.mxu1 %vm776_vm1, %v6081_v53  ;;  %1570 = vmatpush.bf16.xpose.msra.mxu2 %v1561_v42  ;;  %v528_v13 = vpack.c.bf16 %v4788_v39, %v4788_v39  ;;  %v517_v8 = vpack.c.bf16 %v4869_v50, %v4869_v50  ;;  %v516_v21 = vpack.c.bf16 %v4868_v11, %v4868_v11  ;;  %v1675_v57 = vunpack.c.l.b16 %v763_v28 }
 0x1a9   :  { %1540 = vmatpush.bf16.xpose.msrb.mxu1 %v6036_v32  ;;  %v4874_v32 = vunpack.i.h.bf16 %v5914_v59  ;;  %4586 = vmatmul.msk.bf16.vlgmr.msrb.gmra.mxu3 %vm776_vm1, %v6073_v36  ;;  %v1651_v59 = vsel %vm776_vm1, %v1646_v34, 0  ;;  %v6115_v9 = vadd.f32 %v5881_v7, %v5923_v6  ;;  %v1674_v34 = vunpack.c.l.b16 %v762_v17 }
 0x1aa   :  { %1480 = vmatpush.bf16.xpose.msrb.mxu3 %v1471_v19  ;;  %4599 = vmatmul.msk.bf16.vlgmr.msra.gmra.mxu0 %vm776_vm1, %v6091_v2  ;;  %v1520_v14 = vunpack.c.l.b16 %v529_v52  ;;  %v1519_v19 = vunpack.c.l.b16 %v528_v13  ;;  %v1340_v42 = vunpack.c.l.b16 %v517_v8  ;;  %v1339_v62 = vunpack.c.l.b16 %v516_v21 }
 0x1ab   :  { %v757_v26 = vpack.c.bf16 %v4874_v32, %v4874_v32  ;;  %2686 = vmatpush.bf16.msra.mxu0 %v5992_v33  ;;  %1816 = vmax.xlane.f32.xlu2 %v1815_v63  ;;  %v1430_v33 = vunpack.c.l.b16 %v523_v48  ;;  %v1429_v32 = vunpack.c.l.b16 %v522_v0  ;;  %v1818_v46 = vsel %vm1799_vm2, %v6115_v9, -inf }
 0x1ac   :  { %v1676_v7 = vpack.c.b16 %v1675_v57, %v1674_v34  ;;  %v6124_v15 = vpack.c.b16 %v1520_v14, %v1519_v19  ;;  %v6126_v50 = vpack.c.b16 %v1340_v42, %v1339_v62  ;;  %v6130_v11 = vadd.f32 %v5866_v56, %v5947_v16  ;;  %v6132_v63 = vpop.permute.xlu2 %2798 }
 0x1ad   :  { %v1585_v54 = vunpack.c.l.b16 %v757_v26  ;;  %v6122_v6 = vpack.c.b16 %v1430_v33, %v1429_v32  ;;  %v4799_v28 = vunpack.i.h.bf16 %v5838_v24  ;;  %v4894_v48 = vunpack.i.h.bf16 %v5940_v27 }
 0x1ae   :  { %7817 = vst [vmem:[#allocation22_spill] sm:$0xff] %v6124_v15  ;;  %v4893_v16 = vunpack.i.l.bf16 %v5940_v27  ;;  %v1681_v0 = vsel %vm776_vm1, %v1676_v7, 0  ;;  %v4798_v13 = vunpack.i.l.bf16 %v5838_v24  ;;  %v4834_v8 = vunpack.i.h.bf16 %v5925_v55 }
 0x1af   :  { %v1586_v29 = vpack.c.b16 %v1585_v54, %v1584_v37  ;;  %7816 = vst [vmem:[#allocation21_spill] sm:$0xff] %v6122_v6  ;;  %v4833_v21 = vunpack.i.l.bf16 %v5925_v55  ;;  %v6155_v54 = vpop.permute.xlu1 %2773  ;;  %v4954_v27 = vunpack.i.h.bf16 %v6111_v3  ;;  %v4953_v37 = vunpack.i.l.bf16 %v6111_v3 }
 0x1b0   :  { %7818 = vst [vmem:[#allocation23_spill] sm:$0xff] %v6126_v50  ;;  %v1827_v57 = vsel %vm1799_vm2, %v6130_v11, -inf  ;;  %v525_v24 = vpack.c.bf16 %v4799_v28, %v4799_v28  ;;  %v765_v34 = vpack.c.bf16 %v4894_v48, %v4894_v48  ;;  %v764_v33 = vpack.c.bf16 %v4893_v16, %v4893_v16 }
 0x1b1   :  { %1660 = vmatpush.bf16.xpose.msra.mxu1 %v1651_v59  ;;  %v1591_v17 = vsel %vm776_vm1, %v1586_v29, 0  ;;  %v524_v32 = vpack.c.bf16 %v4798_v13, %v4798_v13  ;;  %v531_v55 = vpack.c.bf16 %v4834_v8, %v4834_v8  ;;  %v530_v14 = vpack.c.bf16 %v4833_v21, %v4833_v21 }
 0x1b2   :  { %v1062_v59 = vpop.f32.mrf.mxu3  ;;  %v537_v42 = vpack.c.bf16 %v4954_v27, %v4954_v27  ;;  %v536_v62 = vpack.c.bf16 %v4953_v37, %v4953_v37  ;;  %v1705_v29 = vunpack.c.l.b16 %v765_v34  ;;  %v1704_v7 = vunpack.c.l.b16 %v764_v33  ;;  %v2699_v34 = vpop.permute.xlu0 %2698 }
 0x1b3   :  { %1819 = vmax.xlane.f32.xlu2 %v1818_v46  ;;  %v6120_v22 = vadd.f32 %v6055_v43, %v1062_v59  ;;  %v6164_v46 = vadd.f32 %v5866_v56, %v5965_v44  ;;  %v1460_v59 = vunpack.c.l.b16 %v525_v24  ;;  %v1550_v28 = vunpack.c.l.b16 %v531_v55 }
 0x1b4   :  { %v1302_v39 = vpop.f32.mrf.mxu1  ;;  %v1639_v44 = vunpack.c.l.b16 %v536_v62  ;;  %v1706_v21 = vpack.c.b16 %v1705_v29, %v1704_v7  ;;  %v4759_v33 = vunpack.i.h.bf16 %v5831_v40  ;;  %v4878_v55 = vunpack.i.l.bf16 %v5902_v18 }
 0x1b5   :  { %v6135_v26 = vadd.f32 %v5990_v35, %v1302_v39  ;;  %v1854_v51 = vsel %vm1799_vm2, %v6120_v22, -inf }
 0x1b6   :  { %1855 = vmax.xlane.f32.xlu0 %v1854_v51  ;;  %v1459_v51 = vunpack.c.l.b16 %v524_v32  ;;  %v4758_v32 = vunpack.i.l.bf16 %v5831_v40  ;;  %v539_v62 = vpack.c.bf16 %v4759_v33, %v4759_v33 }
 0x1b7   :  { %4593 = vmatmul.msk.bf16.vlgmr.msrb.gmra.mxu2 %vm776_vm1, %v6122_v6  ;;  %v1902_v52 = vsel %vm1799_vm2, %v6135_v26, -inf }
 0x1b8   :  { %4596 = vmatmul.msk.bf16.vlgmr.msrb.gmra.mxu1 %vm776_vm1, %v6124_v15  ;;  %1690 = vmatpush.bf16.xpose.msrb.mxu2 %v1681_v0  ;;  %v1805_v3 = vpop.xlane.xlu2 %1804  ;;  %v1640_v0 = vunpack.c.l.b16 %v537_v42  ;;  %v538_v40 = vpack.c.bf16 %v4758_v32, %v4758_v32 }
 0x1b9   :  { %4590 = vmatmul.msk.bf16.vlgmr.msra.gmra.mxu3 %vm776_vm1, %v6126_v50  ;;  %2611 = vmatpush.bf16.msrb.mxu1 %v5853_v31  ;;  %v1993_v48 = vsub.f32 %v5874_v60, %v1805_v3  ;;  %v6183_v60 = vadd.f32 %v5866_v56, %v6023_v30  ;;  %v4879_v30 = vunpack.i.h.bf16 %v5902_v18 }
 0x1ba   :  { %1600 = vmatpush.bf16.xpose.msra.mxu3 %v1591_v17  ;;  %1903 = vmax.xlane.f32.xlu1 %v1902_v52  ;;  %v1549_v17 = vunpack.c.l.b16 %v530_v14  ;;  %v1833_v52 = vsel %vm1799_vm2, %v6164_v46, -inf  ;;  %v6179_v24 = vpack.c.b16 %v1640_v0, %v1639_v44  ;;  %v1064_v29 = vpop.f32.mrf.mxu3 }
 0x1bb   :  { %1828 = vmax.xlane.f32.xlu2 %v1827_v57  ;;  %v2058_v37 = vmul.f32 1.442695, %v1993_v48  ;;  %v6177_v57 = vpack.c.b16 %v1460_v59, %v1459_v51  ;;  %v1839_v14 = vsel %vm1799_vm2, %v6183_v60, -inf  ;;  %v533_v59 = vpack.c.bf16 %v4879_v30, %v4879_v30 }
 0x1bc   :  { %v1304_v19 = vpop.f32.mrf.mxu1  ;;  %v6175_v27 = vpack.c.b16 %v1550_v28, %v1549_v17  ;;  %7822 = vst [vmem:[#allocation27_spill] sm:$0xff] %v6179_v24  ;;  %v1669_v51 = vunpack.c.l.b16 %v538_v40  ;;  %v6207_v28 = vadd.f32 %v6067_v38, %v1064_v29 }
 0x1bd   :  { %v6167_v31 = vadd.f32 %v6016_v12, %v1304_v19  ;;  %7821 = vst [vmem:[#allocation26_spill] sm:$0xff] %v6177_v57  ;;  %v1580_v48 = vunpack.c.l.b16 %v533_v59 }
 0x1be   :  { %7820 = vst [vmem:[#allocation25_spill] sm:$0xff] %v6175_v27 }
 0x1bf   :  { %7819 = vst [vmem:[#allocation24_spill] sm:$0xff] %v6167_v31  ;;  %v1905_v39 = vsel %vm1799_vm2, %v6167_v31, -inf }
 0x1c0   :  { %1906 = vmax.xlane.f32.xlu0 %v1905_v39  ;;  %v1811_v56 = vpop.xlane.xlu2 %1810  ;;  %v1670_v39 = vunpack.c.l.b16 %v539_v62 }
 0x1c1   :  { %v1802_v16 = vpop.xlane.xlu1 %1801  ;;  %v1995_v42 = vsub.f32 %v5889_v25, %v1811_v56 }
 0x1c2   :  { %v1992_v13 = vsub.f32 %v5886_v23, %v1802_v16  ;;  %v1711_v23 = vsel %vm776_vm1, %v1706_v21, 0  ;;  %v6209_v16 = vpop.permute.xlu0 %2823 }
 0x1c3   :  { %1834 = vmax.xlane.f32.xlu2 %v1833_v52  ;;  %v2062_v18 = vmul.f32 1.442695, %v1995_v42  ;;  %v6214_v52 = vpack.c.b16 %v1670_v39, %v1669_v51  ;;  %v7826_v51 = vld [vmem:[#allocation4_spill] sm:$0xff] }
 0x1c4   :  { %v2056_v8 = vmul.f32 1.442695, %v1992_v13  ;;  %v1857_v13 = vsel %vm1799_vm2, %v6207_v28, -inf }
 0x1c5   :  { %7823 = vst [vmem:[#allocation28_spill] sm:$0xff] %v6214_v52 }
 0x1c6   :  { %5082 = vpow2.f32 %v2056_v8 }
 0x1c7   :  { %4597 = vmatmul.msk.bf16.vlgmr.msra.gmra.mxu2 %vm776_vm1, %v6175_v27  ;;  %5084 = vpow2.f32 %v2058_v37  ;;  %v4804_v37 = vunpack.i.h.bf16 %v5845_v5 }
 0x1c8   :  { %4600 = vmatmul.msk.bf16.vlgmr.msra.gmra.mxu1 %vm776_vm1, %v6179_v24  ;;  %2636 = vmatpush.bf16.msra.mxu2 %v5871_v58  ;;  %v532_v58 = vpack.c.bf16 %v4878_v55, %v4878_v55  ;;  %5086 = vpow2.f32 %v2062_v18 }
 0x1c9   :  { %4594 = vmatmul.msk.bf16.vlgmr.msrb.gmra.mxu3 %vm776_vm1, %v6177_v57  ;;  %2711 = vmatpush.bf16.msra.mxu1 %v2699_v34  ;;  %v1814_v17 = vpop.xlane.xlu1 %1813  ;;  %v4803_v34 = vunpack.i.l.bf16 %v5845_v5  ;;  %v7832_v57 = vld [vmem:[#allocation6_spill] sm:$0xff] }
 0x1ca   :  { %1720 = vmatpush.bf16.xpose.msrb.mxu3 %v1711_v23  ;;  %v1579_v25 = vunpack.c.l.b16 %v532_v58  ;;  %v1996_v44 = vsub.f32 %v5908_v49, %v1814_v17 }
 0x1cb   :  { %1840 = vmax.xlane.f32.xlu2 %v1839_v14  ;;  %v540_v14 = vpack.c.bf16 %v4803_v34, %v4803_v34 }
 0x1cc   :  { %v6199_v19 = vpop.eup %5082  ;;  %v6218_v8 = vpack.c.b16 %v1580_v48, %v1579_v25  ;;  %v2064_v21 = vmul.f32 1.442695, %v1996_v44 }
 0x1cd   :  { %v2184_v3 = vsel %vm1799_vm2, %v6199_v19, 0.0  ;;  %v6204_v7 = vpop.eup %5084  ;;  %v1699_v62 = vunpack.c.l.b16 %v540_v14 }
 0x1ce   :  { %2185 = vadd.xlane.f32.xlu1 %v2184_v3  ;;  %v2187_v0 = vsel %vm1799_vm2, %v6204_v7, 0.0  ;;  %7824 = vst [vmem:[#allocation29_spill] sm:$0xff] %v6218_v8  ;;  %v6226_v49 = vpop.eup %5086  ;;  %5088 = vpow2.f32 %v2064_v21 }
 0x1d3   :  { %2188 = vadd.xlane.f32.xlu2 %v2187_v0  ;;  %v1122_v32 = vpop.f32.mrf.mxu3 }
 0x1d4   :  { %v6238_v42 = vpop.eup %5088  ;;  %v6262_v0 = vadd.f32 %v6055_v43, %v1122_v32 }
 0x1d5   :  { %v2196_v3 = vsel %vm1799_vm2, %v6238_v42, 0.0 }
 0x1d6   :  { %1858 = vmax.xlane.f32.xlu1 %v1857_v13  ;;  %v1866_v44 = vsel %vm1799_vm2, %v6262_v0, -inf }
 0x1d7   :  { %4601 = vmatmul.msk.bf16.vlgmr.msrb.gmra.mxu2 %vm776_vm1, %v6214_v52 }
 0x1d8   :  { %2736 = vmatpush.bf16.msrb.mxu2 %v5821_v4  ;;  %v2193_v4 = vsel %vm1799_vm2, %v6226_v49, 0.0 }
 0x1d9   :  { %4598 = vmatmul.msk.bf16.vlgmr.msra.gmra.mxu3 %vm776_vm1, %v6218_v8 }
 0x1da   :  { %2661 = vmatpush.bf16.msra.mxu3 %v5953_v1  ;;  %v1808_v23 = vpop.xlane.xlu0 %1807  ;;  %v1092_v56 = vpop.f32.mrf.mxu2  ;;  %v541_v1 = vpack.c.bf16 %v4804_v37, %v4804_v37 }
 0x1db   :  { %v1994_v33 = vsub.f32 %v5931_v20, %v1808_v23  ;;  %v6232_v55 = vadd.f32 %v6055_v43, %v1092_v56  ;;  %v1124_v58 = vpop.f32.mrf.mxu3  ;;  %v6266_v13 = vpop.xlane.xlu1 %1825 }
 0x1dc   :  { %v1700_v20 = vunpack.c.l.b16 %v541_v1  ;;  %v6251_v39 = vadd.f32 %v6067_v38, %v1124_v58  ;;  %v6283_v1 = vld [vmem:[%s7749_s2 + $0x30] sm:$0xff]  ;;  %v6285_v14 = vpop.permute.xlu2 %2873  ;;  %v2000_v50 = vsub.f32 %v7832_v57, %v6266_v13 }
 0x1dd   :  { %v2060_v30 = vmul.f32 1.442695, %v1994_v33  ;;  %v1860_v5 = vsel %vm1799_vm2, %v6232_v55, -inf }
 0x1de   :  { %2194 = vadd.xlane.f32.xlu1 %v2193_v4  ;;  %1861 = vmax.xlane.f32.xlu2 %v1860_v5  ;;  %v6244_v59 = vpack.c.b16 %v1700_v20, %v1699_v62  ;;  %v1869_v48 = vsel %vm1799_vm2, %v6251_v39, -inf  ;;  %v2072_v53 = vmul.f32 1.442695, %v2000_v50 }
 0x1df   :  { %5090 = vpow2.f32 %v2060_v30 }
 0x1e0   :  { %7825 = vst [vmem:[#allocation30_spill] sm:$0xff] %v6244_v59 }
 0x1e2   :  { %v1094_v18 = vpop.f32.mrf.mxu2 }
 0x1e3   :  { %v6255_v17 = vadd.f32 %v6067_v38, %v1094_v18 }
 0x1e5   :  { %v6240_v40 = vpop.eup %5090  ;;  %v1863_v25 = vsel %vm1799_vm2, %v6255_v17, -inf }
 0x1e6   :  { %v2190_v29 = vsel %vm1799_vm2, %v6240_v40, 0.0  ;;  %2197 = vadd.xlane.f32.xlu1 %v2196_v3 }
 0x1e7   :  { %2191 = vadd.xlane.f32.xlu0 %v2190_v29 }
 0x1e9   :  { %4602 = vmatmul.msk.bf16.vlgmr.msrb.gmra.mxu3 %vm776_vm1, %v6244_v59  ;;  %v1823_v59 = vpop.xlane.xlu0 %1822 }
 0x1ea   :  { %2761 = vmatpush.bf16.msrb.mxu3 %v7826_v51  ;;  %v1832_v32 = vpop.xlane.xlu1 %1831 }
 0x1ee   :  { %1870 = vmax.xlane.f32.xlu1 %v1869_v48 }
 0x1ef   :  { %1864 = vmax.xlane.f32.xlu0 %v1863_v25 }
 0x1f2   :  { %v6287_v20 = vpop.xlane.xlu1 %1837 }
 0x1f7   :  { %1867 = vmax.xlane.f32.xlu0 %v1866_v44  ;;  %v7828_v44 = vld [vmem:[#allocation8_spill] sm:$0xff] }
 0x202   :  { %v6297_v48 = vpop.xlane.xlu1 %1846 }
 0x207   :  { %v1392_v21 = vpop.f32.mrf.mxu0 }
 0x208   :  { %v6269_v37 = vadd.f32 %v5990_v35, %v1392_v21  ;;  %v2002_v21 = vsub.f32 %v7828_v44, %v1832_v32  ;;  %v7829_v32 = vld [vmem:[#allocation7_spill] sm:$0xff] }
 0x20a   :  { %v1920_v34 = vsel %vm1799_vm2, %v6269_v37, -inf  ;;  %v1152_v23 = vpop.f32.mrf.mxu2 }
 0x20b   :  { %1921 = vmax.xlane.f32.xlu1 %v1920_v34  ;;  %v6274_v33 = vadd.f32 %v6055_v43, %v1152_v23 }
 0x20d   :  { %v1872_v30 = vsel %vm1799_vm2, %v6274_v33, -inf }
 0x20e   :  { %1873 = vmax.xlane.f32.xlu2 %v1872_v30 }
 0x20f   :  { %v1394_v56 = vpop.f32.mrf.mxu0 }
 0x212   :  { %v6278_v4 = vpop.f32.mrf.mxu2 }
 0x213   :  { %v6364_v13 = vadd.f32 %v6067_v38, %v6278_v4 }
 0x215   :  { %7834 = vst [vmem:[#allocation31_spill] sm:$0xff] %v6364_v13 }
 0x217   :  { %v1512_v5 = vpop.f32.mrf.mxu0 }
 0x218   :  { %v6290_v62 = vadd.f32 %v6283_v1, %v1512_v5  ;;  %v2076_v5 = vmul.f32 1.442695, %v2002_v21 }
 0x21a   :  { %7827 = vst [vmem:[#allocation4_spill] sm:$0xff] %v6290_v62  ;;  %v1944_v3 = vsel %vm1799_vm2, %v6290_v62, -inf  ;;  %v1212_v58 = vpop.f32.mrf.mxu2 }
 0x21b   :  { %1945 = vmax.xlane.f32.xlu2 %v1944_v3  ;;  %v6295_v18 = vadd.f32 %v6055_v43, %v1212_v58 }
 0x21c   :  { %v1182_v29 = vpop.f32.mrf.mxu3 }
 0x21d   :  { %v1884_v23 = vsel %vm1799_vm2, %v6295_v18, -inf  ;;  %v6367_v62 = vadd.f32 %v6055_v43, %v1182_v29 }
 0x21e   :  { %v1817_v51 = vpop.xlane.xlu2 %1816 }
 0x21f   :  { %v1997_v25 = vsub.f32 %v6079_v41, %v1817_v51  ;;  %v1999_v51 = vsub.f32 %v7829_v32, %v1823_v59  ;;  %v1878_v4 = vsel %vm1799_vm2, %v6367_v62, -inf  ;;  %v1514_v29 = vpop.f32.mrf.mxu0 }
 0x221   :  { %v2066_v34 = vmul.f32 1.442695, %v1997_v25  ;;  %v6310_v25 = vpop.xlane.xlu1 %1900 }
 0x223   :  { %1885 = vmax.xlane.f32.xlu2 %v1884_v23  ;;  %5092 = vpow2.f32 %v2066_v34  ;;  %v2070_v23 = vmul.f32 1.442695, %v1999_v51 }
 0x224   :  { %v1184_v30 = vpop.f32.mrf.mxu3  ;;  %5094 = vpow2.f32 %v2076_v5  ;;  %v6323_v5 = vpop.xlane.xlu0 %1843 }
 0x225   :  { %v6304_v3 = vadd.f32 %v6067_v38, %v1184_v30  ;;  %v1422_v58 = vpop.f32.mrf.mxu1 }
 0x226   :  { %v1820_v52 = vpop.xlane.xlu2 %1819 }
 0x227   :  { %v1998_v24 = vsub.f32 %v6115_v9, %v1820_v52  ;;  %v1881_v34 = vsel %vm1799_vm2, %v6304_v3, -inf  ;;  %v6319_v9 = vadd.f32 %v6016_v12, %v1394_v56 }
 0x229   :  { %v6307_v41 = vpop.eup %5092  ;;  %v2068_v44 = vmul.f32 1.442695, %v1998_v24  ;;  %v6325_v24 = vpop.f32.mrf.mxu2 }
 0x22a   :  { %v2199_v21 = vsel %vm1799_vm2, %v6307_v41, 0.0  ;;  %v6316_v30 = vpop.eup %5094  ;;  %v6329_v2 = vpop.xlane.xlu1 %1852 }
 0x22b   :  { %1882 = vmax.xlane.f32.xlu2 %v1881_v34  ;;  %5096 = vpow2.f32 %v2068_v44  ;;  %2200 = vadd.xlane.f32.xlu0 %v2199_v21  ;;  %v2214_v51 = vsel %vm1799_vm2, %v6316_v30, 0.0  ;;  %v1923_v34 = vsel %vm1799_vm2, %v6319_v9, -inf }
 0x22c   :  { %5098 = vpow2.f32 %v2070_v23  ;;  %v1242_v44 = vpop.f32.mrf.mxu3  ;;  %v6341_v23 = vadd.f32 %v5990_v35, %v1422_v58 }
 0x22d   :  { %v6321_v59 = vpop.f32.mrf.mxu1  ;;  %v6338_v21 = vadd.f32 %v6055_v43, %v1242_v44  ;;  %5100 = vpow2.f32 %v2072_v53  ;;  %v1875_v43 = vsel %vm1799_vm2, %v6364_v13, -inf  ;;  %v6382_v53 = vld [vmem:[%s7749_s2 + $0x38] sm:$0xff] }
 0x22e   :  { %v1829_v52 = vpop.xlane.xlu2 %1828  ;;  %7831 = vst [vmem:[#allocation7_spill] sm:$0xff] %v6341_v23  ;;  %v1926_v58 = vsel %vm1799_vm2, %v6341_v23, -inf }
 0x22f   :  { %7830 = vst [vmem:[#allocation8_spill] sm:$0xff] %v6338_v21  ;;  %v2001_v23 = vsub.f32 %v6130_v11, %v1829_v52  ;;  %v6388_v52 = vadd.f32 %v6382_v53, %v1514_v29 }
 0x231   :  { %v6327_v32 = vpop.eup %5096  ;;  %v1332_v44 = vpop.f32.mrf.mxu2  ;;  %7836 = vst [vmem:[#allocation33_spill] sm:$0xff] %v6388_v52 }
 0x232   :  { %v2202_v56 = vsel %vm1799_vm2, %v6327_v32, 0.0  ;;  %v6343_v27 = vpop.eup %5098  ;;  %v6349_v6 = vpop.xlane.xlu1 %1903  ;;  %v6360_v57 = vadd.f32 %v5990_v35, %v1332_v44 }
 0x233   :  { %2215 = vadd.xlane.f32.xlu2 %v2214_v51  ;;  %2203 = vadd.xlane.f32.xlu1 %v2202_v56  ;;  %v1890_v51 = vsel %vm1799_vm2, %v6338_v21, -inf  ;;  %v6353_v56 = vpop.xlane.xlu0 %1897 }
 0x234   :  { %1924 = vmax.xlane.f32.xlu0 %v1923_v34  ;;  %v2205_v34 = vsel %vm1799_vm2, %v6343_v27, 0.0  ;;  %7833 = vst [vmem:[#allocation6_spill] sm:$0xff] %v6360_v57 }
 0x235   :  { %v6345_v15 = vpop.f32.mrf.mxu1 }
 0x236   :  { %v1835_v8 = vpop.xlane.xlu2 %1834 }
 0x237   :  { %v2003_v36 = vsub.f32 %v6164_v46, %v1835_v8  ;;  %v2074_v46 = vmul.f32 1.442695, %v2001_v23 }
 0x239   :  { %v2078_v11 = vmul.f32 1.442695, %v2003_v36 }
 0x23b   :  { %1891 = vmax.xlane.f32.xlu2 %v1890_v51  ;;  %1927 = vmax.xlane.f32.xlu1 %v1926_v58  ;;  %v1908_v51 = vsel %vm1799_vm2, %v6360_v57, -inf  ;;  %v6373_v58 = vpop.xlane.xlu0 %1849 }
 0x23c   :  { %2206 = vadd.xlane.f32.xlu0 %v2205_v34  ;;  %v6390_v34 = vpop.eup %5100 }
 0x23d   :  { %v1544_v35 = vpop.f32.mrf.mxu1 }
 0x23e   :  { %v1841_v10 = vpop.xlane.xlu2 %1840  ;;  %v6385_v8 = vadd.f32 %v6382_v53, %v1544_v35  ;;  %v1947_v35 = vsel %vm1799_vm2, %v6388_v52, -inf  ;;  %v7837_v52 = vld [vmem:[#allocation9_spill] sm:$0xff] }
 0x23f   :  { %v2004_v21 = vsub.f32 %v7837_v52, %v6287_v20 }
 0x240   :  { %7835 = vst [vmem:[#allocation32_spill] sm:$0xff] %v6385_v8 }
 0x241   :  { %v2186_v50 = vpop.xlane.xlu1 %2185  ;;  %v2080_v20 = vmul.f32 1.442695, %v2004_v21  ;;  %v7838_v21 = vld [vmem:[#allocation10_spill] sm:$0xff] }
 0x242   :  { %5102 = vrcp.f32 %v2186_v50  ;;  %v1953_v50 = vsel %vm1799_vm2, %v6385_v8, -inf }
 0x243   :  { %1909 = vmax.xlane.f32.xlu2 %v1908_v51  ;;  %1879 = vmax.xlane.f32.xlu1 %v1878_v4  ;;  %v6396_v36 = vpop.xlane.xlu0 %1855 }
 0x244   :  { %1876 = vmax.xlane.f32.xlu0 %v1875_v43  ;;  %v2208_v43 = vsel %vm1799_vm2, %v6390_v34, 0.0 }
 0x246   :  { %v2189_v44 = vpop.xlane.xlu2 %2188 }
 0x247   :  { %5104 = vrcp.f32 %v2189_v44  ;;  %v6407_v44 = vadd.f32 %v6016_v12, %v6321_v59 }
 0x248   :  { %v5103_v51 = vpop.eup %5102  ;;  %5106 = vpow2.f32 %v2078_v11  ;;  %v1244_v11 = vpop.f32.mrf.mxu3 }
 0x249   :  { %5108 = vpow2.f32 %v2074_v46  ;;  %v6394_v4 = vpop.xlane.xlu1 %1858  ;;  %v2440_v23 = vmul.f32 %v5103_v51, %v6199_v19 }
 0x24b   :  { %1954 = vmax.xlane.f32.xlu2 %v1953_v50  ;;  %1948 = vmax.xlane.f32.xlu1 %v1947_v35  ;;  %v2504_v8 = vpack.c.bf16 %v2440_v23, %v2440_v23  ;;  %v2005_v50 = vsub.f32 %v6183_v60, %v1841_v10  ;;  %v6424_v10 = vadd.f32 %v6067_v38, %v1244_v11  ;;  %v1334_v60 = vpop.f32.mrf.mxu2 }
 0x24c   :  { %2209 = vadd.xlane.f32.xlu0 %v2208_v43  ;;  %v6417_v43 = vpop.xlane.xlu0 %1906 }
 0x24d   :  { %v5105_v29 = vpop.eup %5104  ;;  %v2570_v57 = vunpack.c.l.b16 %v2504_v8  ;;  %v6432_v8 = vadd.f32 %v6283_v1, %v6345_v15 }
 0x24e   :  { %v6403_v46 = vpop.eup %5106  ;;  %v2441_v19 = vmul.f32 %v5105_v29, %v6204_v7  ;;  %v1929_v7 = vsel %vm1799_vm2, %v6407_v44, -inf  ;;  %v2082_v29 = vmul.f32 1.442695, %v2005_v50 }
 0x24f   :  { %v6410_v51 = vpop.eup %5108  ;;  %v2217_v35 = vsel %vm1799_vm2, %v6403_v46, 0.0  ;;  %v1950_v15 = vsel %vm1799_vm2, %v6432_v8, -inf }
 0x250   :  { %v2505_v31 = vpack.c.bf16 %v2441_v19, %v2441_v19  ;;  %v2211_v59 = vsel %vm1799_vm2, %v6410_v51, 0.0  ;;  %v1362_v19 = vpop.f32.mrf.mxu3 }
 0x251   :  { %v2195_v23 = vpop.xlane.xlu1 %2194 }
 0x252   :  { %v2571_v13 = vunpack.c.l.b16 %v2505_v31  ;;  %5110 = vrcp.f32 %v2195_v23  ;;  %v6428_v31 = vadd.f32 %v6067_v38, %v6325_v24  ;;  %v1893_v38 = vsel %vm1799_vm2, %v6424_v10, -inf }
 0x253   :  { %2218 = vadd.xlane.f32.xlu2 %v2217_v35  ;;  %2212 = vadd.xlane.f32.xlu1 %v2211_v59  ;;  %5112 = vpow2.f32 %v2080_v20  ;;  %v2025_v20 = vsub.f32 %v6021_v47, %v6310_v25  ;;  %v5404_v25 = vld [vmem:[%s7749_s2 + $0x20] sm:$0xff] }
 0x254   :  { %1930 = vmax.xlane.f32.xlu0 %v1929_v7  ;;  %v2572_v52 = vpack.c.b16 %v2571_v13, %v2570_v57  ;;  %v2006_v57 = vsub.f32 %v7838_v21, %v6323_v5  ;;  %v2008_v13 = vsub.f32 %v6059_v45, %v6373_v58  ;;  %5114 = vpow2.f32 %v2082_v29  ;;  %v1452_v7 = vpop.f32.mrf.mxu2 }
 0x255   :  { %v1887_v24 = vsel %vm1799_vm2, %v6428_v31, -inf  ;;  %v6447_v45 = vadd.f32 %v6016_v12, %v1334_v60 }
 0x256   :  { %4603 = vmatmul.msk.bf16.vlgmr.msrb.gmra.mxu0 %vm1799_vm2, %v2572_v52  ;;  %v2084_v5 = vmul.f32 1.442695, %v2006_v57  ;;  %v2088_v50 = vmul.f32 1.442695, %v2008_v13  ;;  %v2122_v13 = vmul.f32 1.442695, %v2025_v20 }
 0x257   :  { %2786 = vmatpush.bf16.msrb.mxu0 %v6155_v54  ;;  %v1911_v29 = vsel %vm1799_vm2, %v6447_v45, -inf }
 0x258   :  { %v5111_v54 = vpop.eup %5110  ;;  %v1364_v52 = vpop.f32.mrf.mxu3 }
 0x259   :  { %v6449_v58 = vpop.eup %5112  ;;  %v2443_v35 = vmul.f32 %v5111_v54, %v6226_v49 }
 0x25a   :  { %v2192_v11 = vpop.xlane.xlu0 %2191  ;;  %v6452_v59 = vpop.eup %5114  ;;  %v2220_v60 = vsel %vm1799_vm2, %v6449_v58, 0.0 }
 0x25b   :  { %1894 = vmax.xlane.f32.xlu2 %v1893_v38  ;;  %1951 = vmax.xlane.f32.xlu1 %v1950_v15  ;;  %5116 = vrcp.f32 %v2192_v11  ;;  %v2507_v21 = vpack.c.bf16 %v2443_v35, %v2443_v35  ;;  %v2223_v49 = vsel %vm1799_vm2, %v6452_v59, 0.0  ;;  %v6468_v38 = vadd.f32 %v5404_v25, %v1452_v7  ;;  %v7839_v11 = vld [vmem:[#allocation13_spill] sm:$0xff] }
 0x25c   :  { %1888 = vmax.xlane.f32.xlu0 %v1887_v24  ;;  %5118 = vpow2.f32 %v2084_v5  ;;  %v2007_v54 = vsub.f32 %v7839_v11, %v6297_v48  ;;  %v1454_v35 = vpop.f32.mrf.mxu2 }
 0x25d   :  { %5120 = vpow2.f32 %v2088_v50  ;;  %v2009_v50 = vsub.f32 %v6071_v61, %v6329_v2  ;;  %v1932_v20 = vsel %vm1799_vm2, %v6468_v38, -inf  ;;  %v6484_v2 = vadd.f32 %v5404_v25, %v1362_v19 }
 0x25e   :  { %5122 = vpow2.f32 %v2122_v13  ;;  %v2086_v48 = vmul.f32 1.442695, %v2007_v54 }
 0x25f   :  { %v2090_v61 = vmul.f32 1.442695, %v2009_v50 }
 0x260   :  { %5124 = vpow2.f32 %v2086_v48 }
 0x261   :  { %v5117_v23 = vpop.eup %5116  ;;  %5126 = vpow2.f32 %v2090_v61  ;;  %v2010_v61 = vsub.f32 %v6120_v22, %v6396_v36 }
 0x262   :  { %v2442_v12 = vmul.f32 %v5117_v23, %v6240_v40  ;;  %v6463_v47 = vpop.eup %5118  ;;  %v2596_v40 = vunpack.c.l.b16 %v2507_v21 }
 0x263   :  { %1912 = vmax.xlane.f32.xlu2 %v1911_v29  ;;  %2221 = vadd.xlane.f32.xlu1 %v2220_v60  ;;  %v6470_v24 = vpop.eup %5120  ;;  %v2226_v23 = vsel %vm1799_vm2, %v6463_v47, 0.0  ;;  %v1482_v29 = vpop.f32.mrf.mxu3  ;;  %v2011_v60 = vsub.f32 %v6207_v28, %v6394_v4 }
 0x264   :  { %2224 = vadd.xlane.f32.xlu0 %v2223_v49  ;;  %v2506_v57 = vpack.c.bf16 %v2442_v12, %v2442_v12  ;;  %v2232_v7 = vsel %vm1799_vm2, %v6470_v24, 0.0  ;;  %v6486_v21 = vadd.f32 %v5404_v25, %v1482_v29  ;;  %v6488_v12 = vpop.eup %5122  ;;  %v1914_v49 = vsel %vm1799_vm2, %v6484_v2, -inf  ;;  %v1572_v19 = vpop.f32.mrf.mxu2  ;;  %v7842_v29 = vld [vmem:[#allocation12_spill] sm:$0xff] }
 0x265   :  { %v2094_v13 = vmul.f32 1.442695, %v2011_v60  ;;  %v2024_v48 = vsub.f32 %v7842_v29, %v6353_v56 }
 0x266   :  { %v2595_v15 = vunpack.c.l.b16 %v2506_v57  ;;  %v1938_v57 = vsel %vm1799_vm2, %v6486_v21, -inf  ;;  %v6498_v25 = vpop.eup %5124 }
 0x267   :  { %v6503_v28 = vpop.eup %5126  ;;  %5128 = vpow2.f32 %v2094_v13  ;;  %v2229_v4 = vsel %vm1799_vm2, %v6498_v25, 0.0  ;;  %v2092_v13 = vmul.f32 1.442695, %v2010_v61 }
 0x268   :  { %v2597_v5 = vpack.c.b16 %v2596_v40, %v2595_v15  ;;  %v6501_v40 = vadd.f32 %v6283_v1, %v1572_v19  ;;  %v2235_v15 = vsel %vm1799_vm2, %v6503_v28, 0.0  ;;  %v2198_v19 = vpop.xlane.xlu1 %2197 }
 0x26a   :  { %4604 = vmatmul.msk.bf16.vlgmr.msrb.gmra.mxu1 %vm1799_vm2, %v2597_v5  ;;  %7840 = vst [vmem:[#allocation9_spill] sm:$0xff] %v6501_v40  ;;  %v1956_v11 = vsel %vm1799_vm2, %v6501_v40, -inf  ;;  %v5405_v5 = vld [vmem:[%s7749_s2 + $0x28] sm:$0xff] }
 0x26b   :  { %2227 = vadd.xlane.f32.xlu2 %v2226_v23  ;;  %2233 = vadd.xlane.f32.xlu1 %v2232_v7  ;;  %v1484_v54 = vpop.f32.mrf.mxu3  ;;  %v6514_v50 = vadd.f32 %v5405_v5, %v1364_v52  ;;  %v1862_v23 = vpop.xlane.xlu2 %1861  ;;  %v6530_v56 = vadd.f32 %v5405_v5, %v1454_v35 }
 0x26c   :  { %1933 = vmax.xlane.f32.xlu0 %v1932_v20  ;;  %2811 = vmatpush.bf16.msrb.mxu1 %v6132_v63  ;;  %v2283_v63 = vsel %vm1799_vm2, %v6488_v12, 0.0  ;;  %v6516_v7 = vadd.f32 %v5405_v5, %v1484_v54  ;;  %v2012_v36 = vsub.f32 %v6232_v55, %v1862_v23  ;;  %v6542_v54 = vpop.xlane.xlu0 %1864 }
 0x26d   :  { %v6518_v20 = vpop.eup %5128  ;;  %v1917_v60 = vsel %vm1799_vm2, %v6514_v50, -inf }
 0x26e   :  { %7841 = vst [vmem:[#allocation10_spill] sm:$0xff] %v6516_v7  ;;  %v2241_v52 = vsel %vm1799_vm2, %v6518_v20, 0.0  ;;  %v2096_v35 = vmul.f32 1.442695, %v2012_v36 }
 0x273   :  { %1915 = vmax.xlane.f32.xlu2 %v1914_v49  ;;  %1939 = vmax.xlane.f32.xlu1 %v1938_v57  ;;  %v1941_v49 = vsel %vm1799_vm2, %v6516_v7, -inf  ;;  %v1574_v57 = vpop.f32.mrf.mxu2 }
 0x274   :  { %2284 = vadd.xlane.f32.xlu0 %v2283_v63  ;;  %v2120_v63 = vmul.f32 1.442695, %v2024_v48  ;;  %v6535_v22 = vadd.f32 %v6382_v53, %v1574_v57  ;;  %v1871_v48 = vpop.xlane.xlu1 %1870  ;;  %v6555_v57 = vpop.xlane.xlu0 %1867 }
 0x275   :  { %v2015_v55 = vsub.f32 %v6251_v39, %v1871_v48  ;;  %v2026_v39 = vsub.f32 %v6135_v26, %v6349_v6 }
 0x276   :  { %5130 = vpow2.f32 %v2120_v63 }
 0x277   :  { %5132 = vpow2.f32 %v2092_v13 }
 0x278   :  { %5134 = vpow2.f32 %v2096_v35 }
 0x279   :  { %5136 = vrcp.f32 %v2198_v19 }
 0x27b   :  { %2230 = vadd.xlane.f32.xlu2 %v2229_v4  ;;  %1957 = vmax.xlane.f32.xlu1 %v1956_v11  ;;  %v1959_v11 = vsel %vm1799_vm2, %v6535_v22, -inf }
 0x27c   :  { %2236 = vadd.xlane.f32.xlu0 %v2235_v15  ;;  %v1935_v15 = vsel %vm1799_vm2, %v6530_v56, -inf  ;;  %v6546_v29 = vpop.eup %5130 }
 0x27d   :  { %v6548_v61 = vpop.eup %5132  ;;  %v2280_v23 = vsel %vm1799_vm2, %v6546_v29, 0.0 }
 0x27e   :  { %v6558_v13 = vpop.eup %5134  ;;  %v1922_v35 = vpop.xlane.xlu1 %1921 }
 0x27f   :  { %v2032_v6 = vsub.f32 %v6269_v37, %v1922_v35 }
 0x281   :  { %v6532_v4 = vpop.xlane.xlu2 %1873 }
 0x283   :  { %1918 = vmax.xlane.f32.xlu2 %v1917_v60  ;;  %2242 = vadd.xlane.f32.xlu1 %v2241_v52  ;;  %v2238_v60 = vsel %vm1799_vm2, %v6548_v61, 0.0 }
 0x284   :  { %1942 = vmax.xlane.f32.xlu0 %v1941_v49  ;;  %v2102_v49 = vmul.f32 1.442695, %v2015_v55  ;;  %v5137_v55 = vpop.eup %5136 }
 0x286   :  { %5138 = vpow2.f32 %v2102_v49 }
 0x28b   :  { %1936 = vmax.xlane.f32.xlu2 %v1935_v15  ;;  %v2244_v15 = vsel %vm1799_vm2, %v6558_v13, 0.0 }
 0x28c   :  { %1960 = vmax.xlane.f32.xlu0 %v1959_v11  ;;  %v2124_v11 = vmul.f32 1.442695, %v2026_v39 }
 0x28e   :  { %v6544_v5 = vpop.xlane.xlu2 %1945 }
 0x293   :  { %2281 = vadd.xlane.f32.xlu2 %v2280_v23 }
 0x294   :  { %2239 = vadd.xlane.f32.xlu0 %v2238_v60  ;;  %v6565_v60 = vpop.eup %5138 }
 0x296   :  { %v1886_v52 = vpop.xlane.xlu2 %1885 }
 0x297   :  { %v2020_v63 = vsub.f32 %v6295_v18, %v1886_v52  ;;  %v2444_v52 = vmul.f32 %v5137_v55, %v6238_v42 }
 0x299   :  { %v2112_v36 = vmul.f32 1.442695, %v2020_v63  ;;  %v2253_v63 = vsel %vm1799_vm2, %v6565_v60, 0.0 }
 0x29b   :  { %5140 = vpow2.f32 %v2112_v36 }
 0x29c   :  { %2245 = vadd.xlane.f32.xlu0 %v2244_v15  ;;  %v2508_v15 = vpack.c.bf16 %v2444_v52, %v2444_v52 }
 0x29e   :  { %v1883_v48 = vpop.xlane.xlu2 %1882  ;;  %v2201_v23 = vpop.xlane.xlu0 %2200 }
 0x29f   :  { %v2019_v18 = vsub.f32 %v6304_v3, %v1883_v48  ;;  %5142 = vrcp.f32 %v2201_v23  ;;  %v2136_v3 = vmul.f32 1.442695, %v2032_v6  ;;  %v7844_v6 = vld [vmem:[#allocation16_spill] sm:$0xff] }
 0x2a0   :  { %5144 = vpow2.f32 %v2124_v11 }
 0x2a1   :  { %v6567_v19 = vpop.eup %5140  ;;  %v2110_v26 = vmul.f32 1.442695, %v2019_v18  ;;  %v2620_v18 = vunpack.c.l.b16 %v2508_v15 }
 0x2a2   :  { %v2268_v49 = vsel %vm1799_vm2, %v6567_v19, 0.0 }
 0x2a3   :  { %5146 = vpow2.f32 %v2110_v26  ;;  %2269 = vadd.xlane.f32.xlu1 %v2268_v49 }
 0x2a4   :  { %2254 = vadd.xlane.f32.xlu0 %v2253_v63  ;;  %5148 = vpow2.f32 %v2136_v3 }
 0x2a5   :  { %v5143_v36 = vpop.eup %5142 }
 0x2a6   :  { %v2216_v39 = vpop.xlane.xlu2 %2215  ;;  %v2445_v48 = vmul.f32 %v5143_v36, %v6307_v41  ;;  %v2204_v37 = vpop.xlane.xlu1 %2203 }
 0x2a7   :  { %v1925_v35 = vpop.xlane.xlu0 %1924  ;;  %v6576_v11 = vpop.eup %5144  ;;  %5150 = vrcp.f32 %v2204_v37 }
 0x2a8   :  { %7843 = vst [vmem:[#allocation13_spill] sm:$0xff] %v6576_v11  ;;  %v2509_v42 = vpack.c.bf16 %v2445_v48, %v2445_v48  ;;  %v2286_v41 = vsel %vm1799_vm2, %v6576_v11, 0.0  ;;  %v1602_v37 = vpop.f32.mrf.mxu3 }
 0x2a9   :  { %v6578_v23 = vpop.eup %5146 }
 0x2aa   :  { %v2265_v55 = vsel %vm1799_vm2, %v6578_v23, 0.0  ;;  %v2621_v26 = vunpack.c.l.b16 %v2509_v42  ;;  %v6588_v63 = vpop.eup %5148 }
 0x2ab   :  { %2898 = vrot.lane.b32.xlu2 %v7844_v6, %s5427_s27  ;;  %2266 = vadd.xlane.f32.xlu1 %v2265_v55  ;;  %v2304_v48 = vsel %vm1799_vm2, %v6588_v63, 0.0  ;;  %v7845_v55 = vld [vmem:[#allocation2_spill] sm:$0xff] }
 0x2ac   :  { %2287 = vadd.xlane.f32.xlu0 %v2286_v41  ;;  %v2622_v49 = vpack.c.b16 %v2621_v26, %v2620_v18  ;;  %v6600_v26 = vadd.f32 %v6283_v1, %v1602_v37 }
 0x2ad   :  { %v5151_v15 = vpop.eup %5150 }
 0x2ae   :  { %v6586_v52 = vpop.xlane.xlu2 %1891  ;;  %v6590_v3 = vpop.xlane.xlu1 %1927  ;;  %4605 = vmatmul.msk.bf16.vlgmr.msra.gmra.mxu2 %vm1799_vm2, %v2622_v49  ;;  %v2446_v42 = vmul.f32 %v5151_v15, %v6327_v32  ;;  %v2033_v32 = vsub.f32 %v6319_v9, %v1925_v35 }
 0x2af   :  { %v2207_v36 = vpop.xlane.xlu0 %2206  ;;  %2836 = vmatpush.bf16.msra.mxu2 %v6209_v16 }
 0x2b0   :  { %5152 = vrcp.f32 %v2207_v36  ;;  %v2510_v41 = vpack.c.bf16 %v2446_v42, %v2446_v42  ;;  %v2138_v37 = vmul.f32 1.442695, %v2033_v32 }
 0x2b3   :  { %2973 = vrot.lane.b32.xlu2 %v7845_v55, %s5427_s27  ;;  %2305 = vadd.xlane.f32.xlu1 %v2304_v48  ;;  %v1962_v48 = vsel %vm1799_vm2, %v6600_v26, -inf  ;;  %v2645_v55 = vunpack.c.l.b16 %v2510_v41 }
 0x2b6   :  { %v5153_v18 = vpop.eup %5152  ;;  %v6602_v6 = vpop.xlane.xlu2 %1909 }
 0x2b7   :  { %v2447_v16 = vmul.f32 %v5153_v18, %v6343_v27  ;;  %v1880_v49 = vpop.xlane.xlu1 %1879  ;;  %v6605_v36 = vpop.xlane.xlu0 %1876 }
 0x2b8   :  { %v2018_v40 = vsub.f32 %v6367_v62, %v1880_v49 }
 0x2b9   :  { %v2511_v15 = vpack.c.bf16 %v2447_v16, %v2447_v16 }
 0x2ba   :  { %v2108_v7 = vmul.f32 1.442695, %v2018_v40 }
 0x2bb   :  { %v2646_v1 = vunpack.c.l.b16 %v2511_v15  ;;  %1963 = vmax.xlane.f32.xlu1 %v1962_v48 }
 0x2bc   :  { %5154 = vpow2.f32 %v2108_v7 }
 0x2bd   :  { %v2647_v42 = vpack.c.b16 %v2646_v1, %v2645_v55  ;;  %5156 = vrcp.f32 %v2216_v39  ;;  %v2013_v39 = vsub.f32 %v6255_v17, %v6542_v54  ;;  %v1604_v55 = vpop.f32.mrf.mxu3 }
 0x2be   :  { %v6611_v11 = vpop.xlane.xlu2 %1954  ;;  %5158 = vpow2.f32 %v2138_v37 }
 0x2bf   :  { %v6613_v27 = vpop.xlane.xlu1 %1948  ;;  %4606 = vmatmul.msk.bf16.vlgmr.msra.gmra.mxu3 %vm1799_vm2, %v2647_v42  ;;  %v2210_v62 = vpop.xlane.xlu0 %2209  ;;  %v2098_v42 = vmul.f32 1.442695, %v2013_v39  ;;  %v2014_v39 = vsub.f32 %v6262_v0, %v6555_v57 }
 0x2c0   :  { %5160 = vrcp.f32 %v2210_v62 }
 0x2c2   :  { %v6616_v9 = vpop.eup %5154 }
 0x2c3   :  { %v2262_v40 = vsel %vm1799_vm2, %v6616_v9, 0.0  ;;  %v5157_v35 = vpop.eup %5156 }
 0x2c4   :  { %2263 = vadd.xlane.f32.xlu0 %v2262_v40  ;;  %v6620_v18 = vpop.eup %5158  ;;  %v2450_v32 = vmul.f32 %v5157_v35, %v6316_v30 }
 0x2c5   :  { %v2307_v48 = vsel %vm1799_vm2, %v6620_v18, 0.0 }
 0x2c6   :  { %v2219_v7 = vpop.xlane.xlu2 %2218  ;;  %v5161_v49 = vpop.eup %5160  ;;  %v2514_v62 = vpack.c.bf16 %v2450_v32, %v2450_v32 }
 0x2c7   :  { %v2213_v41 = vpop.xlane.xlu1 %2212  ;;  %v6622_v16 = vpop.xlane.xlu0 %1930  ;;  %5162 = vrcp.f32 %v2219_v7  ;;  %v2448_v15 = vmul.f32 %v5161_v49, %v6390_v34 }
 0x2c8   :  { %5164 = vrcp.f32 %v2213_v41  ;;  %v6634_v41 = vadd.f32 %v6382_v53, %v1604_v55  ;;  %v2695_v32 = vunpack.c.l.b16 %v2514_v62  ;;  %v2016_v62 = vsub.f32 %v6274_v33, %v6532_v4 }
 0x2c9   :  { %v2512_v17 = vpack.c.bf16 %v2448_v15, %v2448_v15  ;;  %5166 = vpow2.f32 %v2098_v42 }
 0x2ca   :  { %v1965_v53 = vsel %vm1799_vm2, %v6634_v41, -inf }
 0x2cc   :  { %2308 = vadd.xlane.f32.xlu0 %v2307_v48 }
 0x2cd   :  { %v5163_v1 = vpop.eup %5162 }
 0x2ce   :  { %v5165_v37 = vpop.eup %5164  ;;  %v2451_v40 = vmul.f32 %v5163_v1, %v6403_v46  ;;  %v6631_v7 = vpop.xlane.xlu2 %1894  ;;  %v2670_v46 = vunpack.c.l.b16 %v2512_v17 }
 0x2cf   :  { %v2449_v30 = vmul.f32 %v5165_v37, %v6410_v51  ;;  %v6637_v34 = vpop.xlane.xlu1 %1951  ;;  %v1889_v54 = vpop.xlane.xlu0 %1888  ;;  %v7846_v51 = vld [vmem:[#allocation5_spill] sm:$0xff]  ;;  %v2100_v37 = vmul.f32 1.442695, %v2014_v39 }
 0x2d0   :  { %v2515_v35 = vpack.c.bf16 %v2451_v40, %v2451_v40  ;;  %v6649_v57 = vpop.eup %5166 }
 0x2d1   :  { %v2513_v49 = vpack.c.bf16 %v2449_v30, %v2449_v30  ;;  %v2247_v17 = vsel %vm1799_vm2, %v6649_v57, 0.0 }
 0x2d2   :  { %v2696_v48 = vunpack.c.l.b16 %v2515_v35  ;;  %v2104_v35 = vmul.f32 1.442695, %v2016_v62 }
 0x2d3   :  { %v2671_v1 = vunpack.c.l.b16 %v2513_v49 }
 0x2d4   :  { %v2697_v55 = vpack.c.b16 %v2696_v48, %v2695_v32  ;;  %1966 = vmax.xlane.f32.xlu0 %v1965_v53  ;;  %2848 = vrot.lane.b32.xlu1 %v7846_v51, %s5427_s27 }
 0x2d5   :  { %v2672_v15 = vpack.c.b16 %v2671_v1, %v2670_v46 }
 0x2d6   :  { %4608 = vmatmul.msk.bf16.vlgmr.msra.gmra.mxu1 %vm1799_vm2, %v2697_v55  ;;  %v6646_v42 = vpop.xlane.xlu2 %1912 }
 0x2d7   :  { %v2222_v40 = vpop.xlane.xlu1 %2221  ;;  %4607 = vmatmul.msk.bf16.vlgmr.msra.gmra.mxu0 %vm1799_vm2, %v2672_v15  ;;  %v2225_v0 = vpop.xlane.xlu0 %2224 }
 0x2d8   :  { %5168 = vrcp.f32 %v2222_v40  ;;  %2886 = vmatpush.bf16.msra.mxu0 %v6285_v14  ;;  %v7847_v14 = vld [vmem:[#allocation31_spill] sm:$0xff] }
 0x2d9   :  { %5170 = vrcp.f32 %v2225_v0  ;;  %v2017_v1 = vsub.f32 %v7847_v14, %v6605_v36  ;;  %v2021_v36 = vsub.f32 %v6428_v31, %v1889_v54  ;;  %v7850_v31 = vld [vmem:[#allocation24_spill] sm:$0xff] }
 0x2da   :  { %5172 = vpow2.f32 %v2100_v37  ;;  %v2027_v54 = vsub.f32 %v7850_v31, %v6417_v43 }
 0x2db   :  { %5174 = vpow2.f32 %v2104_v35  ;;  %v2106_v37 = vmul.f32 1.442695, %v2017_v1  ;;  %v2114_v1 = vmul.f32 1.442695, %v2021_v36 }
 0x2dc   :  { %2248 = vadd.xlane.f32.xlu2 %v2247_v17  ;;  %v2126_v36 = vmul.f32 1.442695, %v2027_v54 }
 0x2dd   :  { %5176 = vpow2.f32 %v2106_v37  ;;  %v2035_v37 = vsub.f32 %v6407_v44, %v6622_v16  ;;  %v7851_v44 = vld [vmem:[#allocation8_spill] sm:$0xff] }
 0x2de   :  { %v5169_v30 = vpop.eup %5168  ;;  %v2228_v49 = vpop.xlane.xlu2 %2227  ;;  %v2022_v16 = vsub.f32 %v7851_v44, %v6586_v52 }
 0x2df   :  { %v5171_v39 = vpop.eup %5170  ;;  %v2452_v32 = vmul.f32 %v5169_v30, %v6449_v58  ;;  %v6657_v48 = vpop.xlane.xlu0 %1933  ;;  %5178 = vrcp.f32 %v2228_v49 }
 0x2e0   :  { %v6659_v46 = vpop.eup %5172  ;;  %v2453_v53 = vmul.f32 %v5171_v39, %v6452_v59  ;;  %v2234_v4 = vpop.xlane.xlu1 %2233  ;;  %v7848_v59 = vld [vmem:[#allocation14_spill] sm:$0xff] }
 0x2e1   :  { %v2516_v33 = vpack.c.bf16 %v2452_v32, %v2452_v32  ;;  %v2250_v15 = vsel %vm1799_vm2, %v6659_v46, 0.0  ;;  %v6670_v17 = vpop.eup %5174  ;;  %5180 = vrcp.f32 %v2234_v4  ;;  %v7849_v39 = vld [vmem:[#allocation6_spill] sm:$0xff] }
 0x2e2   :  { %v2517_v55 = vpack.c.bf16 %v2453_v53, %v2453_v53  ;;  %v2256_v35 = vsel %vm1799_vm2, %v6670_v17, 0.0  ;;  %v2028_v32 = vsub.f32 %v7849_v39, %v6602_v6 }
 0x2e3   :  { %v2720_v51 = vunpack.c.l.b16 %v2516_v33  ;;  %v6682_v14 = vpop.eup %5176 }
 0x2e4   :  { %v2721_v40 = vunpack.c.l.b16 %v2517_v55  ;;  %2251 = vadd.xlane.f32.xlu2 %v2250_v15  ;;  %v2259_v6 = vsel %vm1799_vm2, %v6682_v14, 0.0 }
 0x2e5   :  { %v5179_v33 = vpop.eup %5178 }
 0x2e6   :  { %v2722_v58 = vpack.c.b16 %v2721_v40, %v2720_v51  ;;  %v6666_v0 = vpop.xlane.xlu2 %1915  ;;  %v2128_v51 = vmul.f32 1.442695, %v2028_v32  ;;  %v2454_v4 = vmul.f32 %v5179_v33, %v6463_v47 }
 0x2e7   :  { %v6668_v62 = vpop.xlane.xlu0 %2284  ;;  %v5181_v49 = vpop.eup %5180 }
 0x2e8   :  { %4609 = vmatmul.msk.bf16.vlgmr.msrb.gmra.mxu2 %vm1799_vm2, %v2722_v58  ;;  %2923 = vrot.lane.b32.xlu0 %v7848_v59, %s5427_s27  ;;  %v6676_v30 = vpop.xlane.xlu1 %1939  ;;  %v2456_v15 = vmul.f32 %v5181_v49, %v6470_v24 }
 0x2ea   :  { %v2520_v47 = vpack.c.bf16 %v2456_v15, %v2456_v15 }
 0x2ec   :  { %2257 = vadd.xlane.f32.xlu2 %v2256_v35  ;;  %v2518_v35 = vpack.c.bf16 %v2454_v4, %v2454_v4  ;;  %v2770_v31 = vunpack.c.l.b16 %v2520_v47  ;;  %v2116_v4 = vmul.f32 1.442695, %v2022_v16 }
 0x2ee   :  { %v2231_v53 = vpop.xlane.xlu2 %2230 }
 0x2ef   :  { %5182 = vrcp.f32 %v2231_v53  ;;  %v2237_v55 = vpop.xlane.xlu0 %2236  ;;  %v2142_v53 = vmul.f32 1.442695, %v2035_v37  ;;  %v2023_v37 = vsub.f32 %v6424_v10, %v6631_v7  ;;  %v2029_v10 = vsub.f32 %v6447_v45, %v6646_v42  ;;  %v7852_v45 = vld [vmem:[#allocation7_spill] sm:$0xff] }
 0x2f0   :  { %5184 = vrcp.f32 %v2237_v55  ;;  %v6692_v58 = vpop.xlane.xlu1 %1957  ;;  %v2034_v42 = vsub.f32 %v7852_v45, %v6590_v3 }
 0x2f1   :  { %5186 = vpow2.f32 %v2114_v1  ;;  %v2118_v47 = vmul.f32 1.442695, %v2023_v37  ;;  %v2130_v16 = vmul.f32 1.442695, %v2029_v10 }
 0x2f2   :  { %5188 = vpow2.f32 %v2128_v51  ;;  %v2745_v51 = vunpack.c.l.b16 %v2518_v35 }
 0x2f3   :  { %5190 = vpow2.f32 %v2126_v36 }
 0x2f4   :  { %2260 = vadd.xlane.f32.xlu2 %v2259_v6  ;;  %5192 = vpow2.f32 %v2142_v53 }
 0x2f5   :  { %v5183_v40 = vpop.eup %5182  ;;  %5194 = vpow2.f32 %v2116_v4 }
 0x2f6   :  { %v5185_v59 = vpop.eup %5184  ;;  %v2455_v43 = vmul.f32 %v5183_v40, %v6498_v25  ;;  %v6695_v39 = vpop.xlane.xlu2 %1918  ;;  %5196 = vrcp.f32 %v6668_v62 }
 0x2f7   :  { %v2457_v24 = vmul.f32 %v5185_v59, %v6503_v28  ;;  %v6698_v32 = vpop.xlane.xlu0 %1942  ;;  %v6700_v1 = vpop.eup %5186 }
 0x2f8   :  { %v2519_v33 = vpack.c.bf16 %v2455_v43, %v2455_v43  ;;  %v6704_v49 = vpop.eup %5188  ;;  %v2271_v28 = vsel %vm1799_vm2, %v6700_v1, 0.0  ;;  %v2243_v59 = vpop.xlane.xlu1 %2242 }
 0x2f9   :  { %v2521_v55 = vpack.c.bf16 %v2457_v24, %v2457_v24  ;;  %v2292_v52 = vsel %vm1799_vm2, %v6704_v49, 0.0  ;;  %v6718_v35 = vpop.eup %5190  ;;  %5198 = vrcp.f32 %v2243_v59 }
 0x2fa   :  { %v2746_v25 = vunpack.c.l.b16 %v2519_v33  ;;  %v6721_v43 = vpop.eup %5192  ;;  %v2289_v7 = vsel %vm1799_vm2, %v6718_v35, 0.0  ;;  %5200 = vpow2.f32 %v2118_v47 }
 0x2fb   :  { %v2771_v54 = vunpack.c.l.b16 %v2521_v55  ;;  %v2313_v24 = vsel %vm1799_vm2, %v6721_v43, 0.0  ;;  %v6729_v44 = vpop.eup %5194 }
 0x2fc   :  { %v2747_v15 = vpack.c.b16 %v2746_v25, %v2745_v51  ;;  %2272 = vadd.xlane.f32.xlu2 %v2271_v28  ;;  %v5197_v62 = vpop.eup %5196  ;;  %v2140_v28 = vmul.f32 1.442695, %v2034_v42 }
 0x2fd   :  { %v2772_v6 = vpack.c.b16 %v2771_v54, %v2770_v31  ;;  %v2473_v51 = vmul.f32 %v5197_v62, %v6488_v12  ;;  %v2274_v31 = vsel %vm1799_vm2, %v6729_v44, 0.0 }
 0x2fe   :  { %4610 = vmatmul.msk.bf16.vlgmr.msrb.gmra.mxu3 %vm1799_vm2, %v2747_v15  ;;  %v6713_v40 = vpop.xlane.xlu2 %1936  ;;  %2293 = vadd.xlane.f32.xlu1 %v2292_v52 }
 0x2ff   :  { %4611 = vmatmul.msk.bf16.vlgmr.msrb.gmra.mxu0 %vm1799_vm2, %v2772_v6  ;;  %v6716_v36 = vpop.xlane.xlu0 %1960  ;;  %v5199_v55 = vpop.eup %5198  ;;  %v2537_v6 = vpack.c.bf16 %v2473_v51, %v2473_v51 }
 0x300   :  { %v2459_v25 = vmul.f32 %v5199_v55, %v6518_v20  ;;  %v6737_v54 = vpop.eup %5200  ;;  %v7853_v20 = vld [vmem:[#allocation33_spill] sm:$0xff] }
 0x301   :  { %v2041_v47 = vsub.f32 %v7853_v20, %v6613_v27  ;;  %v7856_v20 = vld [vmem:[#allocation11_spill] sm:$0xff] }
 0x302   :  { %v2523_v3 = vpack.c.bf16 %v2459_v25, %v2459_v25 }
 0x304   :  { %2290 = vadd.xlane.f32.xlu2 %v2289_v7 }
 0x306   :  { %v2282_v53 = vpop.xlane.xlu2 %2281  ;;  %2314 = vadd.xlane.f32.xlu1 %v2313_v24  ;;  %v2277_v24 = vsel %vm1799_vm2, %v6737_v54, 0.0 }
 0x307   :  { %5202 = vrcp.f32 %v2282_v53  ;;  %v2240_v33 = vpop.xlane.xlu0 %2239 }
 0x308   :  { %5204 = vrcp.f32 %v2240_v33  ;;  %v2154_v33 = vmul.f32 1.442695, %v2041_v47  ;;  %v7857_v47 = vld [vmem:[#allocation18_spill] sm:$0xff] }
 0x309   :  { %5206 = vpow2.f32 %v2130_v16  ;;  %v6747_v16 = vunpack.c.l.b16 %v2537_v6 }
 0x30a   :  { %5208 = vpow2.f32 %v2140_v28  ;;  %v7854_v28 = vld [vmem:[#allocation17_spill] sm:$0xff] }
 0x30b   :  { %5210 = vpow2.f32 %v2154_v33 }
 0x30c   :  { %2275 = vadd.xlane.f32.xlu2 %v2274_v31 }
 0x30d   :  { %v5203_v4 = vpop.eup %5202 }
 0x30e   :  { %v5205_v15 = vpop.eup %5204  ;;  %v2472_v52 = vmul.f32 %v5203_v4, %v6546_v29  ;;  %v2899_v37 = vpop.permute.xlu2 %2898  ;;  %v2796_v29 = vunpack.c.l.b16 %v2523_v3 }
 0x30f   :  { %v2458_v59 = vmul.f32 %v5205_v15, %v6548_v61  ;;  %2911 = vmatpush.bf16.msra.mxu1 %v2899_v37  ;;  %v6741_v12 = vpop.eup %5206  ;;  %v2246_v25 = vpop.xlane.xlu0 %2245  ;;  %v7855_v37 = vld [vmem:[#allocation3_spill] sm:$0xff] }
 0x310   :  { %v2536_v10 = vpack.c.bf16 %v2472_v52, %v2472_v52  ;;  %v2295_v61 = vsel %vm1799_vm2, %v6741_v12, 0.0  ;;  %v6755_v45 = vpop.eup %5208 }
 0x311   :  { %v2522_v7 = vpack.c.bf16 %v2458_v59, %v2458_v59  ;;  %v2310_v51 = vsel %vm1799_vm2, %v6755_v45, 0.0  ;;  %v6760_v31 = vpop.eup %5210 }
 0x312   :  { %v6749_v53 = vunpack.c.l.b16 %v2536_v10  ;;  %2278 = vadd.xlane.f32.xlu0 %v2277_v24  ;;  %v2331_v15 = vsel %vm1799_vm2, %v6760_v31, 0.0  ;;  %v2030_v10 = vsub.f32 %v6484_v2, %v6666_v0 }
 0x313   :  { %v2795_v62 = vunpack.c.l.b16 %v2522_v7 }
 0x314   :  { %v2972_v55 = vpack.c.b16 %v6747_v16, %v6749_v53  ;;  %2296 = vadd.xlane.f32.xlu2 %v2295_v61 }
 0x315   :  { %v2797_v27 = vpack.c.b16 %v2796_v29, %v2795_v62  ;;  %v2132_v29 = vmul.f32 1.442695, %v2030_v10 }
 0x316   :  { %v2974_v42 = vpop.permute.xlu2 %2973  ;;  %v6764_v4 = vpop.xlane.xlu1 %2269 }
 0x317   :  { %4612 = vmatmul.msk.bf16.vlgmr.msrb.gmra.mxu1 %vm1799_vm2, %v2797_v27  ;;  %2986 = vmatpush.bf16.msrb.mxu0 %v2974_v42  ;;  %v2255_v6 = vpop.xlane.xlu0 %2254 }
 0x31a   :  { %2311 = vadd.xlane.f32.xlu0 %v2310_v51 }
 0x31e   :  { %v2267_v52 = vpop.xlane.xlu1 %2266 }
 0x31f   :  { %2948 = vrot.lane.b32.xlu1 %v7854_v28, %s5427_s27  ;;  %v6770_v3 = vpop.xlane.xlu0 %2287  ;;  %5212 = vrcp.f32 %v2267_v52 }
 0x322   :  { %2332 = vadd.xlane.f32.xlu0 %v2331_v15 }
 0x325   :  { %v5213_v24 = vpop.eup %5212 }
 0x326   :  { %v2306_v59 = vpop.xlane.xlu1 %2305  ;;  %v2467_v62 = vmul.f32 %v5213_v24, %v6578_v23 }
 0x328   :  { %v2531_v27 = vpack.c.bf16 %v2467_v62, %v2467_v62 }
 0x32a   :  { %v2896_v52 = vunpack.c.l.b16 %v2531_v27 }
 0x32c   :  { %2998 = vrot.lane.b32.xlu2 %v7855_v37, %s5427_s27 }
 0x32e   :  { %v6779_v33 = vpop.xlane.xlu1 %1963 }
 0x334   :  { %3073 = vrot.lane.b32.xlu2 %v7856_v20, %s5427_s27 }
 0x336   :  { %3023 = vrot.lane.b32.xlu0 %v7857_v47, %s5427_s27 }
 0x337   :  { %v2264_v7 = vpop.xlane.xlu0 %2263 }
 0x338   :  { %5214 = vrcp.f32 %v2264_v7 }
 0x339   :  { %5216 = vrcp.f32 %v2306_v59 }
 0x33a   :  { %5218 = vpow2.f32 %v2132_v29 }
 0x33e   :  { %v5215_v61 = vpop.eup %5214 }
 0x33f   :  { %v2466_v42 = vmul.f32 %v5215_v61, %v6616_v9  ;;  %v2309_v51 = vpop.xlane.xlu0 %2308  ;;  %v5217_v28 = vpop.eup %5216 }
 0x340   :  { %5220 = vrcp.f32 %v2309_v51  ;;  %v2480_v2 = vmul.f32 %v5217_v28, %v6588_v63  ;;  %v6783_v37 = vpop.eup %5218  ;;  %v7858_v63 = vld [vmem:[#allocation4_spill] sm:$0xff] }
 0x341   :  { %v2530_v15 = vpack.c.bf16 %v2466_v42, %v2466_v42  ;;  %v2298_v9 = vsel %vm1799_vm2, %v6783_v37, 0.0  ;;  %5222 = vrcp.f32 %v2246_v25  ;;  %v2040_v24 = vsub.f32 %v7858_v63, %v6544_v5 }
 0x342   :  { %v2544_v47 = vpack.c.bf16 %v2480_v2, %v2480_v2  ;;  %v2036_v25 = vsub.f32 %v6468_v38, %v6657_v48  ;;  %v2037_v48 = vsub.f32 %v6530_v56, %v6713_v40 }
 0x343   :  { %v2895_v0 = vunpack.c.l.b16 %v2530_v15  ;;  %v2152_v27 = vmul.f32 1.442695, %v2040_v24 }
 0x344   :  { %v6791_v29 = vunpack.c.l.b16 %v2544_v47  ;;  %v2144_v2 = vmul.f32 1.442695, %v2036_v25  ;;  %v2146_v63 = vmul.f32 1.442695, %v2037_v48 }
 0x345   :  { %v2897_v59 = vpack.c.b16 %v2896_v52, %v2895_v0 }
 0x346   :  { %v5221_v20 = vpop.eup %5220  ;;  %v2849_v23 = vpop.permute.xlu1 %2848 }
 0x347   :  { %v2481_v10 = vmul.f32 %v5221_v20, %v6620_v18  ;;  %4616 = vmatmul.msk.bf16.vlgmr.msra.gmra.mxu1 %vm1799_vm2, %v2897_v59  ;;  %2861 = vmatpush.bf16.msra.mxu3 %v2849_v23  ;;  %v2031_v18 = vsub.f32 %v6514_v50, %v6695_v39  ;;  %v5223_v51 = vpop.eup %5222  ;;  %v6801_v5 = vpop.xlane.xlu0 %1966 }
 0x348   :  { %v2460_v15 = vmul.f32 %v5223_v51, %v6558_v13 }
 0x349   :  { %v2545_v7 = vpack.c.bf16 %v2481_v10, %v2481_v10  ;;  %2299 = vadd.xlane.f32.xlu1 %v2298_v9  ;;  %v2134_v28 = vmul.f32 1.442695, %v2031_v18 }
 0x34a   :  { %v2524_v0 = vpack.c.bf16 %v2460_v15, %v2460_v15 }
 0x34b   :  { %v6793_v62 = vunpack.c.l.b16 %v2545_v7 }
 0x34d   :  { %v3072_v61 = vpack.c.b16 %v6793_v62, %v6791_v29 }
 0x34f   :  { %v2249_v42 = vpop.xlane.xlu2 %2248 }
 0x350   :  { %5224 = vrcp.f32 %v2249_v42  ;;  %v7859_v42 = vld [vmem:[#allocation19_spill] sm:$0xff] }
 0x351   :  { %5226 = vrcp.f32 %v2255_v6  ;;  %v2820_v6 = vunpack.c.l.b16 %v2524_v0  ;;  %v1632_v0 = vpop.f32.mrf.mxu0 }
 0x352   :  { %5228 = vpow2.f32 %v2152_v27 }
 0x353   :  { %5230 = vpow2.f32 %v2134_v28 }
 0x356   :  { %v5225_v52 = vpop.eup %5224 }
 0x357   :  { %v2461_v50 = vmul.f32 %v5225_v52, %v6649_v57  ;;  %v2252_v39 = vpop.xlane.xlu2 %2251  ;;  %v5227_v59 = vpop.eup %5226 }
 0x358   :  { %5232 = vrcp.f32 %v2252_v39  ;;  %v6805_v20 = vpop.eup %5228  ;;  %v2463_v13 = vmul.f32 %v5227_v59, %v6565_v60 }
 0x359   :  { %v2525_v23 = vpack.c.bf16 %v2461_v50, %v2461_v50  ;;  %5234 = vpow2.f32 %v2144_v2  ;;  %v6810_v10 = vpop.eup %5230  ;;  %v2328_v57 = vsel %vm1799_vm2, %v6805_v20, 0.0 }
 0x35a   :  { %v2924_v38 = vpop.permute.xlu0 %2923  ;;  %v2527_v24 = vpack.c.bf16 %v2463_v13, %v2463_v13  ;;  %v2301_v56 = vsel %vm1799_vm2, %v6810_v10, 0.0  ;;  %v6835_v13 = vld [vmem:[%s7749_s2 + $0x30] sm:$0xff] }
 0x35b   :  { %v2821_v47 = vunpack.c.l.b16 %v2525_v23  ;;  %2936 = vmatpush.bf16.msrb.mxu2 %v2924_v38 }
 0x35c   :  { %v2846_v51 = vunpack.c.l.b16 %v2527_v24  ;;  %v1634_v24 = vpop.f32.mrf.mxu0 }
 0x35d   :  { %v2822_v9 = vpack.c.b16 %v2821_v47, %v2820_v6  ;;  %2329 = vadd.xlane.f32.xlu2 %v2328_v57  ;;  %v2042_v47 = vsub.f32 %v6432_v8, %v6637_v34 }
 0x35e   :  { %v5233_v7 = vpop.eup %5232 }
 0x35f   :  { %v2462_v18 = vmul.f32 %v5233_v7, %v6659_v46  ;;  %v2258_v27 = vpop.xlane.xlu2 %2257  ;;  %4613 = vmatmul.msk.bf16.vlgmr.msra.gmra.mxu2 %vm1799_vm2, %v2822_v9  ;;  %v6818_v60 = vpop.eup %5234 }
 0x360   :  { %2302 = vadd.xlane.f32.xlu0 %v2301_v56  ;;  %5236 = vrcp.f32 %v2258_v27  ;;  %v2316_v46 = vsel %vm1799_vm2, %v6818_v60, 0.0  ;;  %v2156_v56 = vmul.f32 1.442695, %v2042_v47 }
 0x361   :  { %v2526_v40 = vpack.c.bf16 %v2462_v18, %v2462_v18  ;;  %5238 = vpow2.f32 %v2146_v63 }
 0x362   :  { %3098 = vrot.lane.b32.xlu1 %v7859_v42, %s5427_s27 }
 0x363   :  { %v2845_v25 = vunpack.c.l.b16 %v2526_v40 }
 0x365   :  { %v2847_v28 = vpack.c.b16 %v2846_v51, %v2845_v25  ;;  %2317 = vadd.xlane.f32.xlu2 %v2316_v46  ;;  %v2038_v25 = vsub.f32 %v6486_v21, %v6676_v30  ;;  %v7861_v46 = vld [vmem:[#allocation32_spill] sm:$0xff] }
 0x366   :  { %v5237_v52 = vpop.eup %5236 }
 0x367   :  { %v2261_v15 = vpop.xlane.xlu2 %2260  ;;  %4614 = vmatmul.msk.bf16.vlgmr.msra.gmra.mxu3 %vm1799_vm2, %v2847_v28  ;;  %v6825_v2 = vpop.eup %5238  ;;  %v2464_v50 = vmul.f32 %v5237_v52, %v6670_v17  ;;  %v2043_v28 = vsub.f32 %v7861_v46, %v6611_v11  ;;  %v7862_v52 = vld [vmem:[#allocation21_spill] sm:$0xff] }
 0x368   :  { %5240 = vrcp.f32 %v2261_v15  ;;  %v2319_v39 = vsel %vm1799_vm2, %v6825_v2, 0.0 }
 0x369   :  { %5242 = vrcp.f32 %v6764_v4  ;;  %v2528_v23 = vpack.c.bf16 %v2464_v50, %v2464_v50  ;;  %v6838_v4 = vadd.f32 %v6835_v13, %v1632_v0 }
 0x36b   :  { %v2870_v9 = vunpack.c.l.b16 %v2528_v23  ;;  %v1968_v63 = vsel %vm1799_vm2, %v6838_v4, -inf }
 0x36d   :  { %2320 = vadd.xlane.f32.xlu2 %v2319_v39  ;;  %v2148_v39 = vmul.f32 1.442695, %v2038_v25 }
 0x36e   :  { %v5241_v59 = vpop.eup %5240 }
 0x36f   :  { %v2465_v38 = vmul.f32 %v5241_v59, %v6682_v14  ;;  %v2273_v48 = vpop.xlane.xlu2 %2272  ;;  %v5243_v6 = vpop.eup %5242  ;;  %v7860_v14 = vld [vmem:[#allocation15_spill] sm:$0xff]  ;;  %v2158_v59 = vmul.f32 1.442695, %v2043_v28 }
 0x370   :  { %5244 = vrcp.f32 %v2273_v48  ;;  %v2468_v57 = vmul.f32 %v5243_v6, %v6567_v19  ;;  %v6852_v19 = vld [vmem:[%s7749_s2 + $0x38] sm:$0xff]  ;;  %s5428_s2 = smov 16  }
 0x371   :  { %v2529_v17 = vpack.c.bf16 %v2465_v38, %v2465_v38  ;;  %v6855_v34 = vadd.f32 %v6852_v19, %v1634_v24  ;;  %5246 = vpow2.f32 %v2156_v56  ;;  %v2294_v21 = vpop.xlane.xlu1 %2293  ;;  %v2045_v38 = vsub.f32 %v6535_v22, %v6716_v36 }
 0x372   :  { %v2532_v40 = vpack.c.bf16 %v2468_v57, %v2468_v57 }
 0x373   :  { %v2871_v7 = vunpack.c.l.b16 %v2529_v17  ;;  %v1971_v0 = vsel %vm1799_vm2, %v6855_v34, -inf  ;;  %v2162_v57 = vmul.f32 1.442695, %v2045_v38 }
 0x374   :  { %3173 = vrot.lane.b32.xlu0 %v7860_v14, %s5427_s27 }
 0x375   :  { %v2872_v18 = vpack.c.b16 %v2871_v7, %v2870_v9  ;;  %1969 = vmax.xlane.f32.xlu2 %v1968_v63  ;;  %v7863_v9 = vld [vmem:[#allocation13_spill] sm:$0xff] }
 0x376   :  { %v5245_v27 = vpop.eup %5244 }
 0x377   :  { %v2469_v42 = vmul.f32 %v5245_v27, %v6700_v1  ;;  %4615 = vmatmul.msk.bf16.vlgmr.msra.gmra.mxu0 %vm1799_vm2, %v2872_v18  ;;  %v2291_v8 = vpop.xlane.xlu2 %2290  ;;  %v2920_v1 = vunpack.c.l.b16 %v2532_v40  ;;  %v6867_v11 = vpop.eup %5246 }
 0x378   :  { %5248 = vrcp.f32 %v2291_v8  ;;  %v2334_v6 = vsel %vm1799_vm2, %v6867_v11, 0.0  ;;  %v1662_v18 = vpop.f32.mrf.mxu1 }
 0x379   :  { %v2533_v51 = vpack.c.bf16 %v2469_v42, %v2469_v42  ;;  %5250 = vrcp.f32 %v6770_v3  ;;  %v6883_v24 = vpop.xlane.xlu1 %2314 }
 0x37b   :  { %v2921_v15 = vunpack.c.l.b16 %v2533_v51 }
 0x37c   :  { %3123 = vrot.lane.b32.xlu0 %v7862_v52, %s5427_s27 }
 0x37d   :  { %v2922_v50 = vpack.c.b16 %v2921_v15, %v2920_v1  ;;  %1972 = vmax.xlane.f32.xlu2 %v1971_v0 }
 0x37e   :  { %v5249_v23 = vpop.eup %5248 }
 0x37f   :  { %v2276_v30 = vpop.xlane.xlu2 %2275  ;;  %4617 = vmatmul.msk.bf16.vlgmr.msrb.gmra.mxu2 %vm1799_vm2, %v2922_v50  ;;  %v5251_v48 = vpop.eup %5250  ;;  %v2475_v3 = vmul.f32 %v5249_v23, %v6718_v35 }
 0x380   :  { %5252 = vrcp.f32 %v2276_v30  ;;  %v2474_v7 = vmul.f32 %v5251_v48, %v7863_v9  ;;  %v1664_v50 = vpop.f32.mrf.mxu1 }
 0x381   :  { %5254 = vpow2.f32 %v2148_v39  ;;  %v2539_v63 = vpack.c.bf16 %v2475_v3, %v2475_v3  ;;  %v6900_v30 = vadd.f32 %v6852_v19, %v1664_v50 }
 0x382   :  { %5256 = vpow2.f32 %v2158_v59  ;;  %v2538_v27 = vpack.c.bf16 %v2474_v7, %v2474_v7  ;;  %v7865_v7 = vld [vmem:[#allocation23_spill] sm:$0xff] }
 0x383   :  { %v2996_v53 = vunpack.c.l.b16 %v2539_v63 }
 0x384   :  { %v2995_v8 = vunpack.c.l.b16 %v2538_v27 }
 0x385   :  { %v2279_v17 = vpop.xlane.xlu0 %2278  ;;  %2335 = vadd.xlane.f32.xlu2 %v2334_v6  ;;  %v1692_v6 = vpop.f32.mrf.mxu2 }
 0x386   :  { %v5253_v47 = vpop.eup %5252  ;;  %5258 = vrcp.f32 %v2279_v17  ;;  %v2997_v46 = vpack.c.b16 %v2996_v53, %v2995_v8 }
 0x387   :  { %4619 = vmatmul.msk.bf16.vlgmr.msrb.gmra.mxu0 %vm1799_vm2, %v2972_v55  ;;  %v2297_v22 = vpop.xlane.xlu2 %2296  ;;  %v6879_v36 = vpop.eup %5254  ;;  %v2470_v35 = vmul.f32 %v5253_v47, %v6729_v44  ;;  %5260 = vpow2.f32 %v2162_v57 }
 0x388   :  { %v6881_v14 = vpop.eup %5256  ;;  %v2322_v56 = vsel %vm1799_vm2, %v6879_v36, 0.0  ;;  %5262 = vrcp.f32 %v2297_v22 }
 0x389   :  { %v2337_v16 = vsel %vm1799_vm2, %v6881_v14, 0.0  ;;  %v2534_v55 = vpack.c.bf16 %v2470_v35, %v2470_v35  ;;  %5264 = vrcp.f32 %v2294_v21  ;;  %v6910_v21 = vadd.f32 %v6835_v13, %v1692_v6 }
 0x38b   :  { %v2945_v28 = vunpack.c.l.b16 %v2534_v55  ;;  %v1980_v62 = vsel %vm1799_vm2, %v6910_v21, -inf  ;;  %v7867_v55 = vld [vmem:[#allocation26_spill] sm:$0xff] }
 0x38c   :  { %v5259_v40 = vpop.eup %5258  ;;  %2323 = vadd.xlane.f32.xlu1 %v2322_v56 }
 0x38d   :  { %v2471_v42 = vmul.f32 %v5259_v40, %v6737_v54  ;;  %2338 = vadd.xlane.f32.xlu2 %v2337_v16  ;;  %v6891_v44 = vpop.eup %5260  ;;  %v7864_v54 = vld [vmem:[#allocation10_spill] sm:$0xff]  ;;  %v2312_v59 = vpop.xlane.xlu0 %2311  ;;  %v7866_v16 = vld [vmem:[#allocation9_spill] sm:$0xff] }
 0x38e   :  { %v2343_v0 = vsel %vm1799_vm2, %v6891_v44, 0.0  ;;  %v2039_v39 = vsub.f32 %v7864_v54, %v6698_v32  ;;  %v5263_v48 = vpop.eup %5262  ;;  %v1977_v32 = vsel %vm1799_vm2, %v6900_v30, -inf  ;;  %v1722_v40 = vpop.f32.mrf.mxu3  ;;  %v2044_v53 = vsub.f32 %v7866_v16, %v6692_v58 }
 0x38f   :  { %v2535_v51 = vpack.c.bf16 %v2471_v42, %v2471_v42  ;;  %v2999_v25 = vpop.permute.xlu2 %2998  ;;  %v5265_v3 = vpop.eup %5264  ;;  %v2477_v17 = vmul.f32 %v5263_v48, %v6741_v12 }
 0x390   :  { %3011 = vmatpush.bf16.msrb.mxu1 %v2999_v25  ;;  %v2150_v38 = vmul.f32 1.442695, %v2039_v39  ;;  %v2476_v47 = vmul.f32 %v5265_v3, %v6704_v49  ;;  %v6922_v49 = vadd.f32 %v6835_v13, %v1662_v18  ;;  %v2160_v8 = vmul.f32 1.442695, %v2044_v53  ;;  %v7868_v18 = vld [vmem:[#allocation22_spill] sm:$0xff] }
 0x391   :  { %v2946_v1 = vunpack.c.l.b16 %v2535_v51  ;;  %v2949_v15 = vpop.permute.xlu1 %2948  ;;  %v2541_v29 = vpack.c.bf16 %v2477_v17, %v2477_v17  ;;  %v1694_v51 = vpop.f32.mrf.mxu2 }
 0x392   :  { %2961 = vmatpush.bf16.msrb.mxu3 %v2949_v15  ;;  %5266 = vpow2.f32 %v2150_v38  ;;  %v1974_v56 = vsel %vm1799_vm2, %v6922_v49, -inf }
 0x393   :  { %v2947_v52 = vpack.c.b16 %v2946_v1, %v2945_v28  ;;  %4620 = vmatmul.msk.bf16.vlgmr.msrb.gmra.mxu1 %vm1799_vm2, %v2997_v46  ;;  %v3021_v22 = vunpack.c.l.b16 %v2541_v29  ;;  %5268 = vrcp.f32 %v2312_v59  ;;  %v2046_v29 = vsub.f32 %v6600_v26, %v6779_v33 }
 0x394   :  { %2344 = vadd.xlane.f32.xlu1 %v2343_v0  ;;  %5270 = vrcp.f32 %v6883_v24 }
 0x395   :  { %4618 = vmatmul.msk.bf16.vlgmr.msrb.gmra.mxu3 %vm1799_vm2, %v2947_v52  ;;  %v2333_v57 = vpop.xlane.xlu0 %2332  ;;  %5272 = vpow2.f32 %v2160_v8 }
 0x396   :  { %v6931_v42 = vpop.f32.mrf.mxu3 }
 0x397   :  { %v3074_v23 = vpop.permute.xlu2 %3073 }
 0x398   :  { %3086 = vmatpush.bf16.msra.mxu0 %v3074_v23  ;;  %v6913_v9 = vpop.eup %5266  ;;  %v6951_v23 = vadd.f32 %v6852_v19, %v1694_v51 }
 0x399   :  { %v2325_v12 = vsel %vm1799_vm2, %v6913_v9, 0.0  ;;  %v5269_v46 = vpop.eup %5268  ;;  %v6941_v15 = vpop.f32.mrf.mxu2 }
 0x39a   :  { %v5271_v28 = vpop.eup %5270  ;;  %v2482_v58 = vmul.f32 %v5269_v46, %v6755_v45 }
 0x39b   :  { %4623 = vmatmul.msk.bf16.vlgmr.msra.gmra.mxu0 %vm1799_vm2, %v3072_v61  ;;  %v2540_v61 = vpack.c.bf16 %v2476_v47, %v2476_v47  ;;  %v6938_v1 = vpop.eup %5272  ;;  %v2483_v52 = vmul.f32 %v5271_v28, %v6721_v43  ;;  %v1983_v43 = vsel %vm1799_vm2, %v6951_v23, -inf }
 0x39c   :  { %1978 = vmax.xlane.f32.xlu1 %v1977_v32  ;;  %v2340_v50 = vsel %vm1799_vm2, %v6938_v1, 0.0  ;;  %v2546_v24 = vpack.c.bf16 %v2482_v58, %v2482_v58 }
 0x39d   :  { %v3020_v63 = vunpack.c.l.b16 %v2540_v61  ;;  %v2547_v39 = vpack.c.bf16 %v2483_v52, %v2483_v52  ;;  %v2164_v61 = vmul.f32 1.442695, %v2046_v29 }
 0x39e   :  { %v6936_v25 = vpop.f32.mrf.mxu3  ;;  %v3095_v38 = vunpack.c.l.b16 %v2546_v24 }
 0x39f   :  { %v3022_v27 = vpack.c.b16 %v3021_v22, %v3020_v63  ;;  %v3096_v45 = vunpack.c.l.b16 %v2547_v39 }
 0x3a1   :  { %v6955_v32 = vpop.f32.mrf.mxu2  ;;  %v3097_v6 = vpack.c.b16 %v3096_v45, %v3095_v38  ;;  %v7869_v38 = vld [vmem:[#allocation25_spill] sm:$0xff] }
 0x3a4   :  { %1981 = vmax.xlane.f32.xlu1 %v1980_v62 }
 0x3a5   :  { %3048 = vrot.lane.b32.xlu2 %v7865_v7, %s5427_s27 }
 0x3a6   :  { %2326 = vadd.xlane.f32.xlu0 %v2325_v12  ;;  %v6948_v54 = vpop.f32.mrf.mxu3 }
 0x3a8   :  { %v3024_v35 = vpop.permute.xlu0 %3023 }
 0x3a9   :  { %3036 = vmatpush.bf16.msra.mxu2 %v3024_v35  ;;  %v6963_v7 = vpop.f32.mrf.mxu2 }
 0x3ac   :  { %4621 = vmatmul.msk.bf16.vlgmr.msra.gmra.mxu2 %vm1799_vm2, %v3022_v27 }
 0x3ae   :  { %1975 = vmax.xlane.f32.xlu0 %v1974_v56  ;;  %v6957_v3 = vpop.f32.mrf.mxu3  ;;  %v6967_v56 = vadd.f32 %v6835_v13, %v1722_v40 }
 0x3b1   :  { %v6976_v51 = vpop.f32.mrf.mxu2 }
 0x3b6   :  { %v6969_v16 = vpop.f32.mrf.mxu3 }
 0x3bc   :  { %v6944_v0 = vpop.xlane.xlu1 %2299 }
 0x3bd   :  { %3148 = vrot.lane.b32.xlu1 %v7867_v55, %s5427_s27 }
 0x3c2   :  { %3198 = vrot.lane.b32.xlu0 %v7868_v18, %s5427_s27 }
 0x3ce   :  { %2341 = vadd.xlane.f32.xlu2 %v2340_v50 }
 0x3d0   :  { %v2330_v59 = vpop.xlane.xlu2 %2329 }
 0x3d1   :  { %5274 = vrcp.f32 %v2330_v59 }
 0x3d2   :  { %5276 = vrcp.f32 %v2333_v57 }
 0x3d3   :  { %v2303_v22 = vpop.xlane.xlu0 %2302 }
 0x3d4   :  { %v3099_v48 = vpop.permute.xlu1 %3098 }
 0x3d5   :  { %3111 = vmatpush.bf16.msra.mxu1 %v3099_v48 }
 0x3d6   :  { %1984 = vmax.xlane.f32.xlu2 %v1983_v43 }
 0x3d7   :  { %v5275_v47 = vpop.eup %5274 }
 0x3d8   :  { %v2318_v17 = vpop.xlane.xlu2 %2317  ;;  %4624 = vmatmul.msk.bf16.vlgmr.msra.gmra.mxu1 %vm1799_vm2, %v3097_v6  ;;  %v5277_v62 = vpop.eup %5276  ;;  %v2488_v57 = vmul.f32 %v5275_v47, %v6805_v20 }
 0x3d9   :  { %5278 = vrcp.f32 %v2318_v17  ;;  %v2489_v12 = vmul.f32 %v5277_v62, %v6760_v31  ;;  %v1986_v31 = vsel %vm1799_vm2, %v6967_v56, -inf }
 0x3da   :  { %v2552_v63 = vpack.c.bf16 %v2488_v57, %v2488_v57 }
 0x3db   :  { %v2553_v26 = vpack.c.bf16 %v2489_v12, %v2489_v12 }
 0x3dc   :  { %v3170_v33 = vunpack.c.l.b16 %v2552_v63 }
 0x3dd   :  { %v3171_v53 = vunpack.c.l.b16 %v2553_v26 }
 0x3df   :  { %v5279_v27 = vpop.eup %5278  ;;  %v3172_v13 = vpack.c.b16 %v3171_v53, %v3170_v33  ;;  %v2047_v33 = vsub.f32 %v6634_v41, %v6801_v5 }
 0x3e0   :  { %v2321_v35 = vpop.xlane.xlu2 %2320  ;;  %v2484_v20 = vmul.f32 %v5279_v27, %v6818_v60 }
 0x3e1   :  { %5280 = vrcp.f32 %v2321_v35 }
 0x3e2   :  { %5282 = vpow2.f32 %v2164_v61  ;;  %v2548_v40 = vpack.c.bf16 %v2484_v20, %v2484_v20  ;;  %v6990_v45 = vpop.f32.mrf.mxu2 }
 0x3e3   :  { %5284 = vrcp.f32 %v2303_v22 }
 0x3e4   :  { %v3120_v50 = vunpack.c.l.b16 %v2548_v40 }
 0x3e6   :  { %v3174_v55 = vpop.permute.xlu0 %3173 }
 0x3e7   :  { %v5281_v8 = vpop.eup %5280  ;;  %3186 = vmatpush.bf16.msrb.mxu0 %v3174_v55  ;;  %1987 = vmax.xlane.f32.xlu1 %v1986_v31  ;;  %v7870_v55 = vld [vmem:[#allocation29_spill] sm:$0xff] }
 0x3e8   :  { %v6974_v18 = vpop.eup %5282  ;;  %v2485_v46 = vmul.f32 %v5281_v8, %v6825_v2  ;;  %v1970_v28 = vpop.xlane.xlu2 %1969  ;;  %v6988_v2 = vadd.f32 %v6852_v19, %v6931_v42  ;;  %v2166_v8 = vmul.f32 1.442695, %v2047_v33 }
 0x3e9   :  { %v2346_v52 = vsel %vm1799_vm2, %v6974_v18, 0.0  ;;  %v5285_v42 = vpop.eup %5284  ;;  %v2048_v41 = vsub.f32 %v6838_v4, %v1970_v28 }
 0x3ea   :  { %v2549_v58 = vpack.c.bf16 %v2485_v46, %v2485_v46  ;;  %4627 = vmatmul.msk.bf16.vlgmr.msrb.gmra.mxu0 %vm1799_vm2, %v3172_v13  ;;  %v6980_v60 = vpop.f32.mrf.mxu3  ;;  %v1989_v29 = vsel %vm1799_vm2, %v6988_v2, -inf  ;;  %v7001_v62 = vpop.f32.mrf.mxu2  ;;  %v2479_v12 = vmul.f32 %v5285_v42, %v6810_v10 }
 0x3eb   :  { %v7015_v10 = vpop.f32.mrf.mxu0  ;;  %v2168_v46 = vmul.f32 1.442695, %v2048_v41 }
 0x3ec   :  { %v3121_v24 = vunpack.c.l.b16 %v2549_v58  ;;  %2347 = vadd.xlane.f32.xlu0 %v2346_v52  ;;  %v2543_v35 = vpack.c.bf16 %v2479_v12, %v2479_v12 }
 0x3ee   :  { %v3122_v39 = vpack.c.b16 %v3121_v24, %v3120_v50  ;;  %v3124_v59 = vpop.permute.xlu0 %3123  ;;  %3223 = vrot.lane.b32.xlu2 %v7869_v38, %s5427_s27  ;;  %v3046_v20 = vunpack.c.l.b16 %v2543_v35 }
 0x3ef   :  { %3136 = vmatpush.bf16.msrb.mxu2 %v3124_v59 }
 0x3f0   :  { %v1973_v48 = vpop.xlane.xlu2 %1972 }
 0x3f1   :  { %v2049_v43 = vsub.f32 %v6855_v34, %v1973_v48 }
 0x3f2   :  { %4625 = vmatmul.msk.bf16.vlgmr.msrb.gmra.mxu2 %vm1799_vm2, %v3122_v39  ;;  %v6994_v6 = vpop.f32.mrf.mxu3 }
 0x3f3   :  { %v2170_v17 = vmul.f32 1.442695, %v2049_v43  ;;  %v5000_v47 = vpack.i.bf16 %v6994_v6, %v6980_v60  ;;  %v7027_v52 = vpop.f32.mrf.mxu0 }
 0x3f4   :  { %1990 = vmax.xlane.f32.xlu0 %v1989_v29 }
 0x3f5   :  { %5286 = vpow2.f32 %v2170_v17 }
 0x3f6   :  { %5288 = vrcp.f32 %v6944_v0 }
 0x3f7   :  { %5290 = vpow2.f32 %v2166_v8 }
 0x3f8   :  { %v2336_v19 = vpop.xlane.xlu2 %2335  ;;  %5292 = vpow2.f32 %v2168_v46 }
 0x3fb   :  { %v7003_v34 = vpop.eup %5286  ;;  %v7033_v38 = vpop.f32.mrf.mxu0 }
 0x3fc   :  { %v2355_v57 = vsel %vm1799_vm2, %v7003_v34, 0.0  ;;  %v5289_v61 = vpop.eup %5288 }
 0x3fd   :  { %2356 = vadd.xlane.f32.xlu1 %v2355_v57  ;;  %v2478_v63 = vmul.f32 %v5289_v61, %v6783_v37  ;;  %v7025_v58 = vpop.eup %5290 }
 0x3fe   :  { %v2349_v50 = vsel %vm1799_vm2, %v7025_v58, 0.0  ;;  %v7031_v59 = vpop.eup %5292 }
 0x3ff   :  { %v2324_v0 = vpop.xlane.xlu1 %2323  ;;  %v2542_v26 = vpack.c.bf16 %v2478_v63, %v2478_v63  ;;  %v2352_v4 = vsel %vm1799_vm2, %v7031_v59, 0.0 }
 0x400   :  { %v2339_v22 = vpop.xlane.xlu2 %2338 }
 0x401   :  { %v3045_v53 = vunpack.c.l.b16 %v2542_v26 }
 0x402   :  { %v7009_v27 = vpop.f32.mrf.mxu2 }
 0x403   :  { %v3047_v37 = vpack.c.b16 %v3046_v20, %v3045_v53  ;;  %v7041_v35 = vpop.f32.mrf.mxu0 }
 0x407   :  { %v7023_v5 = vpop.xlane.xlu1 %2344 }
 0x408   :  { %3248 = vrot.lane.b32.xlu0 %v7870_v55, %s5427_s27  ;;  %v3049_v31 = vpop.permute.xlu2 %3048 }
 0x409   :  { %3061 = vmatpush.bf16.msra.mxu3 %v3049_v31 }
 0x40a   :  { %v7017_v13 = vpop.f32.mrf.mxu2 }
 0x40b   :  { %v5045_v40 = vpack.i.bf16 %v7017_v13, %v7009_v27  ;;  %v7052_v31 = vpop.f32.mrf.mxu0 }
 0x40c   :  { %4622 = vmatmul.msk.bf16.vlgmr.msra.gmra.mxu3 %vm1799_vm2, %v3047_v37 }
 0x40f   :  { %v1979_v24 = vpop.xlane.xlu1 %1978 }
 0x410   :  { %v2051_v28 = vsub.f32 %v6900_v30, %v1979_v24 }
 0x412   :  { %v2174_v57 = vmul.f32 1.442695, %v2051_v28 }
 0x417   :  { %2350 = vadd.xlane.f32.xlu2 %v2349_v50  ;;  %v1982_v48 = vpop.xlane.xlu1 %1981 }
 0x418   :  { %v2052_v61 = vsub.f32 %v6910_v21, %v1982_v48  ;;  %v7061_v48 = vpop.f32.mrf.mxu1 }
 0x419   :  { %v2327_v39 = vpop.xlane.xlu0 %2326 }
 0x41a   :  { %5294 = vrcp.f32 %v2327_v39 }
 0x41b   :  { %5296 = vrcp.f32 %v2324_v0 }
 0x41c   :  { %5298 = vrcp.f32 %v2339_v22  ;;  %v2176_v22 = vmul.f32 1.442695, %v2052_v61 }
 0x41d   :  { %5300 = vrcp.f32 %v2336_v19 }
 0x41f   :  { %2353 = vadd.xlane.f32.xlu2 %v2352_v4 }
 0x420   :  { %v5295_v17 = vpop.eup %5294 }
 0x421   :  { %v1976_v43 = vpop.xlane.xlu0 %1975  ;;  %v5297_v42 = vpop.eup %5296  ;;  %v2487_v63 = vmul.f32 %v5295_v17, %v6913_v9 }
 0x422   :  { %v2050_v29 = vsub.f32 %v6922_v49, %v1976_v43  ;;  %v5299_v0 = vpop.eup %5298  ;;  %v2486_v30 = vmul.f32 %v5297_v42, %v6879_v36  ;;  %v7871_v43 = vld [vmem:[#allocation20_spill] sm:$0xff]  ;;  %v7065_v17 = vpop.f32.mrf.mxu0 }
 0x423   :  { %v5301_v26 = vpop.eup %5300  ;;  %v2551_v33 = vpack.c.bf16 %v2487_v63, %v2487_v63  ;;  %v2491_v49 = vmul.f32 %v5299_v0, %v6881_v14 }
 0x424   :  { %v2172_v12 = vmul.f32 1.442695, %v2050_v29  ;;  %v2550_v19 = vpack.c.bf16 %v2486_v30, %v2486_v30  ;;  %v2490_v21 = vmul.f32 %v5301_v26, %v6867_v11  ;;  %v7872_v29 = vld [vmem:[#allocation27_spill] sm:$0xff] }
 0x425   :  { %v3146_v53 = vunpack.c.l.b16 %v2551_v33  ;;  %v2555_v36 = vpack.c.bf16 %v2491_v49, %v2491_v49 }
 0x426   :  { %5302 = vpow2.f32 %v2172_v12  ;;  %v3145_v8 = vunpack.c.l.b16 %v2550_v19  ;;  %v2554_v41 = vpack.c.bf16 %v2490_v21, %v2490_v21 }
 0x427   :  { %5304 = vpow2.f32 %v2174_v57  ;;  %v3196_v50 = vunpack.c.l.b16 %v2555_v36  ;;  %v7073_v57 = vpop.f32.mrf.mxu1 }
 0x428   :  { %5306 = vpow2.f32 %v2176_v22  ;;  %v3147_v14 = vpack.c.b16 %v3146_v53, %v3145_v8  ;;  %v3195_v24 = vunpack.c.l.b16 %v2554_v41 }
 0x429   :  { %5308 = vrcp.f32 %v7023_v5 }
 0x42a   :  { %v3197_v28 = vpack.c.b16 %v3196_v50, %v3195_v24  ;;  %v7070_v42 = vpop.f32.mrf.mxu0 }
 0x42c   :  { %v7045_v20 = vpop.eup %5302 }
 0x42d   :  { %v2358_v9 = vsel %vm1799_vm2, %v7045_v20, 0.0  ;;  %v7050_v55 = vpop.eup %5304 }
 0x42e   :  { %2359 = vadd.xlane.f32.xlu1 %v2358_v9  ;;  %v2361_v46 = vsel %vm1799_vm2, %v7050_v55, 0.0  ;;  %v7056_v11 = vpop.eup %5306 }
 0x42f   :  { %v3149_v37 = vpop.permute.xlu1 %3148  ;;  %v2364_v4 = vsel %vm1799_vm2, %v7056_v11, 0.0  ;;  %v5309_v12 = vpop.eup %5308 }
 0x430   :  { %3161 = vmatpush.bf16.msrb.mxu3 %v3149_v37  ;;  %v7075_v0 = vpop.f32.mrf.mxu1  ;;  %v2493_v30 = vmul.f32 %v5309_v12, %v6891_v44 }
 0x432   :  { %2362 = vadd.xlane.f32.xlu0 %v2361_v46  ;;  %v7079_v33 = vpop.f32.mrf.mxu0  ;;  %v2557_v5 = vpack.c.bf16 %v2493_v30, %v2493_v30 }
 0x433   :  { %4626 = vmatmul.msk.bf16.vlgmr.msrb.gmra.mxu3 %vm1799_vm2, %v3147_v14 }
 0x434   :  { %v3199_v39 = vpop.permute.xlu0 %3198  ;;  %v3221_v9 = vunpack.c.l.b16 %v2557_v5 }
 0x435   :  { %3211 = vmatpush.bf16.msrb.mxu1 %v3199_v39 }
 0x436   :  { %2365 = vadd.xlane.f32.xlu1 %v2364_v4 }
 0x437   :  { %3273 = vrot.lane.b32.xlu2 %v7871_v43, %s5427_s27 }
 0x438   :  { %4628 = vmatmul.msk.bf16.vlgmr.msrb.gmra.mxu1 %vm1799_vm2, %v3197_v28  ;;  %v7082_v8 = vpop.f32.mrf.mxu1 }
 0x43a   :  { %v2988_v44 = vpop.f32.mrf.mxu0 }
 0x43f   :  { %3298 = vrot.lane.b32.xlu2 %v7872_v29, %s5427_s27 }
 0x440   :  { %v2813_v14 = vpop.f32.mrf.mxu1 }
 0x441   :  { %v2342_v61 = vpop.xlane.xlu2 %2341 }
 0x442   :  { %5310 = vrcp.f32 %v2342_v61  ;;  %v2990_v24 = vpop.f32.mrf.mxu0 }
 0x448   :  { %v5311_v63 = vpop.eup %5310  ;;  %v2815_v28 = vpop.f32.mrf.mxu1 }
 0x449   :  { %v2492_v22 = vmul.f32 %v5311_v63, %v6938_v1  ;;  %v1985_v26 = vpop.xlane.xlu2 %1984 }
 0x44a   :  { %v2053_v49 = vsub.f32 %v6951_v23, %v1985_v26  ;;  %v7092_v43 = vpop.f32.mrf.mxu0 }
 0x44b   :  { %v2556_v19 = vpack.c.bf16 %v2492_v22, %v2492_v22 }
 0x44c   :  { %v2178_v21 = vmul.f32 1.442695, %v2053_v49 }
 0x44d   :  { %v3220_v53 = vunpack.c.l.b16 %v2556_v19 }
 0x44e   :  { %5312 = vpow2.f32 %v2178_v21 }
 0x44f   :  { %v3222_v37 = vpack.c.b16 %v3221_v9, %v3220_v53  ;;  %v4960_v53 = vpack.i.bf16 %v2990_v24, %v2988_v44  ;;  %v7111_v9 = vpop.f32.mrf.mxu3 }
 0x450   :  { %v7097_v30 = vpop.f32.mrf.mxu1 }
 0x451   :  { %v3224_v36 = vpop.permute.xlu2 %3223 }
 0x452   :  { %3236 = vmatpush.bf16.msra.mxu2 %v3224_v36  ;;  %v7101_v22 = vpop.f32.mrf.mxu0  ;;  %v4970_v36 = vpack.i.bf16 %v2815_v28, %v2813_v14 }
 0x454   :  { %v7084_v41 = vpop.eup %5312 }
 0x455   :  { %4629 = vmatmul.msk.bf16.vlgmr.msra.gmra.mxu2 %vm1799_vm2, %v3222_v37  ;;  %v2367_v1 = vsel %vm1799_vm2, %v7084_v41, 0.0 }
 0x456   :  { %2368 = vadd.xlane.f32.xlu1 %v2367_v1 }
 0x458   :  { %v7107_v19 = vpop.f32.mrf.mxu1 }
 0x459   :  { %v5030_v6 = vpack.i.bf16 %v7107_v19, %v7097_v30 }
 0x45a   :  { %v1988_v23 = vpop.xlane.xlu1 %1987 }
 0x45b   :  { %v2054_v46 = vsub.f32 %v6967_v56, %v1988_v23  ;;  %v7873_v56 = vld [vmem:[#allocation28_spill] sm:$0xff] }
 0x45d   :  { %v2180_v50 = vmul.f32 1.442695, %v2054_v46  ;;  %v4955_v46 = vpack.i.bf16 %v7065_v17, %v7052_v31  ;;  %v7123_v17 = vpop.f32.mrf.mxu2 }
 0x45f   :  { %5314 = vpow2.f32 %v2180_v50  ;;  %v2348_v39 = vpop.xlane.xlu0 %2347  ;;  %v7117_v50 = vpop.f32.mrf.mxu3 }
 0x460   :  { %v3013_v37 = vpop.f32.mrf.mxu1 }
 0x465   :  { %v7090_v4 = vpop.eup %5314 }
 0x466   :  { %v2370_v29 = vsel %vm1799_vm2, %v7090_v4, 0.0 }
 0x467   :  { %v1991_v61 = vpop.xlane.xlu0 %1990  ;;  %v3188_v21 = vpop.f32.mrf.mxu0 }
 0x468   :  { %v2055_v12 = vsub.f32 %v6988_v2, %v1991_v61  ;;  %2371 = vadd.xlane.f32.xlu2 %v2370_v29  ;;  %v7874_v2 = vld [vmem:[#allocation30_spill] sm:$0xff]  ;;  %v3015_v44 = vpop.f32.mrf.mxu1 }
 0x469   :  { %v4975_v29 = vpack.i.bf16 %v3015_v44, %v3013_v37 }
 0x46a   :  { %v2182_v63 = vmul.f32 1.442695, %v2055_v12 }
 0x46c   :  { %5316 = vpow2.f32 %v2182_v63 }
 0x46d   :  { %5318 = vrcp.f32 %v2348_v39 }
 0x46f   :  { %3323 = vrot.lane.b32.xlu1 %v7873_v56, %s5427_s27  ;;  %v3190_v1 = vpop.f32.mrf.mxu0 }
 0x470   :  { %v4965_v23 = vpack.i.bf16 %v3190_v1, %v3188_v21  ;;  %v2357_v14 = vpop.xlane.xlu1 %2356  ;;  %v4985_v21 = vpack.i.bf16 %v7001_v62, %v6990_v45  ;;  %v3113_v45 = vpop.f32.mrf.mxu1 }
 0x472   :  { %v7103_v26 = vpop.eup %5316 }
 0x473   :  { %v2373_v49 = vsel %vm1799_vm2, %v7103_v26, 0.0  ;;  %v5319_v28 = vpop.eup %5318 }
 0x474   :  { %2374 = vadd.xlane.f32.xlu0 %v2373_v49  ;;  %v2494_v39 = vmul.f32 %v5319_v28, %v6974_v18  ;;  %v5020_v28 = vpack.i.bf16 %v7101_v22, %v7092_v43 }
 0x476   :  { %v2558_v12 = vpack.c.bf16 %v2494_v39, %v2494_v39 }
 0x477   :  { %3348 = vrot.lane.b32.xlu1 %v7874_v2, %s5427_s27  ;;  %s5430_s27 = smov 24  }
 0x47a   :  { %v3249_v5 = vpop.permute.xlu0 %3248 }
 0x47b   :  { %3261 = vmatpush.bf16.msra.mxu3 %v3249_v5  ;;  %v3245_v5 = vunpack.c.l.b16 %v2558_v12 }
 0x47f   :  { %4961 = vrot.lane.b32.xlu1 %v4960_v53, %s5428_s2 }
 0x480   :  { %4971 = vrot.lane.b32.xlu2 %v4970_v36, %s5429_s17 }
 0x487   :  { %4966 = vrot.lane.b32.xlu1 %v4965_v23, %s5430_s27 }
 0x488   :  { %4956 = vrot.lane.b32.xlu0 %v4955_v46, %s5429_s17 }
 0x48a   :  { %v2351_v24 = vpop.xlane.xlu2 %2350 }
 0x48b   :  { %5320 = vrcp.f32 %v2351_v24 }
 0x48c   :  { %5322 = vrcp.f32 %v2357_v14  ;;  %v3040_v14 = vpop.f32.mrf.mxu2 }
 0x48f   :  { %v3063_v61 = vpop.f32.mrf.mxu3  ;;  %4976 = vrot.lane.b32.xlu1 %v4975_v29, %s5428_s2 }
 0x491   :  { %v5321_v31 = vpop.eup %5320 }
 0x492   :  { %v2495_v63 = vmul.f32 %v5321_v31, %v7025_v58  ;;  %v2354_v56 = vpop.xlane.xlu2 %2353  ;;  %v5323_v49 = vpop.eup %5322 }
 0x493   :  { %5324 = vrcp.f32 %v2354_v56  ;;  %v2497_v53 = vmul.f32 %v5323_v49, %v7003_v34  ;;  %v3115_v31 = vpop.f32.mrf.mxu1 }
 0x494   :  { %v2559_v2 = vpack.c.bf16 %v2495_v63, %v2495_v63  ;;  %v5035_v56 = vpack.i.bf16 %v3115_v31, %v3113_v45  ;;  %v4990_v45 = vpack.i.bf16 %v3040_v14, %v7123_v17 }
 0x495   :  { %v2561_v46 = vpack.c.bf16 %v2497_v53, %v2497_v53 }
 0x496   :  { %v3246_v18 = vunpack.c.l.b16 %v2559_v2 }
 0x497   :  { %v3065_v36 = vpop.f32.mrf.mxu3  ;;  %4986 = vrot.lane.b32.xlu1 %v4985_v21, %s5429_s17  ;;  %v3271_v34 = vunpack.c.l.b16 %v2561_v46 }
 0x498   :  { %v3247_v37 = vpack.c.b16 %v3246_v18, %v3245_v5  ;;  %v5005_v1 = vpack.i.bf16 %v3065_v36, %v3063_v61  ;;  %v3138_v61 = vpop.f32.mrf.mxu2 }
 0x499   :  { %v5325_v23 = vpop.eup %5324 }
 0x49a   :  { %v2496_v58 = vmul.f32 %v5325_v23, %v7031_v59  ;;  %5006 = vrot.lane.b32.xlu2 %v5005_v1, %s5428_s2  ;;  %4630 = vmatmul.msk.bf16.vlgmr.msra.gmra.mxu3 %vm1799_vm2, %v3247_v37  ;;  %v3274_v44 = vpop.permute.xlu2 %3273 }
 0x49b   :  { %3286 = vmatpush.bf16.msra.mxu0 %v3274_v44 }
 0x49c   :  { %v2560_v62 = vpack.c.bf16 %v2496_v58, %v2496_v58 }
 0x49e   :  { %v3270_v24 = vunpack.c.l.b16 %v2560_v62 }
 0x4a0   :  { %v3272_v29 = vpack.c.b16 %v3271_v34, %v3270_v24  ;;  %v3140_v22 = vpop.f32.mrf.mxu2 }
 0x4a1   :  { %v2360_v39 = vpop.xlane.xlu1 %2359  ;;  %v5050_v53 = vpack.i.bf16 %v3140_v22, %v3138_v61 }
 0x4a2   :  { %5326 = vrcp.f32 %v2360_v39  ;;  %5021 = vrot.lane.b32.xlu2 %v5020_v28, %s5428_s2  ;;  %4631 = vmatmul.msk.bf16.vlgmr.msra.gmra.mxu0 %vm1799_vm2, %v3272_v29  ;;  %v3299_v59 = vpop.permute.xlu2 %3298  ;;  %v5015_v28 = vpack.i.bf16 %v7079_v33, %v7070_v42  ;;  %v4696_v39 = vld [vmem:[%s7750_s7 + $0x8] sm:$0xff] }
 0x4a3   :  { %3311 = vmatpush.bf16.msra.mxu1 %v3299_v59  ;;  %3667 = vmatpush.bf16.msrb.mxu0 %v4696_v39 }
 0x4a5   :  { %v2363_v12 = vpop.xlane.xlu0 %2362 }
 0x4a6   :  { %5328 = vrcp.f32 %v2363_v12 }
 0x4a8   :  { %v5327_v63 = vpop.eup %5326 }
 0x4a9   :  { %v2498_v49 = vmul.f32 %v5327_v63, %v7045_v20 }
 0x4aa   :  { %5036 = vrot.lane.b32.xlu2 %v5035_v56, %s5428_s2 }
 0x4ab   :  { %v2562_v2 = vpack.c.bf16 %v2498_v49, %v2498_v49 }
 0x4ac   :  { %v5329_v43 = vpop.eup %5328 }
 0x4ad   :  { %v2499_v21 = vmul.f32 %v5329_v43, %v7050_v55  ;;  %v3295_v18 = vunpack.c.l.b16 %v2562_v2  ;;  %v2366_v55 = vpop.xlane.xlu1 %2365  ;;  %v5060_v43 = vpack.i.bf16 %v7117_v50, %v7111_v9 }
 0x4af   :  { %v2563_v5 = vpack.c.bf16 %v2499_v21, %v2499_v21 }
 0x4b1   :  { %v3296_v36 = vunpack.c.l.b16 %v2563_v5 }
 0x4b2   :  { %5051 = vrot.lane.b32.xlu2 %v5050_v53, %s5428_s2 }
 0x4b3   :  { %v3297_v37 = vpack.c.b16 %v3296_v36, %v3295_v18 }
 0x4b5   :  { %v3213_v1 = vpop.f32.mrf.mxu1  ;;  %4632 = vmatmul.msk.bf16.vlgmr.msra.gmra.mxu1 %vm1799_vm2, %v3297_v37 }
 0x4b6   :  { %v3163_v23 = vpop.f32.mrf.mxu3 }
 0x4bd   :  { %v3215_v46 = vpop.f32.mrf.mxu1 }
 0x4be   :  { %v4980_v20 = vpack.i.bf16 %v3215_v46, %v3213_v1  ;;  %v3165_v58 = vpop.f32.mrf.mxu3 }
 0x4bf   :  { %v5065_v44 = vpack.i.bf16 %v3165_v58, %v3163_v23 }
 0x4c0   :  { %4981 = vrot.lane.b32.xlu0 %v4980_v20, %s5430_s27 }
 0x4c1   :  { %5066 = vrot.lane.b32.xlu2 %v5065_v44, %s5428_s2 }
 0x4c8   :  { %4991 = vrot.lane.b32.xlu0 %v4990_v45, %s5428_s2 }
 0x4c9   :  { %v2369_v62 = vpop.xlane.xlu1 %2368 }
 0x4ca   :  { %5330 = vrcp.f32 %v2369_v62 }
 0x4cb   :  { %5332 = vrcp.f32 %v2366_v55 }
 0x4d0   :  { %5001 = vrot.lane.b32.xlu0 %v5000_v47, %s5429_s17  ;;  %v5331_v34 = vpop.eup %5330  ;;  %v4695_v47 = vld [vmem:[%s7750_s7] sm:$0xff] }
 0x4d1   :  { %v5333_v24 = vpop.eup %5332  ;;  %v2501_v29 = vmul.f32 %v5331_v34, %v7084_v41  ;;  %3668 = vmatpush.bf16.msrb.mxu0 %v4695_v47 }
 0x4d2   :  { %v2500_v14 = vmul.f32 %v5333_v24, %v7056_v11 }
 0x4d3   :  { %v2565_v59 = vpack.c.bf16 %v2501_v29, %v2501_v29 }
 0x4d4   :  { %v2564_v60 = vpack.c.bf16 %v2500_v14, %v2500_v14 }
 0x4d5   :  { %v3321_v42 = vunpack.c.l.b16 %v2565_v59 }
 0x4d6   :  { %v3320_v11 = vunpack.c.l.b16 %v2564_v60 }
 0x4d8   :  { %5016 = vrot.lane.b32.xlu0 %v5015_v28, %s5429_s17  ;;  %v3238_v17 = vpop.f32.mrf.mxu2  ;;  %v3322_v12 = vpack.c.b16 %v3321_v42, %v3320_v11 }
 0x4db   :  { %v2372_v33 = vpop.xlane.xlu2 %2371 }
 0x4dc   :  { %5334 = vrcp.f32 %v2372_v33 }
 0x4e0   :  { %5031 = vrot.lane.b32.xlu0 %v5030_v6, %s5429_s17  ;;  %v3240_v41 = vpop.f32.mrf.mxu2 }
 0x4e1   :  { %v4995_v61 = vpack.i.bf16 %v3240_v41, %v3238_v17  ;;  %v3324_v31 = vpop.permute.xlu1 %3323 }
 0x4e2   :  { %3336 = vmatpush.bf16.msrb.mxu2 %v3324_v31  ;;  %v5335_v19 = vpop.eup %5334 }
 0x4e3   :  { %4996 = vrot.lane.b32.xlu1 %v4995_v61, %s5430_s27  ;;  %v2502_v56 = vmul.f32 %v5335_v19, %v7090_v4  ;;  %v4972_v24 = vpop.permute.xlu2 %4971 }
 0x4e4   :  { %v4974_v17 = vunpack.i.h.bf16 %v4972_v24  ;;  %v4973_v14 = vunpack.i.l.bf16 %v4972_v24 }
 0x4e5   :  { %4633 = vmatmul.msk.bf16.vlgmr.msrb.gmra.mxu2 %vm1799_vm2, %v3322_v12  ;;  %v2566_v22 = vpack.c.bf16 %v2502_v56, %v2502_v56 }
 0x4e6   :  { %v3563_v47 = vsel %vm776_vm1, %v7073_v57, %v4974_v17  ;;  %v3562_v42 = vsel %vm776_vm1, %v7061_v48, %v4973_v14 }
 0x4e7   :  { %v2375_v30 = vpop.xlane.xlu0 %2374  ;;  %v3345_v53 = vunpack.c.l.b16 %v2566_v22 }
 0x4e8   :  { %5336 = vrcp.f32 %v2375_v30  ;;  %5046 = vrot.lane.b32.xlu0 %v5045_v40, %s5429_s17 }
 0x4e9   :  { %v3349_v63 = vpop.permute.xlu1 %3348 }
 0x4ea   :  { %3361 = vmatpush.bf16.msrb.mxu3 %v3349_v63 }
 0x4ee   :  { %v5337_v49 = vpop.eup %5336 }
 0x4ef   :  { %v2503_v2 = vmul.f32 %v5337_v49, %v7103_v26 }
 0x4f0   :  { %5061 = vrot.lane.b32.xlu0 %v5060_v43, %s5429_s17 }
 0x4f1   :  { %v2567_v21 = vpack.c.bf16 %v2503_v2, %v2503_v2  ;;  %v4962_v5 = vpop.permute.xlu1 %4961 }
 0x4f2   :  { %v4964_v37 = vunpack.i.h.bf16 %v4962_v5  ;;  %v4963_v1 = vunpack.i.l.bf16 %v4962_v5 }
 0x4f3   :  { %v3346_v18 = vunpack.c.l.b16 %v2567_v21 }
 0x4f5   :  { %v3347_v36 = vpack.c.b16 %v3346_v18, %v3345_v53 }
 0x4f7   :  { %4634 = vmatmul.msk.bf16.vlgmr.msrb.gmra.mxu3 %vm1799_vm2, %v3347_v36 }
 0x4f9   :  { %v4967_v13 = vpop.permute.xlu1 %4966 }
 0x4fa   :  { %v4957_v27 = vpop.permute.xlu0 %4956  ;;  %v4969_v50 = vunpack.i.h.bf16 %v4967_v13  ;;  %v4968_v23 = vunpack.i.l.bf16 %v4967_v13 }
 0x4fb   :  { %v4959_v40 = vunpack.i.h.bf16 %v4957_v27  ;;  %v4958_v4 = vunpack.i.l.bf16 %v4957_v27 }
 0x4fd   :  { %v3561_v9 = vsel %vm776_vm1, %v7027_v52, %v4959_v40  ;;  %v3560_v26 = vsel %vm776_vm1, %v7015_v10, %v4958_v4 }
 0x4fe   :  { %v3576_v46 = vsel %vm1799_vm2, %v3560_v26, %v4963_v1  ;;  %v3577_v20 = vsel %vm1799_vm2, %v3561_v9, %v4964_v37 }
 0x4ff   :  { %v3593_v58 = vsel %vm3592_vm3, %v3576_v46, %v4968_v23  ;;  %v3594_v44 = vsel %vm3592_vm3, %v3577_v20, %v4969_v50  ;;  %v5408_v23 = vld [vmem:[%s7745_s0] sm:$0xff] }
 0x500   :  { %v3609_v55 = vpack.c.bf16 %v3594_v44, %v3593_v58 }
 0x501   :  { %v4977_v28 = vpop.permute.xlu1 %4976 }
 0x502   :  { %4643 = vmatmul.msk.bf16.vlgmr.msrb.gmra.mxu0 %vm111_vm0, %v3609_v55  ;;  %v4979_v39 = vunpack.i.h.bf16 %v4977_v28  ;;  %v4978_v59 = vunpack.i.l.bf16 %v4977_v28 }
 0x504   :  { %v3578_v11 = vsel %vm1799_vm2, %v3562_v42, %v4978_v59  ;;  %v3579_v61 = vsel %vm1799_vm2, %v3563_v47, %v4979_v39 }
 0x509   :  { %v4987_v57 = vpop.permute.xlu1 %4986 }
 0x50a   :  { %v4989_v48 = vunpack.i.h.bf16 %v4987_v57  ;;  %v4988_v49 = vunpack.i.l.bf16 %v4987_v57 }
 0x50c   :  { %v3565_v21 = vsel %vm776_vm1, %v6955_v32, %v4989_v48  ;;  %v3564_v5 = vsel %vm776_vm1, %v6941_v15, %v4988_v49  ;;  %v7210_v15 = vld [vmem:[%s7751_s8] ss:$0 sm:$0xff] }
 0x51d   :  { %v3263_v45 = vpop.f32.mrf.mxu3 }
 0x51f   :  { %v3288_v62 = vpop.f32.mrf.mxu0 }
 0x525   :  { %v3265_v34 = vpop.f32.mrf.mxu3 }
 0x526   :  { %v5010_v52 = vpack.i.bf16 %v3265_v34, %v3263_v45 }
 0x527   :  { %v3290_v10 = vpop.f32.mrf.mxu0 }
 0x528   :  { %5011 = vrot.lane.b32.xlu1 %v5010_v52, %s5430_s27  ;;  %v5025_v29 = vpack.i.bf16 %v3290_v10, %v3288_v62  ;;  %v5409_v62 = vld [vmem:[%s7745_s0 + $0x8] sm:$0xff] }
 0x530   :  { %5026 = vrot.lane.b32.xlu1 %v5025_v29, %s5430_s27  ;;  %v5007_v29 = vpop.permute.xlu2 %5006 }
 0x531   :  { %v5009_v39 = vunpack.i.h.bf16 %v5007_v29  ;;  %v5008_v59 = vunpack.i.l.bf16 %v5007_v29  ;;  %v5412_v29 = vld [vmem:[%s7745_s0 + $0x20] sm:$0xff] }
 0x532   :  { %v4982_v60 = vpop.permute.xlu0 %4981  ;;  %v3313_v6 = vpop.f32.mrf.mxu1 }
 0x533   :  { %v4984_v33 = vunpack.i.h.bf16 %v4982_v60  ;;  %v4983_v41 = vunpack.i.l.bf16 %v4982_v60 }
 0x535   :  { %v3595_v31 = vsel %vm3592_vm3, %v3578_v11, %v4983_v41  ;;  %v3596_v12 = vsel %vm3592_vm3, %v3579_v61, %v4984_v33 }
 0x536   :  { %v3610_v30 = vpack.c.bf16 %v3596_v12, %v3595_v31 }
 0x538   :  { %4644 = vmatmul.msk.bf16.gmra.mxu0 %vm111_vm0, %v3610_v30  ;;  %v5022_v30 = vpop.permute.xlu2 %5021 }
 0x539   :  { %v5024_v48 = vunpack.i.h.bf16 %v5022_v30  ;;  %v5023_v49 = vunpack.i.l.bf16 %v5022_v30 }
 0x53a   :  { %v3315_v19 = vpop.f32.mrf.mxu1  ;;  %v4992_v56 = vpop.permute.xlu0 %4991 }
 0x53b   :  { %v5040_v63 = vpack.i.bf16 %v3315_v19, %v3313_v6  ;;  %v4994_v43 = vunpack.i.h.bf16 %v4992_v56  ;;  %v4993_v22 = vunpack.i.l.bf16 %v4992_v56 }
 0x53d   :  { %5041 = vrot.lane.b32.xlu1 %v5040_v63, %s5430_s27  ;;  %v3580_v36 = vsel %vm1799_vm2, %v3564_v5, %v4993_v22  ;;  %v3581_v27 = vsel %vm1799_vm2, %v3565_v21, %v4994_v43 }
 0x542   :  { %v5002_v10 = vpop.permute.xlu0 %5001 }
 0x543   :  { %v5004_v24 = vunpack.i.h.bf16 %v5002_v10  ;;  %v5003_v28 = vunpack.i.l.bf16 %v5002_v10 }
 0x545   :  { %v3567_v17 = vsel %vm776_vm1, %v6948_v54, %v5004_v24  ;;  %v3566_v14 = vsel %vm776_vm1, %v6936_v25, %v5003_v28 }
 0x546   :  { %v3582_v42 = vsel %vm1799_vm2, %v3566_v14, %v5008_v59  ;;  %v3583_v33 = vsel %vm1799_vm2, %v3567_v17, %v5009_v39  ;;  %v5431_v59 = vmov 32.0  }
 0x547   :  { %5338 = vrcp.f32 %v5431_v59 }
 0x54a   :  { %v5017_v31 = vpop.permute.xlu0 %5016 }
 0x54b   :  { %v5019_v54 = vunpack.i.h.bf16 %v5017_v31  ;;  %v5018_v12 = vunpack.i.l.bf16 %v5017_v31 }
 0x54d   :  { %v3569_v19 = vsel %vm776_vm1, %v7041_v35, %v5019_v54  ;;  %v3568_v63 = vsel %vm776_vm1, %v7033_v38, %v5018_v12  ;;  %v5037_v38 = vpop.permute.xlu2 %5036 }
 0x54e   :  { %v3584_v43 = vsel %vm1799_vm2, %v3568_v63, %v5023_v49  ;;  %v3585_v22 = vsel %vm1799_vm2, %v3569_v19, %v5024_v48 }
 0x555   :  { %v4997_v2 = vpop.permute.xlu1 %4996 }
 0x556   :  { %v4999_v53 = vunpack.i.h.bf16 %v4997_v2  ;;  %v4998_v18 = vunpack.i.l.bf16 %v4997_v2 }
 0x558   :  { %v3598_v13 = vsel %vm3592_vm3, %v3581_v27, %v4999_v53  ;;  %v3597_v40 = vsel %vm3592_vm3, %v3580_v36, %v4998_v18  ;;  %v5032_v53 = vpop.permute.xlu0 %5031 }
 0x559   :  { %v3611_v4 = vpack.c.bf16 %v3598_v13, %v3597_v40  ;;  %v5034_v35 = vunpack.i.h.bf16 %v5032_v53  ;;  %v5033_v18 = vunpack.i.l.bf16 %v5032_v53 }
 0x55b   :  { %4645 = vmatmul.msk.bf16.gmra.mxu0 %vm111_vm0, %v3611_v4  ;;  %v3571_v40 = vsel %vm776_vm1, %v7082_v8, %v5034_v35  ;;  %v3570_v4 = vsel %vm776_vm1, %v7075_v0, %v5033_v18 }
 0x560   :  { %v5047_v14 = vpop.permute.xlu0 %5046 }
 0x568   :  { %v3338_v37 = vpop.f32.mrf.mxu2 }
 0x570   :  { %v3340_v1 = vpop.f32.mrf.mxu2 }
 0x571   :  { %v5055_v9 = vpack.i.bf16 %v3340_v1, %v3338_v37 }
 0x573   :  { %5056 = vrot.lane.b32.xlu1 %v5055_v9, %s5430_s27  ;;  %v5039_v9 = vunpack.i.h.bf16 %v5037_v38 }
 0x57a   :  { %v3363_v32 = vpop.f32.mrf.mxu3 }
 0x57f   :  { %v3670_v26 = vpop.f32.mrf.mxu0 }
 0x580   :  { %v3671_v50 = vadd.f32 %v7210_v15, %v3670_v26  ;;  %v5410_v26 = vld [vmem:[%s7745_s0 + $0x10] sm:$0xff] }
 0x582   :  { %v7216_v46 = vadd.f32 %v5408_v23, %v3671_v50  ;;  %v3365_v20 = vpop.f32.mrf.mxu3 }
 0x583   :  { %v5070_v58 = vpack.i.bf16 %v3365_v20, %v3363_v32  ;;  %v5038_v32 = vunpack.i.l.bf16 %v5037_v38  ;;  %v3587_v20 = vsel %vm1799_vm2, %v3571_v40, %v5039_v9 }
 0x584   :  { %v3726_v44 = vsel %vm111_vm0, %v7216_v46, 0.0 }
 0x585   :  { %3727 = vadd.xlane.f32.xlu0 %v3726_v44  ;;  %5071 = vrot.lane.b32.xlu1 %v5070_v58, %s5430_s27  ;;  %v3586_v23 = vsel %vm1799_vm2, %v3570_v4, %v5038_v32 }
 0x587   :  { %v3672_v55 = vpop.f32.mrf.mxu0 }
 0x588   :  { %v3673_v45 = vadd.f32 %v7210_v15, %v3672_v55 }
 0x58a   :  { %v7225_v34 = vadd.f32 %v5409_v62, %v3673_v45  ;;  %v5411_v62 = vld [vmem:[%s7745_s0 + $0x18] sm:$0xff] }
 0x58c   :  { %v3729_v52 = vsel %vm111_vm0, %v7225_v34, 0.0 }
 0x58d   :  { %3730 = vadd.xlane.f32.xlu2 %v3729_v52 }
 0x59a   :  { %v5012_v60 = vpop.permute.xlu1 %5011 }
 0x59b   :  { %v5014_v6 = vunpack.i.h.bf16 %v5012_v60  ;;  %v5013_v47 = vunpack.i.l.bf16 %v5012_v60  ;;  %v5049_v60 = vunpack.i.h.bf16 %v5047_v14 }
 0x59d   :  { %v3599_v41 = vsel %vm3592_vm3, %v3582_v42, %v5013_v47  ;;  %v3600_v11 = vsel %vm3592_vm3, %v3583_v33, %v5014_v6  ;;  %v5048_v6 = vunpack.i.l.bf16 %v5047_v14  ;;  %v5052_v33 = vpop.permute.xlu2 %5051  ;;  %v3573_v31 = vsel %vm776_vm1, %v6976_v51, %v5049_v60 }
 0x59e   :  { %v3612_v61 = vpack.c.bf16 %v3600_v11, %v3599_v41  ;;  %v5339_v41 = vpop.eup %5338  ;;  %v5413_v11 = vld [vmem:[%s7745_s0 + $0x28] sm:$0xff]  ;;  %v5054_v12 = vunpack.i.h.bf16 %v5052_v33 }
 0x59f   :  { %v3572_v54 = vsel %vm776_vm1, %v6963_v7, %v5048_v6  ;;  %vm3779_vm4 = vweird.f32 %v5339_v41  ;;  %v5415_v6 = vld [vmem:[%s7745_s0 + $0x38] sm:$0xff] }
 0x5a0   :  { %4646 = vmatmul.msk.bf16.gmra.mxu0 %vm111_vm0, %v3612_v61  ;;  %v3589_v49 = vsel %vm1799_vm2, %v3573_v31, %v5054_v12 }
 0x5a2   :  { %v5027_v25 = vpop.permute.xlu1 %5026 }
 0x5a3   :  { %v5029_v57 = vunpack.i.h.bf16 %v5027_v25  ;;  %v5028_v56 = vunpack.i.l.bf16 %v5027_v25  ;;  %v5053_v25 = vunpack.i.l.bf16 %v5052_v33 }
 0x5a5   :  { %v3601_v2 = vsel %vm3592_vm3, %v3584_v43, %v5028_v56  ;;  %v3602_v21 = vsel %vm3592_vm3, %v3585_v22, %v5029_v57  ;;  %v3775_v56 = vmul.f32 32.0, %v5339_v41  ;;  %v3588_v48 = vsel %vm1799_vm2, %v3572_v54, %v5053_v25  ;;  %v5067_v18 = vpop.permute.xlu2 %5066  ;;  %v5416_v54 = vld [vmem:[%s7745_s0 + $0x40] sm:$0xff] }
 0x5a6   :  { %v3613_v5 = vpack.c.bf16 %v3602_v21, %v3601_v2  ;;  %v5062_v21 = vpop.permute.xlu0 %5061  ;;  %v5068_v40 = vunpack.i.l.bf16 %v5067_v18 }
 0x5a7   :  { %v3776_v7 = vsub.f32 1.0, %v3775_v56  ;;  %v5063_v53 = vunpack.i.l.bf16 %v5062_v21 }
 0x5a9   :  { %v3777_v2 = vmul.f32 %v5339_v41, %v3776_v7  ;;  %v3574_v38 = vsel %vm776_vm1, %v6957_v3, %v5063_v53 }
 0x5aa   :  { %v3590_v32 = vsel %vm1799_vm2, %v3574_v38, %v5068_v40 }
 0x5ab   :  { %v3778_v35 = vadd.f32 %v5339_v41, %v3777_v2 }
 0x5af   :  { %v5042_v36 = vpop.permute.xlu1 %5041 }
 0x5b0   :  { %4647 = vmatmul.msk.bf16.gmra.mxu0 %vm111_vm0, %v3613_v5  ;;  %v5044_v37 = vunpack.i.h.bf16 %v5042_v36  ;;  %v5043_v1 = vunpack.i.l.bf16 %v5042_v36  ;;  %v5064_v5 = vunpack.i.h.bf16 %v5062_v21 }
 0x5b2   :  { %v3603_v58 = vsel %vm3592_vm3, %v3586_v23, %v5043_v1  ;;  %v3604_v0 = vsel %vm3592_vm3, %v3587_v20, %v5044_v37  ;;  %v3575_v36 = vsel %vm776_vm1, %v6969_v16, %v5064_v5 }
 0x5b3   :  { %v3614_v55 = vpack.c.bf16 %v3604_v0, %v3603_v58 }
 0x5b5   :  { %v3675_v27 = vpop.f32.mrf.mxu0 }
 0x5b6   :  { %v3676_v13 = vadd.f32 %v7210_v15, %v3675_v27  ;;  %v7301_v27 = vsel %vm3779_vm4, %v5339_v41, %v3778_v35  ;;  %v5418_v35 = vld [vmem:[%s7745_s0 + $0x50] sm:$0xff] }
 0x5b8   :  { %v7255_v50 = vadd.f32 %v5410_v26, %v3676_v13  ;;  %v5069_v13 = vunpack.i.h.bf16 %v5067_v18 }
 0x5ba   :  { %v3732_v8 = vsel %vm111_vm0, %v7255_v50, 0.0  ;;  %v3591_v26 = vsel %vm1799_vm2, %v3575_v36, %v5069_v13 }
 0x5bb   :  { %3733 = vadd.xlane.f32.xlu1 %v3732_v8 }
 0x5bd   :  { %v3677_v44 = vpop.f32.mrf.mxu0 }
 0x5be   :  { %v3678_v45 = vadd.f32 %v7210_v15, %v3677_v44 }
 0x5c0   :  { %v7267_v52 = vadd.f32 %v5411_v62, %v3678_v45  ;;  %4648 = vmatmul.msk.bf16.gmra.mxu0 %vm111_vm0, %v3614_v55 }
 0x5c2   :  { %v3735_v10 = vsel %vm111_vm0, %v7267_v52, 0.0 }
 0x5c3   :  { %3736 = vadd.xlane.f32.xlu0 %v3735_v10 }
 0x5d8   :  { %v3680_v24 = vpop.f32.mrf.mxu0 }
 0x5d9   :  { %v3681_v28 = vadd.f32 %v7210_v15, %v3680_v24 }
 0x5db   :  { %v7276_v17 = vadd.f32 %v5412_v29, %v3681_v28  ;;  %v5414_v29 = vld [vmem:[%s7745_s0 + $0x30] sm:$0xff] }
 0x5dd   :  { %v3738_v39 = vsel %vm111_vm0, %v7276_v17, 0.0 }
 0x5de   :  { %3739 = vadd.xlane.f32.xlu2 %v3738_v39 }
 0x5e0   :  { %v3682_v47 = vpop.f32.mrf.mxu0 }
 0x5e1   :  { %v3683_v42 = vadd.f32 %v7210_v15, %v3682_v47 }
 0x5e3   :  { %v7284_v61 = vadd.f32 %v5413_v11, %v3683_v42 }
 0x5e5   :  { %v5057_v30 = vpop.permute.xlu1 %5056  ;;  %v3741_v19 = vsel %vm111_vm0, %v7284_v61, 0.0 }
 0x5e6   :  { %v5059_v63 = vunpack.i.h.bf16 %v5057_v30  ;;  %v5058_v57 = vunpack.i.l.bf16 %v5057_v30  ;;  %3742 = vadd.xlane.f32.xlu1 %v3741_v19 }
 0x5e8   :  { %v3605_v43 = vsel %vm3592_vm3, %v3588_v48, %v5058_v57  ;;  %v3606_v51 = vsel %vm3592_vm3, %v3589_v49, %v5059_v63 }
 0x5e9   :  { %v3615_v22 = vpack.c.bf16 %v3606_v51, %v3605_v43  ;;  %v5417_v43 = vld [vmem:[%s7745_s0 + $0x48] sm:$0xff] }
 0x5eb   :  { %4649 = vmatmul.msk.bf16.gmra.mxu0 %vm111_vm0, %v3615_v22 }
 0x5f7   :  { %v5072_v4 = vpop.permute.xlu1 %5071 }
 0x5f8   :  { %v5074_v37 = vunpack.i.h.bf16 %v5072_v4  ;;  %v5073_v1 = vunpack.i.l.bf16 %v5072_v4  ;;  %v3728_v9 = vpop.xlane.xlu0 %3727 }
 0x5f9   :  { %v3781_v23 = vmul.f32 %v7301_v27, %v3728_v9 }
 0x5fa   :  { %v3607_v20 = vsel %vm3592_vm3, %v3590_v32, %v5073_v1  ;;  %v3608_v16 = vsel %vm3592_vm3, %v3591_v26, %v5074_v37 }
 0x5fb   :  { %v3616_v8 = vpack.c.bf16 %v3608_v16, %v3607_v20  ;;  %v7309_v3 = vsub.f32 %v7216_v46, %v3781_v23  ;;  %v5419_v23 = vld [vmem:[%s7745_s0 + $0x58] sm:$0xff] }
 0x5fd   :  { %4650 = vmatmul.msk.bf16.gmra.mxu0 %vm111_vm0, %v3616_v8  ;;  %v3813_v58 = vmul.f32 %v7309_v3, %v7309_v3 }
 0x5ff   :  { %v3829_v0 = vsel %vm111_vm0, %v3813_v58, 0.0 }
 0x600   :  { %v3731_v44 = vpop.xlane.xlu2 %3730  ;;  %3830 = vadd.xlane.f32.xlu0 %v3829_v0 }
 0x601   :  { %v3782_v55 = vmul.f32 %v7301_v27, %v3731_v44 }
 0x603   :  { %v7317_v45 = vsub.f32 %v7225_v34, %v3782_v55 }
 0x605   :  { %v3814_v62 = vmul.f32 %v7317_v45, %v7317_v45 }
 0x607   :  { %v3832_v10 = vsel %vm111_vm0, %v3814_v62, 0.0  ;;  %v5420_v62 = vld [vmem:[%s7745_s0 + $0x60] sm:$0xff] }
 0x608   :  { %3833 = vadd.xlane.f32.xlu2 %v3832_v10 }
 0x61d   :  { %v3685_v24 = vpop.f32.mrf.mxu0 }
 0x61e   :  { %v3686_v28 = vadd.f32 %v7210_v15, %v3685_v24 }
 0x620   :  { %v7326_v14 = vadd.f32 %v5414_v29, %v3686_v28  ;;  %v4698_v28 = vld [vmem:[%s7754_s11 + $0x8] sm:$0xff] }
 0x621   :  { %4183 = vmatpush.bf16.msrb.mxu1 %v4698_v28 }
 0x622   :  { %v3744_v39 = vsel %vm111_vm0, %v7326_v14, 0.0 }
 0x623   :  { %3745 = vadd.xlane.f32.xlu1 %v3744_v39 }
 0x625   :  { %v3687_v59 = vpop.f32.mrf.mxu0 }
 0x626   :  { %v3688_v60 = vadd.f32 %v7210_v15, %v3687_v59 }
 0x628   :  { %v7334_v47 = vadd.f32 %v5415_v6, %v3688_v60  ;;  %v4697_v60 = vld [vmem:[%s7754_s11] sm:$0xff] }
 0x629   :  { %4184 = vmatpush.bf16.msrb.mxu1 %v4697_v60 }
 0x62a   :  { %v3747_v42 = vsel %vm111_vm0, %v7334_v47, 0.0 }
 0x62b   :  { %3748 = vadd.xlane.f32.xlu0 %v3747_v42 }
 0x62d   :  { %v3690_v33 = vpop.f32.mrf.mxu0 }
 0x62e   :  { %v3691_v41 = vadd.f32 %v7210_v15, %v3690_v33  ;;  %v3734_v11 = vpop.xlane.xlu1 %3733 }
 0x62f   :  { %v3783_v31 = vmul.f32 %v7301_v27, %v3734_v11 }
 0x630   :  { %v7343_v12 = vadd.f32 %v5416_v54, %v3691_v41 }
 0x631   :  { %v7346_v25 = vsub.f32 %v7255_v50, %v3783_v31 }
 0x632   :  { %v3750_v30 = vsel %vm111_vm0, %v7343_v12, 0.0 }
 0x633   :  { %3751 = vadd.xlane.f32.xlu0 %v3750_v30  ;;  %v3815_v19 = vmul.f32 %v7346_v25, %v7346_v25 }
 0x635   :  { %v3692_v63 = vpop.f32.mrf.mxu0  ;;  %v3835_v57 = vsel %vm111_vm0, %v3815_v19, 0.0 }
 0x636   :  { %v3693_v56 = vadd.f32 %v7210_v15, %v3692_v63  ;;  %v3737_v48 = vpop.xlane.xlu0 %3736  ;;  %3836 = vadd.xlane.f32.xlu2 %v3835_v57 }
 0x637   :  { %v3784_v49 = vmul.f32 %v7301_v27, %v3737_v48 }
 0x638   :  { %v7358_v51 = vadd.f32 %v5417_v43, %v3693_v56 }
 0x639   :  { %v7361_v22 = vsub.f32 %v7267_v52, %v3784_v49 }
 0x63a   :  { %v3753_v5 = vsel %vm111_vm0, %v7358_v51, 0.0 }
 0x63b   :  { %v3816_v7 = vmul.f32 %v7361_v22, %v7361_v22 }
 0x63d   :  { %v3695_v2 = vpop.f32.mrf.mxu0  ;;  %v3838_v21 = vsel %vm111_vm0, %v3816_v7, 0.0  ;;  %v7417_v7 = vld [vmem:[%s7752_s9] ss:$0 sm:$0xff] }
 0x63e   :  { %v3696_v53 = vadd.f32 %v7210_v15, %v3695_v2  ;;  %3839 = vadd.xlane.f32.xlu1 %v3838_v21  ;;  %3754 = vadd.xlane.f32.xlu2 %v3753_v5 }
 0x640   :  { %v7372_v18 = vadd.f32 %v5418_v35, %v3696_v53  ;;  %v7423_v53 = vld [vmem:[%s7753_s10] ss:$0 sm:$0xff] }
 0x642   :  { %v3756_v36 = vsel %vm111_vm0, %v7372_v18, 0.0 }
 0x645   :  { %v3697_v4 = vpop.f32.mrf.mxu0 }
 0x646   :  { %3757 = vadd.xlane.f32.xlu2 %v3756_v36  ;;  %v3698_v1 = vadd.f32 %v7210_v15, %v3697_v4 }
 0x648   :  { %v7388_v20 = vadd.f32 %v5419_v23, %v3698_v1 }
 0x64a   :  { %v3759_v58 = vsel %vm111_vm0, %v7388_v20, 0.0 }
 0x651   :  { %v3740_v38 = vpop.xlane.xlu2 %3739 }
 0x652   :  { %v3785_v13 = vmul.f32 %v7301_v27, %v3740_v38 }
 0x654   :  { %v7378_v40 = vsub.f32 %v7276_v17, %v3785_v13 }
 0x656   :  { %v3817_v37 = vmul.f32 %v7378_v40, %v7378_v40 }
 0x658   :  { %v3841_v9 = vsel %vm111_vm0, %v3817_v37, 0.0 }
 0x659   :  { %3842 = vadd.xlane.f32.xlu1 %v3841_v9  ;;  %v3743_v32 = vpop.xlane.xlu1 %3742 }
 0x65a   :  { %v3786_v26 = vmul.f32 %v7301_v27, %v3743_v32 }
 0x65c   :  { %v7391_v16 = vsub.f32 %v7284_v61, %v3786_v26 }
 0x65e   :  { %v3818_v8 = vmul.f32 %v7391_v16, %v7391_v16 }
 0x660   :  { %v3844_v0 = vsel %vm111_vm0, %v3818_v8, 0.0 }
 0x661   :  { %3760 = vadd.xlane.f32.xlu1 %v3759_v58  ;;  %3845 = vadd.xlane.f32.xlu0 %v3844_v0 }
 0x668   :  { %v3700_v44 = vpop.f32.mrf.mxu0 }
 0x669   :  { %v3701_v55 = vadd.f32 %v7210_v15, %v3700_v44  ;;  %v5421_v44 = vld [vmem:[%s7745_s0 + $0x68] sm:$0xff] }
 0x66b   :  { %v7402_v10 = vadd.f32 %v5420_v62, %v3701_v55 }
 0x66d   :  { %v3762_v24 = vsel %vm111_vm0, %v7402_v10, 0.0 }
 0x66e   :  { %3763 = vadd.xlane.f32.xlu1 %v3762_v24 }
 0x670   :  { %v3702_v13 = vpop.f32.mrf.mxu0 }
 0x673   :  { %v3831_v29 = vpop.xlane.xlu0 %3830 }
 0x674   :  { %v3877_v39 = vmul.f32 %v3831_v29, %v7301_v27 }
 0x676   :  { %v3893_v59 = vadd.f32 1e-05, %v3877_v39 }
 0x678   :  { %5340 = vrsqrt.f32 %v3893_v59  ;;  %vm3915_vm6 = vweird.f32 %v3893_v59 }
 0x67a   :  { %v3705_v0 = vpop.f32.mrf.mxu0 }
 0x67b   :  { %v3834_v6 = vpop.xlane.xlu2 %3833  ;;  %v3706_v28 = vadd.f32 %v7210_v15, %v3705_v0 }
 0x67c   :  { %v3878_v42 = vmul.f32 %v3834_v6, %v7301_v27  ;;  %v5422_v6 = vld [vmem:[%s7745_s0 + $0x70] sm:$0xff] }
 0x67e   :  { %v5341_v33 = vpop.eup %5340  ;;  %v3894_v41 = vadd.f32 1e-05, %v3878_v42  ;;  %v7458_v42 = vadd.f32 %v5422_v6, %v3706_v28 }
 0x67f   :  { %v3910_v11 = vmul.f32 %v5341_v33, %v3893_v59  ;;  %vm3916_vm5 = vweird.f32 %v5341_v33 }
 0x680   :  { %5342 = vrsqrt.f32 %v3894_v41  ;;  %vm3917_vm7 = vmor %vm3915_vm6, %vm3916_vm5  ;;  %vm3925_vm9 = vweird.f32 %v3894_v41 }
 0x681   :  { %v3911_v31 = vmul.f32 %v5341_v33, %v3910_v11 }
 0x682   :  { %v3707_v11 = vpop.f32.mrf.mxu0 }
 0x683   :  { %v3912_v54 = vmul.f32 0.5, %v3911_v31 }
 0x685   :  { %v3913_v30 = vsub.f32 1.5, %v3912_v54 }
 0x686   :  { %v5343_v19 = vpop.eup %5342 }
 0x687   :  { %v3914_v63 = vmul.f32 %v5341_v33, %v3913_v30  ;;  %v3920_v57 = vmul.f32 %v5343_v19, %v3894_v41  ;;  %vm3926_vm8 = vweird.f32 %v5343_v19 }
 0x688   :  { %vm3927_vm10 = vmor %vm3925_vm9, %vm3926_vm8 }
 0x689   :  { %v3921_v56 = vmul.f32 %v5343_v19, %v3920_v57  ;;  %v3918_v48 = vsel %vm3917_vm7, %v5341_v33, %v3914_v63  ;;  %v3768_v57 = vsel %vm111_vm0, %v7458_v42, 0.0 }
 0x68a   :  { %v4069_v2 = vmul.f32 %v3918_v48, %v7309_v3 }
 0x68b   :  { %v3922_v49 = vmul.f32 0.5, %v3921_v56  ;;  %v5423_v56 = vld [vmem:[%s7745_s0 + $0x78] sm:$0xff] }
 0x68c   :  { %v4089_v35 = vmul.f32 %v7417_v7, %v4069_v2 }
 0x68d   :  { %v3923_v43 = vsub.f32 1.5, %v3922_v49 }
 0x68e   :  { %v4109_v4 = vadd.f32 %v7423_v53, %v4089_v35 }
 0x68f   :  { %v3924_v21 = vmul.f32 %v5343_v19, %v3923_v43 }
 0x691   :  { %v3928_v5 = vsel %vm3927_vm10, %v5343_v19, %v3924_v21  ;;  %v3708_v19 = vadd.f32 %v7210_v15, %v3707_v11 }
 0x692   :  { %v4070_v36 = vmul.f32 %v3928_v5, %v7317_v45  ;;  %v3703_v45 = vadd.f32 %v7210_v15, %v3702_v13 }
 0x693   :  { %v7473_v48 = vadd.f32 %v5423_v56, %v3708_v19 }
 0x694   :  { %v4090_v38 = vmul.f32 %v7417_v7, %v4070_v36  ;;  %v7443_v55 = vadd.f32 %v5421_v44, %v3703_v45 }
 0x696   :  { %v4110_v3 = vadd.f32 %v7423_v53, %v4090_v38  ;;  %v3746_v37 = vpop.xlane.xlu1 %3745  ;;  %v3765_v39 = vsel %vm111_vm0, %v7443_v55, 0.0  ;;  %v3771_v38 = vsel %vm111_vm0, %v7473_v48, 0.0 }
 0x697   :  { %v3787_v1 = vmul.f32 %v7301_v27, %v3746_v37 }
 0x698   :  { %v4125_v9 = vpack.c.bf16 %v4110_v3, %v4109_v4 }
 0x699   :  { %v7432_v32 = vsub.f32 %v7326_v14, %v3787_v1 }
 0x69a   :  { %4659 = vmatmul.msk.bf16.vlgmr.msrb.gmra.mxu1 %vm111_vm0, %v4125_v9 }
 0x69b   :  { %v3819_v26 = vmul.f32 %v7432_v32, %v7432_v32 }
 0x69d   :  { %v3847_v23 = vsel %vm111_vm0, %v3819_v26, 0.0 }
 0x69e   :  { %v3749_v8 = vpop.xlane.xlu0 %3748  ;;  %3848 = vadd.xlane.f32.xlu0 %v3847_v23 }
 0x69f   :  { %v3788_v58 = vmul.f32 %v7301_v27, %v3749_v8 }
 0x6a1   :  { %v7446_v62 = vsub.f32 %v7334_v47, %v3788_v58 }
 0x6a3   :  { %v3820_v24 = vmul.f32 %v7446_v62, %v7446_v62 }
 0x6a5   :  { %v3850_v29 = vsel %vm111_vm0, %v3820_v24, 0.0 }
 0x6a6   :  { %v3752_v59 = vpop.xlane.xlu0 %3751  ;;  %3851 = vadd.xlane.f32.xlu2 %v3850_v29  ;;  %3766 = vadd.xlane.f32.xlu0 %v3765_v39 }
 0x6a7   :  { %v3789_v60 = vmul.f32 %v7301_v27, %v3752_v59 }
 0x6a9   :  { %v7461_v33 = vsub.f32 %v7343_v12, %v3789_v60  ;;  %v3837_v41 = vpop.xlane.xlu2 %3836 }
 0x6aa   :  { %v3879_v31 = vmul.f32 %v3837_v41, %v7301_v27 }
 0x6ab   :  { %v3821_v54 = vmul.f32 %v7461_v33, %v7461_v33 }
 0x6ac   :  { %v3895_v30 = vadd.f32 1e-05, %v3879_v31 }
 0x6ad   :  { %v3853_v63 = vsel %vm111_vm0, %v3821_v54, 0.0 }
 0x6ae   :  { %5344 = vrsqrt.f32 %v3895_v30  ;;  %3854 = vadd.xlane.f32.xlu2 %v3853_v63  ;;  %3769 = vadd.xlane.f32.xlu0 %v3768_v57  ;;  %vm3935_vm12 = vweird.f32 %v3895_v30 }
 0x6b1   :  { %v3755_v49 = vpop.xlane.xlu2 %3754  ;;  %v3840_v43 = vpop.xlane.xlu1 %3839 }
 0x6b2   :  { %v3790_v2 = vmul.f32 %v7301_v27, %v3755_v49  ;;  %v3880_v15 = vmul.f32 %v3840_v43, %v7301_v27 }
 0x6b4   :  { %v5345_v21 = vpop.eup %5344  ;;  %v7478_v5 = vsub.f32 %v7358_v51, %v3790_v2  ;;  %v3896_v35 = vadd.f32 1e-05, %v3880_v15 }
 0x6b5   :  { %v3930_v36 = vmul.f32 %v5345_v21, %v3895_v30  ;;  %vm3936_vm11 = vweird.f32 %v5345_v21 }
 0x6b6   :  { %5346 = vrsqrt.f32 %v3896_v35  ;;  %3772 = vadd.xlane.f32.xlu2 %v3771_v38  ;;  %v3822_v13 = vmul.f32 %v7478_v5, %v7478_v5  ;;  %vm3937_vm13 = vmor %vm3935_vm12, %vm3936_vm11  ;;  %vm3945_vm15 = vweird.f32 %v3896_v35 }
 0x6b7   :  { %v3931_v4 = vmul.f32 %v5345_v21, %v3930_v36 }
 0x6b8   :  { %v3856_v3 = vsel %vm111_vm0, %v3822_v13, 0.0 }
 0x6b9   :  { %v3932_v37 = vmul.f32 0.5, %v3931_v4  ;;  %3857 = vadd.xlane.f32.xlu1 %v3856_v3  ;;  %v3758_v1 = vpop.xlane.xlu2 %3757 }
 0x6ba   :  { %v3791_v9 = vmul.f32 %v7301_v27, %v3758_v1 }
 0x6bb   :  { %v3933_v26 = vsub.f32 1.5, %v3932_v37 }
 0x6bc   :  { %v5347_v45 = vpop.eup %5346  ;;  %v7487_v23 = vsub.f32 %v7372_v18, %v3791_v9 }
 0x6bd   :  { %v3934_v8 = vmul.f32 %v5345_v21, %v3933_v26  ;;  %v3940_v58 = vmul.f32 %v5347_v45, %v3896_v35  ;;  %vm3946_vm14 = vweird.f32 %v5347_v45 }
 0x6be   :  { %v3823_v0 = vmul.f32 %v7487_v23, %v7487_v23  ;;  %vm3947_vm1 = vmor %vm3945_vm15, %vm3946_vm14 }
 0x6bf   :  { %v3941_v44 = vmul.f32 %v5347_v45, %v3940_v58  ;;  %v3938_v28 = vsel %vm3937_vm13, %v5345_v21, %v3934_v8 }
 0x6c0   :  { %v3859_v24 = vsel %vm111_vm0, %v3823_v0, 0.0  ;;  %v4071_v59 = vmul.f32 %v3938_v28, %v7346_v25 }
 0x6c1   :  { %v3942_v29 = vmul.f32 0.5, %v3941_v44  ;;  %3860 = vadd.xlane.f32.xlu1 %v3859_v24 }
 0x6c2   :  { %v4091_v11 = vmul.f32 %v7417_v7, %v4071_v59 }
 0x6c3   :  { %v3943_v39 = vsub.f32 1.5, %v3942_v29 }
 0x6c4   :  { %v4111_v30 = vadd.f32 %v7423_v53, %v4091_v11 }
 0x6c5   :  { %v3944_v60 = vmul.f32 %v5347_v45, %v3943_v39 }
 0x6c7   :  { %v3948_v6 = vsel %vm3947_vm1, %v5347_v45, %v3944_v60 }
 0x6c8   :  { %v4072_v41 = vmul.f32 %v3948_v6, %v7361_v22 }
 0x6ca   :  { %v4092_v31 = vmul.f32 %v7417_v7, %v4072_v41 }
 0x6cc   :  { %v3843_v54 = vpop.xlane.xlu1 %3842  ;;  %v4112_v19 = vadd.f32 %v7423_v53, %v4092_v31 }
 0x6cd   :  { %v3881_v63 = vmul.f32 %v3843_v54, %v7301_v27 }
 0x6ce   :  { %v4126_v57 = vpack.c.bf16 %v4112_v19, %v4111_v30 }
 0x6cf   :  { %v3897_v56 = vadd.f32 1e-05, %v3881_v63  ;;  %v4700_v63 = vld [vmem:[%s7756_s13 + $0x8] sm:$0xff] }
 0x6d0   :  { %4660 = vmatmul.msk.bf16.gmra.mxu1 %vm111_vm0, %v4126_v57  ;;  %4428 = vmatpush.bf16.msra.mxu2 %v4700_v63 }
 0x6d1   :  { %5348 = vrsqrt.f32 %v3897_v56  ;;  %vm3955_vm3 = vweird.f32 %v3897_v56  ;;  %4705 = vmatpush.bf16.msra.mxu3 %v4700_v63 }
 0x6d4   :  { %v3846_v25 = vpop.xlane.xlu0 %3845  ;;  %v3761_v49 = vpop.xlane.xlu1 %3760 }
 0x6d5   :  { %v3882_v22 = vmul.f32 %v3846_v25, %v7301_v27  ;;  %v3792_v43 = vmul.f32 %v7301_v27, %v3761_v49  ;;  %v4699_v25 = vld [vmem:[%s7756_s13] sm:$0xff] }
 0x6d6   :  { %4429 = vmatpush.bf16.msra.mxu2 %v4699_v25  ;;  %4706 = vmatpush.bf16.msra.mxu3 %v4699_v25 }
 0x6d7   :  { %v5349_v2 = vpop.eup %5348  ;;  %v3898_v15 = vadd.f32 1e-05, %v3882_v22  ;;  %v7503_v21 = vsub.f32 %v7388_v20, %v3792_v43 }
 0x6d8   :  { %v3950_v35 = vmul.f32 %v5349_v2, %v3897_v56  ;;  %vm3956_vm2 = vweird.f32 %v5349_v2 }
 0x6d9   :  { %5350 = vrsqrt.f32 %v3898_v15  ;;  %v3824_v36 = vmul.f32 %v7503_v21, %v7503_v21  ;;  %vm3957_vm4 = vmor %vm3955_vm3, %vm3956_vm2  ;;  %vm3965_vm6 = vweird.f32 %v3898_v15 }
 0x6da   :  { %v3951_v38 = vmul.f32 %v5349_v2, %v3950_v35 }
 0x6db   :  { %v3862_v13 = vsel %vm111_vm0, %v3824_v36, 0.0 }
 0x6dc   :  { %v3952_v4 = vmul.f32 0.5, %v3951_v38  ;;  %3863 = vadd.xlane.f32.xlu0 %v3862_v13 }
 0x6de   :  { %v3953_v3 = vsub.f32 1.5, %v3952_v4 }
 0x6df   :  { %v5351_v37 = vpop.eup %5350 }
 0x6e0   :  { %v3954_v1 = vmul.f32 %v5349_v2, %v3953_v3  ;;  %v3960_v9 = vmul.f32 %v5351_v37, %v3898_v15  ;;  %vm3966_vm5 = vweird.f32 %v5351_v37 }
 0x6e1   :  { %v3764_v26 = vpop.xlane.xlu1 %3763  ;;  %vm3967_vm7 = vmor %vm3965_vm6, %vm3966_vm5 }
 0x6e2   :  { %v3961_v45 = vmul.f32 %v5351_v37, %v3960_v9  ;;  %v3793_v8 = vmul.f32 %v7301_v27, %v3764_v26  ;;  %v3958_v58 = vsel %vm3957_vm4, %v5349_v2, %v3954_v1 }
 0x6e3   :  { %v4073_v29 = vmul.f32 %v3958_v58, %v7378_v40 }
 0x6e4   :  { %v3962_v0 = vmul.f32 0.5, %v3961_v45  ;;  %v7510_v44 = vsub.f32 %v7402_v10, %v3793_v8 }
 0x6e5   :  { %v4093_v41 = vmul.f32 %v7417_v7, %v4073_v29 }
 0x6e6   :  { %v3963_v24 = vsub.f32 1.5, %v3962_v0  ;;  %v3825_v28 = vmul.f32 %v7510_v44, %v7510_v44 }
 0x6e7   :  { %v4113_v31 = vadd.f32 %v7423_v53, %v4093_v41 }
 0x6e8   :  { %v3964_v39 = vmul.f32 %v5351_v37, %v3963_v24  ;;  %v3865_v59 = vsel %vm111_vm0, %v3825_v28, 0.0 }
 0x6e9   :  { %3866 = vadd.xlane.f32.xlu2 %v3865_v59 }
 0x6ea   :  { %v3968_v60 = vsel %vm3967_vm7, %v5351_v37, %v3964_v39 }
 0x6eb   :  { %v4074_v6 = vmul.f32 %v3968_v60, %v7391_v16  ;;  %v7529_v16 = vld [vmem:[%s7755_s12] ss:$0 sm:$0xff] }
 0x6ed   :  { %v4094_v11 = vmul.f32 %v7417_v7, %v4074_v6 }
 0x6ef   :  { %v4114_v54 = vadd.f32 %v7423_v53, %v4094_v11 }
 0x6f1   :  { %v4127_v30 = vpack.c.bf16 %v4114_v54, %v4113_v31 }
 0x6f3   :  { %4661 = vmatmul.msk.bf16.gmra.mxu1 %vm111_vm0, %v4127_v30 }
 0x711   :  { %v3849_v40 = vpop.xlane.xlu0 %3848 }
 0x712   :  { %v3883_v19 = vmul.f32 %v3849_v40, %v7301_v27 }
 0x714   :  { %v3899_v57 = vadd.f32 1e-05, %v3883_v19 }
 0x716   :  { %5352 = vrsqrt.f32 %v3899_v57  ;;  %vm3975_vm9 = vweird.f32 %v3899_v57 }
 0x717   :  { %v4186_v56 = vpop.f32.mrf.mxu1 }
 0x718   :  { %v7535_v49 = vadd.f32 %v7529_v16, %v4186_v56 }
 0x719   :  { %v3852_v22 = vpop.xlane.xlu2 %3851  ;;  %v3767_v43 = vpop.xlane.xlu0 %3766 }
 0x71a   :  { %v4226_v2 = vmul.f32 %v7535_v49, %v7535_v49  ;;  %v3884_v15 = vmul.f32 %v3852_v22, %v7301_v27  ;;  %v3794_v35 = vmul.f32 %v7301_v27, %v3767_v43 }
 0x71c   :  { %v5353_v36 = vpop.eup %5352  ;;  %v4242_v38 = vmul.f32 %v4226_v2, %v7535_v49  ;;  %v3900_v13 = vadd.f32 1e-05, %v3884_v15  ;;  %v7543_v4 = vsub.f32 %v7443_v55, %v3794_v35 }
 0x71d   :  { %v3970_v3 = vmul.f32 %v5353_v36, %v3899_v57  ;;  %vm3976_vm8 = vweird.f32 %v5353_v36 }
 0x71e   :  { %v4258_v37 = vmul.f32 0.044715, %v4242_v38  ;;  %5354 = vrsqrt.f32 %v3900_v13  ;;  %v3826_v1 = vmul.f32 %v7543_v4, %v7543_v4  ;;  %vm3977_vm10 = vmor %vm3975_vm9, %vm3976_vm8  ;;  %vm3985_vm12 = vweird.f32 %v3900_v13 }
 0x71f   :  { %v3971_v9 = vmul.f32 %v5353_v36, %v3970_v3  ;;  %v4188_v26 = vpop.f32.mrf.mxu1 }
 0x720   :  { %v4274_v45 = vadd.f32 %v4258_v37, %v7535_v49  ;;  %v7549_v8 = vadd.f32 %v7529_v16, %v4188_v26  ;;  %v3868_v58 = vsel %vm111_vm0, %v3826_v1, 0.0 }
 0x721   :  { %v3972_v0 = vmul.f32 0.5, %v3971_v9  ;;  %v3855_v24 = vpop.xlane.xlu2 %3854  ;;  %3869 = vadd.xlane.f32.xlu1 %v3868_v58  ;;  %v3770_v28 = vpop.xlane.xlu0 %3769 }
 0x722   :  { %v4290_v29 = vmul.f32 0.7978846, %v4274_v45  ;;  %v4227_v39 = vmul.f32 %v7549_v8, %v7549_v8  ;;  %v3885_v59 = vmul.f32 %v3855_v24, %v7301_v27  ;;  %v3795_v60 = vmul.f32 %v7301_v27, %v3770_v28 }
 0x723   :  { %v3973_v6 = vsub.f32 1.5, %v3972_v0 }
 0x724   :  { %v5355_v41 = vpop.eup %5354  ;;  %v4243_v11 = vmul.f32 %v4227_v39, %v7549_v8  ;;  %v7557_v31 = vadd.f32 1e-05, %v3885_v59  ;;  %v7560_v54 = vsub.f32 %v7458_v42, %v3795_v60  ;;  %5356 = vtanh.f32 %v4290_v29 }
 0x725   :  { %v3974_v30 = vmul.f32 %v5353_v36, %v3973_v6  ;;  %v3980_v40 = vmul.f32 %v5355_v41, %v3900_v13  ;;  %vm3986_vm11 = vweird.f32 %v5355_v41 }
 0x726   :  { %v4259_v19 = vmul.f32 0.044715, %v4243_v11  ;;  %5358 = vrsqrt.f32 %v7557_v31  ;;  %v3827_v63 = vmul.f32 %v7560_v54, %v7560_v54  ;;  %vm3987_vm13 = vmor %vm3985_vm12, %vm3986_vm11  ;;  %vm3995_vm15 = vweird.f32 %v7557_v31 }
 0x727   :  { %v3981_v56 = vmul.f32 %v5355_v41, %v3980_v40  ;;  %v3978_v43 = vsel %vm3977_vm10, %v5353_v36, %v3974_v30 }
 0x728   :  { %v4275_v25 = vadd.f32 %v4259_v19, %v7549_v8  ;;  %v3871_v22 = vsel %vm111_vm0, %v3827_v63, 0.0  ;;  %v4075_v9 = vmul.f32 %v3978_v43, %v7432_v32 }
 0x729   :  { %v3982_v2 = vmul.f32 0.5, %v3981_v56  ;;  %v3773_v15 = vpop.xlane.xlu2 %3772  ;;  %3872 = vadd.xlane.f32.xlu0 %v3871_v22 }
 0x72a   :  { %v4291_v35 = vmul.f32 0.7978846, %v4275_v25  ;;  %v3796_v38 = vmul.f32 %v7301_v27, %v3773_v15  ;;  %v5357_v3 = vpop.eup %5356  ;;  %v4095_v60 = vmul.f32 %v7417_v7, %v4075_v9 }
 0x72b   :  { %v3983_v37 = vsub.f32 1.5, %v3982_v2  ;;  %v4322_v24 = vadd.f32 1.0, %v5357_v3 }
 0x72c   :  { %v5359_v1 = vpop.eup %5358  ;;  %5360 = vtanh.f32 %v4291_v35  ;;  %v7570_v57 = vsub.f32 %v7473_v48, %v3796_v38  ;;  %v3858_v26 = vpop.xlane.xlu1 %3857  ;;  %v4115_v19 = vadd.f32 %v7423_v53, %v4095_v60 }
 0x72d   :  { %v3984_v45 = vmul.f32 %v5355_v41, %v3983_v37  ;;  %v3990_v36 = vmul.f32 %v5359_v1, %v7557_v31  ;;  %v3886_v58 = vmul.f32 %v3858_v26, %v7301_v27  ;;  %v4338_v30 = vmul.f32 0.5, %v4322_v24 }
 0x72e   :  { %v3828_v0 = vmul.f32 %v7570_v57, %v7570_v57  ;;  %vm3996_vm14 = vweird.f32 %v5359_v1 }
 0x72f   :  { %v3988_v28 = vsel %vm3987_vm13, %v5355_v41, %v3984_v45  ;;  %v3991_v29 = vmul.f32 %v5359_v1, %v3990_v36  ;;  %v3902_v39 = vadd.f32 1e-05, %v3886_v58  ;;  %v4354_v25 = vmul.f32 %v4338_v30, %v7535_v49  ;;  %vm3997_vm1 = vmor %vm3995_vm15, %vm3996_vm14 }
 0x730   :  { %v4076_v32 = vmul.f32 %v3988_v28, %v7446_v62  ;;  %v3874_v59 = vsel %vm111_vm0, %v3828_v0, 0.0 }
 0x731   :  { %v3992_v6 = vmul.f32 0.5, %v3991_v29  ;;  %3875 = vadd.xlane.f32.xlu2 %v3874_v59  ;;  %5362 = vrsqrt.f32 %v3902_v39  ;;  %vm4005_vm3 = vweird.f32 %v3902_v39 }
 0x732   :  { %v5361_v13 = vpop.eup %5360  ;;  %v4096_v11 = vmul.f32 %v7417_v7, %v4076_v32 }
 0x733   :  { %v4323_v40 = vadd.f32 1.0, %v5361_v13  ;;  %v3993_v56 = vsub.f32 1.5, %v3992_v6 }
 0x734   :  { %v4116_v41 = vadd.f32 %v7423_v53, %v4096_v11  ;;  %v3861_v43 = vpop.xlane.xlu1 %3860 }
 0x735   :  { %v4339_v63 = vmul.f32 0.5, %v4323_v40  ;;  %v3994_v35 = vmul.f32 %v5359_v1, %v3993_v56  ;;  %v3887_v3 = vmul.f32 %v3861_v43, %v7301_v27 }
 0x736   :  { %v4128_v62 = vpack.c.bf16 %v4116_v41, %v4115_v19 }
 0x737   :  { %v4355_v22 = vmul.f32 %v4339_v63, %v7549_v8  ;;  %v5363_v2 = vpop.eup %5362  ;;  %v3998_v9 = vsel %vm3997_vm1, %v5359_v1, %v3994_v35  ;;  %v3903_v26 = vadd.f32 1e-05, %v3887_v3 }
 0x738   :  { %4662 = vmatmul.msk.bf16.gmra.mxu1 %vm111_vm0, %v4128_v62  ;;  %v4000_v38 = vmul.f32 %v5363_v2, %v3902_v39  ;;  %vm4006_vm2 = vweird.f32 %v5363_v2  ;;  %v4077_v45 = vmul.f32 %v3998_v9, %v7461_v33 }
 0x739   :  { %v4370_v15 = vpack.c.bf16 %v4355_v22, %v4354_v25  ;;  %vm4007_vm4 = vmor %vm4005_vm3, %vm4006_vm2  ;;  %5364 = vrsqrt.f32 %v3903_v26  ;;  %vm4015_vm6 = vweird.f32 %v3903_v26 }
 0x73a   :  { %v4001_v37 = vmul.f32 %v5363_v2, %v4000_v38  ;;  %v4097_v31 = vmul.f32 %v7417_v7, %v4077_v45 }
 0x73b   :  { %4675 = vmatmul.msk.bf16.vlgmr.msra.gmra.mxu2 %vm111_vm0, %v4370_v15 }
 0x73c   :  { %v4002_v49 = vmul.f32 0.5, %v4001_v37  ;;  %v4117_v1 = vadd.f32 %v7423_v53, %v4097_v31 }
 0x73e   :  { %v4003_v8 = vsub.f32 1.5, %v4002_v49 }
 0x73f   :  { %v5365_v28 = vpop.eup %5364 }
 0x740   :  { %v4004_v36 = vmul.f32 %v5363_v2, %v4003_v8  ;;  %v4010_v59 = vmul.f32 %v5365_v28, %v3903_v26  ;;  %vm4016_vm5 = vweird.f32 %v5365_v28 }
 0x741   :  { %vm4017_vm7 = vmor %vm4015_vm6, %vm4016_vm5 }
 0x742   :  { %v4008_v58 = vsel %vm4007_vm4, %v5363_v2, %v4004_v36  ;;  %v4011_v60 = vmul.f32 %v5365_v28, %v4010_v59 }
 0x743   :  { %v4078_v0 = vmul.f32 %v4008_v58, %v7478_v5 }
 0x744   :  { %v4012_v40 = vmul.f32 0.5, %v4011_v60 }
 0x745   :  { %v4098_v24 = vmul.f32 %v7417_v7, %v4078_v0 }
 0x746   :  { %v4013_v62 = vsub.f32 1.5, %v4012_v40 }
 0x747   :  { %v4118_v29 = vadd.f32 %v7423_v53, %v4098_v24 }
 0x748   :  { %v4014_v15 = vmul.f32 %v5365_v28, %v4013_v62 }
 0x749   :  { %v4129_v32 = vpack.c.bf16 %v4118_v29, %v4117_v1 }
 0x74a   :  { %v4018_v9 = vsel %vm4017_vm7, %v5365_v28, %v4014_v15 }
 0x74b   :  { %4663 = vmatmul.msk.bf16.gmra.mxu1 %vm111_vm0, %v4129_v32  ;;  %v4079_v58 = vmul.f32 %v4018_v9, %v7487_v23 }
 0x74d   :  { %v4191_v33 = vpop.f32.mrf.mxu1  ;;  %v4099_v26 = vmul.f32 %v7417_v7, %v4079_v58 }
 0x74e   :  { %v4192_v39 = vadd.f32 %v7529_v16, %v4191_v33 }
 0x74f   :  { %v3864_v6 = vpop.xlane.xlu0 %3863  ;;  %v4119_v33 = vadd.f32 %v7423_v53, %v4099_v26 }
 0x750   :  { %v4228_v13 = vmul.f32 %v4192_v39, %v4192_v39  ;;  %v3888_v5 = vmul.f32 %v3864_v6, %v7301_v27 }
 0x752   :  { %v4244_v11 = vmul.f32 %v4228_v13, %v4192_v39  ;;  %v3904_v30 = vadd.f32 1e-05, %v3888_v5 }
 0x754   :  { %v4260_v19 = vmul.f32 0.044715, %v4244_v11  ;;  %5366 = vrsqrt.f32 %v3904_v30  ;;  %vm4025_vm9 = vweird.f32 %v3904_v30 }
 0x755   :  { %v4193_v41 = vpop.f32.mrf.mxu1 }
 0x756   :  { %v4276_v63 = vadd.f32 %v4260_v19, %v4192_v39  ;;  %v4194_v56 = vadd.f32 %v7529_v16, %v4193_v41 }
 0x758   :  { %v4292_v25 = vmul.f32 0.7978846, %v4276_v63  ;;  %v4229_v22 = vmul.f32 %v4194_v56, %v4194_v56 }
 0x75a   :  { %v5367_v43 = vpop.eup %5366  ;;  %v4245_v2 = vmul.f32 %v4229_v22, %v4194_v56  ;;  %5368 = vtanh.f32 %v4292_v25 }
 0x75b   :  { %v4020_v35 = vmul.f32 %v5367_v43, %v3904_v30  ;;  %vm4026_vm8 = vweird.f32 %v5367_v43 }
 0x75c   :  { %v4261_v38 = vmul.f32 0.044715, %v4245_v2  ;;  %vm4027_vm10 = vmor %vm4025_vm9, %vm4026_vm8  ;;  %v3867_v2 = vpop.xlane.xlu2 %3866 }
 0x75d   :  { %v4021_v3 = vmul.f32 %v5367_v43, %v4020_v35 }
 0x75e   :  { %v4277_v37 = vadd.f32 %v4261_v38, %v4194_v56 }
 0x75f   :  { %v4022_v49 = vmul.f32 0.5, %v4021_v3 }
 0x760   :  { %v4293_v8 = vmul.f32 0.7978846, %v4277_v37  ;;  %v5369_v36 = vpop.eup %5368 }
 0x761   :  { %v4023_v45 = vsub.f32 1.5, %v4022_v49  ;;  %v4324_v31 = vadd.f32 1.0, %v5369_v36 }
 0x762   :  { %5370 = vtanh.f32 %v4293_v8 }
 0x763   :  { %v4024_v0 = vmul.f32 %v5367_v43, %v4023_v45  ;;  %v4340_v32 = vmul.f32 0.5, %v4324_v31 }
 0x765   :  { %v4028_v24 = vsel %vm4027_vm10, %v5367_v43, %v4024_v0  ;;  %v4356_v13 = vmul.f32 %v4340_v32, %v4192_v39 }
 0x766   :  { %v4080_v1 = vmul.f32 %v4028_v24, %v7503_v21 }
 0x768   :  { %v5371_v29 = vpop.eup %5370  ;;  %v4100_v28 = vmul.f32 %v7417_v7, %v4080_v1 }
 0x769   :  { %v4325_v59 = vadd.f32 1.0, %v5371_v29 }
 0x76a   :  { %v4120_v60 = vadd.f32 %v7423_v53, %v4100_v28 }
 0x76b   :  { %v4341_v23 = vmul.f32 0.5, %v4325_v59 }
 0x76c   :  { %v4130_v6 = vpack.c.bf16 %v4120_v60, %v4119_v33 }
 0x76d   :  { %v4357_v5 = vmul.f32 %v4341_v23, %v4194_v56  ;;  %v3889_v56 = vmul.f32 %v3867_v2, %v7301_v27 }
 0x76e   :  { %4664 = vmatmul.msk.bf16.gmra.mxu1 %vm111_vm0, %v4130_v6 }
 0x76f   :  { %v4371_v11 = vpack.c.bf16 %v4357_v5, %v4356_v13  ;;  %v3905_v38 = vadd.f32 1e-05, %v3889_v56 }
 0x770   :  { %v4196_v30 = vpop.f32.mrf.mxu1 }
 0x771   :  { %v4197_v21 = vadd.f32 %v7529_v16, %v4196_v30  ;;  %4676 = vmatmul.msk.bf16.gmra.mxu2 %vm111_vm0, %v4371_v11  ;;  %vm4035_vm12 = vweird.f32 %v3905_v38 }
 0x773   :  { %v4230_v40 = vmul.f32 %v4197_v21, %v4197_v21 }
 0x775   :  { %v4246_v19 = vmul.f32 %v4230_v40, %v4197_v21 }
 0x777   :  { %v4262_v41 = vmul.f32 0.044715, %v4246_v19 }
 0x778   :  { %v4198_v63 = vpop.f32.mrf.mxu1 }
 0x779   :  { %v4278_v62 = vadd.f32 %v4262_v41, %v4197_v21  ;;  %v4199_v25 = vadd.f32 %v7529_v16, %v4198_v63 }
 0x77b   :  { %v4294_v22 = vmul.f32 0.7978846, %v4278_v62  ;;  %v4231_v43 = vmul.f32 %v4199_v25, %v4199_v25 }
 0x77d   :  { %v4247_v39 = vmul.f32 %v4231_v43, %v4199_v25  ;;  %5372 = vtanh.f32 %v4294_v22 }
 0x77f   :  { %v4263_v15 = vmul.f32 0.044715, %v4247_v39 }
 0x781   :  { %v4279_v35 = vadd.f32 %v4263_v15, %v4199_v25 }
 0x783   :  { %v4295_v3 = vmul.f32 0.7978846, %v4279_v35  ;;  %v5373_v37 = vpop.eup %5372 }
 0x784   :  { %v4326_v9 = vadd.f32 1.0, %v5373_v37 }
 0x785   :  { %5374 = vtanh.f32 %v4295_v3 }
 0x786   :  { %5376 = vrsqrt.f32 %v3905_v38  ;;  %v4342_v8 = vmul.f32 0.5, %v4326_v9 }
 0x788   :  { %v4358_v31 = vmul.f32 %v4342_v8, %v4197_v21 }
 0x78b   :  { %v5375_v49 = vpop.eup %5374 }
 0x78c   :  { %v4327_v45 = vadd.f32 1.0, %v5375_v49  ;;  %v5377_v36 = vpop.eup %5376 }
 0x78d   :  { %v4030_v0 = vmul.f32 %v5377_v36, %v3905_v38  ;;  %vm4036_vm11 = vweird.f32 %v5377_v36 }
 0x78e   :  { %v4343_v58 = vmul.f32 0.5, %v4327_v45  ;;  %vm4037_vm13 = vmor %vm4035_vm12, %vm4036_vm11 }
 0x78f   :  { %v4031_v26 = vmul.f32 %v5377_v36, %v4030_v0 }
 0x790   :  { %v4359_v24 = vmul.f32 %v4343_v58, %v4199_v25 }
 0x791   :  { %v4032_v59 = vmul.f32 0.5, %v4031_v26 }
 0x792   :  { %v4372_v1 = vpack.c.bf16 %v4359_v24, %v4358_v31 }
 0x793   :  { %v4033_v33 = vsub.f32 1.5, %v4032_v59 }
 0x794   :  { %4677 = vmatmul.msk.bf16.gmra.mxu2 %vm111_vm0, %v4372_v1  ;;  %v3870_v29 = vpop.xlane.xlu1 %3869 }
 0x795   :  { %v3890_v28 = vmul.f32 %v3870_v29, %v7301_v27  ;;  %v4034_v5 = vmul.f32 %v5377_v36, %v4033_v33  ;;  %v7626_v33 = vld [vmem:[%s7757_s14] ss:$0 sm:$0xff] }
 0x797   :  { %v3906_v32 = vadd.f32 1e-05, %v3890_v28  ;;  %v4038_v21 = vsel %vm4037_vm13, %v5377_v36, %v4034_v5 }
 0x798   :  { %v4081_v25 = vmul.f32 %v4038_v21, %v7510_v44 }
 0x799   :  { %5378 = vrsqrt.f32 %v3906_v32  ;;  %vm4045_vm15 = vweird.f32 %v3906_v32 }
 0x79a   :  { %v4101_v35 = vmul.f32 %v7417_v7, %v4081_v25 }
 0x79c   :  { %v3873_v60 = vpop.xlane.xlu0 %3872  ;;  %v4121_v9 = vadd.f32 %v7423_v53, %v4101_v35 }
 0x79d   :  { %v3891_v23 = vmul.f32 %v3873_v60, %v7301_v27 }
 0x79f   :  { %v5379_v6 = vpop.eup %5378  ;;  %v3907_v13 = vadd.f32 1e-05, %v3891_v23 }
 0x7a0   :  { %v4040_v11 = vmul.f32 %v5379_v6, %v3906_v32  ;;  %vm4046_vm14 = vweird.f32 %v5379_v6 }
 0x7a1   :  { %5380 = vrsqrt.f32 %v3907_v13  ;;  %vm4047_vm1 = vmor %vm4045_vm15, %vm4046_vm14  ;;  %vm4055_vm3 = vweird.f32 %v3907_v13 }
 0x7a2   :  { %v4041_v30 = vmul.f32 %v5379_v6, %v4040_v11 }
 0x7a4   :  { %v4042_v40 = vmul.f32 0.5, %v4041_v30  ;;  %v3876_v19 = vpop.xlane.xlu2 %3875 }
 0x7a5   :  { %v3892_v41 = vmul.f32 %v3876_v19, %v7301_v27 }
 0x7a6   :  { %v4043_v63 = vsub.f32 1.5, %v4042_v40 }
 0x7a7   :  { %v5381_v62 = vpop.eup %5380  ;;  %v3908_v22 = vadd.f32 1e-05, %v3892_v41 }
 0x7a8   :  { %v4044_v43 = vmul.f32 %v5379_v6, %v4043_v63  ;;  %v4050_v2 = vmul.f32 %v5381_v62, %v3907_v13  ;;  %vm4056_vm2 = vweird.f32 %v5381_v62 }
 0x7a9   :  { %5382 = vrsqrt.f32 %v3908_v22  ;;  %vm4057_vm4 = vmor %vm4055_vm3, %vm4056_vm2  ;;  %vm4065_vm6 = vweird.f32 %v3908_v22 }
 0x7aa   :  { %v4048_v39 = vsel %vm4047_vm1, %v5379_v6, %v4044_v43  ;;  %v4051_v56 = vmul.f32 %v5381_v62, %v4050_v2 }
 0x7ab   :  { %v4082_v15 = vmul.f32 %v4048_v39, %v7543_v4 }
 0x7ac   :  { %v4052_v38 = vmul.f32 0.5, %v4051_v56 }
 0x7ad   :  { %v4102_v27 = vmul.f32 %v7417_v7, %v4082_v15 }
 0x7ae   :  { %v4053_v3 = vsub.f32 1.5, %v4052_v38 }
 0x7af   :  { %v5383_v37 = vpop.eup %5382  ;;  %v4122_v44 = vadd.f32 %v7423_v53, %v4102_v27 }
 0x7b0   :  { %v4054_v49 = vmul.f32 %v5381_v62, %v4053_v3  ;;  %v4060_v8 = vmul.f32 %v5383_v37, %v3908_v22  ;;  %vm4066_vm5 = vweird.f32 %v5383_v37 }
 0x7b1   :  { %v4131_v45 = vpack.c.bf16 %v4122_v44, %v4121_v9  ;;  %vm4067_vm7 = vmor %vm4065_vm6, %vm4066_vm5 }
 0x7b2   :  { %v4061_v36 = vmul.f32 %v5383_v37, %v4060_v8  ;;  %v4058_v4 = vsel %vm4057_vm4, %v5381_v62, %v4054_v49 }
 0x7b3   :  { %4665 = vmatmul.msk.bf16.gmra.mxu1 %vm111_vm0, %v4131_v45  ;;  %v4083_v1 = vmul.f32 %v4058_v4, %v7560_v54 }
 0x7b4   :  { %v4062_v58 = vmul.f32 0.5, %v4061_v36 }
 0x7b5   :  { %v4201_v0 = vpop.f32.mrf.mxu1  ;;  %v4103_v60 = vmul.f32 %v7417_v7, %v4083_v1 }
 0x7b6   :  { %v4063_v31 = vsub.f32 1.5, %v4062_v58  ;;  %v4202_v24 = vadd.f32 %v7529_v16, %v4201_v0 }
 0x7b7   :  { %v4123_v21 = vadd.f32 %v7423_v53, %v4103_v60 }
 0x7b8   :  { %v4064_v26 = vmul.f32 %v5383_v37, %v4063_v31  ;;  %v4232_v29 = vmul.f32 %v4202_v24, %v4202_v24 }
 0x7ba   :  { %v4068_v28 = vsel %vm4067_vm7, %v5383_v37, %v4064_v26  ;;  %v4248_v32 = vmul.f32 %v4232_v29, %v4202_v24 }
 0x7bb   :  { %v4084_v59 = vmul.f32 %v4068_v28, %v7570_v57 }
 0x7bc   :  { %v4264_v23 = vmul.f32 0.044715, %v4248_v32 }
 0x7bd   :  { %v4203_v6 = vpop.f32.mrf.mxu1  ;;  %v4104_v13 = vmul.f32 %v7417_v7, %v4084_v59 }
 0x7be   :  { %v4280_v54 = vadd.f32 %v4264_v23, %v4202_v24  ;;  %v4204_v5 = vadd.f32 %v7529_v16, %v4203_v6  ;;  %v4431_v11 = vpop.f32.mrf.mxu2 }
 0x7bf   :  { %v4432_v30 = vadd.f32 %v7626_v33, %v4431_v11  ;;  %v4124_v57 = vadd.f32 %v7423_v53, %v4104_v13 }
 0x7c0   :  { %v4296_v40 = vmul.f32 0.7978846, %v4280_v54  ;;  %v4233_v19 = vmul.f32 %v4204_v5, %v4204_v5 }
 0x7c1   :  { %v4471_v41 = vadd.f32 %v4432_v30, %v7216_v46  ;;  %v4132_v63 = vpack.c.bf16 %v4124_v57, %v4123_v21 }
 0x7c2   :  { %v4249_v62 = vmul.f32 %v4233_v19, %v4204_v5  ;;  %5384 = vtanh.f32 %v4296_v40 }
 0x7c3   :  { %4487 = vst.msk [vmem:[%s7758_s15] sm:$0xff] %vm111_vm0, %v4471_v41  ;;  %4666 = vmatmul.msk.bf16.gmra.mxu1 %vm111_vm0, %v4132_v63 }
 0x7c4   :  { %v4265_v7 = vmul.f32 0.044715, %v4249_v62 }
 0x7c6   :  { %v4281_v25 = vadd.f32 %v4265_v7, %v4204_v5  ;;  %v4433_v22 = vpop.f32.mrf.mxu2 }
 0x7c7   :  { %v4434_v43 = vadd.f32 %v7626_v33, %v4433_v22 }
 0x7c8   :  { %v4297_v53 = vmul.f32 0.7978846, %v4281_v25  ;;  %v4206_v39 = vpop.f32.mrf.mxu1  ;;  %v5385_v46 = vpop.eup %5384 }
 0x7c9   :  { %v4472_v2 = vadd.f32 %v4434_v43, %v7225_v34  ;;  %v4207_v56 = vadd.f32 %v7529_v16, %v4206_v39  ;;  %v4328_v35 = vadd.f32 1.0, %v5385_v46 }
 0x7ca   :  { %5386 = vtanh.f32 %v4297_v53 }
 0x7cb   :  { %4488 = vst.msk [vmem:[%s7758_s15 + $0x8] sm:$0xff] %vm111_vm0, %v4472_v2  ;;  %v4234_v15 = vmul.f32 %v4207_v56, %v4207_v56  ;;  %v4344_v37 = vmul.f32 0.5, %v4328_v35 }
 0x7cd   :  { %v4250_v38 = vmul.f32 %v4234_v15, %v4207_v56  ;;  %v4360_v4 = vmul.f32 %v4344_v37, %v4202_v24 }
 0x7cf   :  { %v4266_v3 = vmul.f32 0.044715, %v4250_v38 }
 0x7d0   :  { %v5387_v27 = vpop.eup %5386  ;;  %v4208_v44 = vpop.f32.mrf.mxu1 }
 0x7d1   :  { %v4329_v9 = vadd.f32 1.0, %v5387_v27  ;;  %v4282_v49 = vadd.f32 %v4266_v3, %v4207_v56  ;;  %v4209_v34 = vadd.f32 %v7529_v16, %v4208_v44 }
 0x7d3   :  { %v4345_v8 = vmul.f32 0.5, %v4329_v9  ;;  %v4298_v45 = vmul.f32 0.7978846, %v4282_v49  ;;  %v4235_v36 = vmul.f32 %v4209_v34, %v4209_v34 }
 0x7d5   :  { %v4361_v58 = vmul.f32 %v4345_v8, %v4204_v5  ;;  %v4251_v0 = vmul.f32 %v4235_v36, %v4209_v34  ;;  %5388 = vtanh.f32 %v4298_v45 }
 0x7d7   :  { %v4373_v31 = vpack.c.bf16 %v4361_v58, %v4360_v4  ;;  %v4267_v1 = vmul.f32 0.044715, %v4251_v0 }
 0x7d9   :  { %4678 = vmatmul.msk.bf16.gmra.mxu2 %vm111_vm0, %v4373_v31  ;;  %v4283_v26 = vadd.f32 %v4267_v1, %v4209_v34 }
 0x7db   :  { %v4299_v29 = vmul.f32 0.7978846, %v4283_v26  ;;  %v5389_v28 = vpop.eup %5388 }
 0x7dc   :  { %v4330_v32 = vadd.f32 1.0, %v5389_v28 }
 0x7dd   :  { %5390 = vtanh.f32 %v4299_v29 }
 0x7de   :  { %v4346_v60 = vmul.f32 0.5, %v4330_v32 }
 0x7e0   :  { %v4362_v13 = vmul.f32 %v4346_v60, %v4207_v56 }
 0x7e3   :  { %v5391_v59 = vpop.eup %5390 }
 0x7e4   :  { %v4331_v23 = vadd.f32 1.0, %v5391_v59 }
 0x7e6   :  { %v4347_v6 = vmul.f32 0.5, %v4331_v23 }
 0x7e8   :  { %v4363_v54 = vmul.f32 %v4347_v6, %v4209_v34 }
 0x7ea   :  { %v4374_v24 = vpack.c.bf16 %v4363_v54, %v4362_v13 }
 0x7eb   :  { %v4211_v11 = vpop.f32.mrf.mxu1 }
 0x7ec   :  { %v4212_v5 = vadd.f32 %v7529_v16, %v4211_v11  ;;  %4679 = vmatmul.msk.bf16.gmra.mxu2 %vm111_vm0, %v4374_v24 }
 0x7ee   :  { %v4236_v30 = vmul.f32 %v4212_v5, %v4212_v5 }
 0x7f0   :  { %v4252_v21 = vmul.f32 %v4236_v30, %v4212_v5 }
 0x7f2   :  { %v4268_v57 = vmul.f32 0.044715, %v4252_v21 }
 0x7f3   :  { %v4213_v40 = vpop.f32.mrf.mxu1 }
 0x7f4   :  { %v4284_v19 = vadd.f32 %v4268_v57, %v4212_v5  ;;  %v4214_v41 = vadd.f32 %v7529_v16, %v4213_v40  ;;  %v4436_v63 = vpop.f32.mrf.mxu2 }
 0x7f5   :  { %v4437_v62 = vadd.f32 %v7626_v33, %v4436_v63 }
 0x7f6   :  { %v4300_v7 = vmul.f32 0.7978846, %v4284_v19  ;;  %v4237_v25 = vmul.f32 %v4214_v41, %v4214_v41 }
 0x7f7   :  { %v4473_v22 = vadd.f32 %v4437_v62, %v7255_v50 }
 0x7f8   :  { %v4253_v43 = vmul.f32 %v4237_v25, %v4214_v41  ;;  %5392 = vtanh.f32 %v4300_v7 }
 0x7f9   :  { %4489 = vst.msk [vmem:[%s7758_s15 + $0x10] sm:$0xff] %vm111_vm0, %v4473_v22 }
 0x7fa   :  { %v4269_v53 = vmul.f32 0.044715, %v4253_v43 }
 0x7fc   :  { %v4285_v2 = vadd.f32 %v4269_v53, %v4214_v41  ;;  %v4438_v39 = vpop.f32.mrf.mxu2 }
 0x7fd   :  { %v4439_v46 = vadd.f32 %v7626_v33, %v4438_v39 }
 0x7fe   :  { %v4301_v56 = vmul.f32 0.7978846, %v4285_v2  ;;  %v5393_v35 = vpop.eup %5392 }
 0x7ff   :  { %v4474_v15 = vadd.f32 %v4439_v46, %v7267_v52  ;;  %v4332_v50 = vadd.f32 1.0, %v5393_v35 }
 0x800   :  { %5394 = vtanh.f32 %v4301_v56 }
 0x801   :  { %4490 = vst.msk [vmem:[%s7758_s15 + $0x18] sm:$0xff] %vm111_vm0, %v4474_v15  ;;  %v4348_v27 = vmul.f32 0.5, %v4332_v50 }
 0x803   :  { %v4364_v9 = vmul.f32 %v4348_v27, %v4212_v5 }
 0x806   :  { %v5395_v38 = vpop.eup %5394 }
 0x807   :  { %v4333_v3 = vadd.f32 1.0, %v5395_v38 }
 0x809   :  { %v4349_v37 = vmul.f32 0.5, %v4333_v3 }
 0x80b   :  { %v4365_v44 = vmul.f32 %v4349_v37, %v4214_v41 }
 0x80d   :  { %v4375_v49 = vpack.c.bf16 %v4365_v44, %v4364_v9 }
 0x80f   :  { %4680 = vmatmul.msk.bf16.gmra.mxu2 %vm111_vm0, %v4375_v49 }
 0x817   :  { %v4441_v34 = vpop.f32.mrf.mxu2 }
 0x818   :  { %v4442_v52 = vadd.f32 %v7626_v33, %v4441_v34 }
 0x81a   :  { %v4475_v8 = vadd.f32 %v4442_v52, %v7276_v17 }
 0x81c   :  { %4491 = vst.msk [vmem:[%s7758_s15 + $0x20] sm:$0xff] %vm111_vm0, %v4475_v8 }
 0x81f   :  { %v4443_v45 = vpop.f32.mrf.mxu2 }
 0x820   :  { %v4444_v36 = vadd.f32 %v7626_v33, %v4443_v45 }
 0x822   :  { %v4476_v4 = vadd.f32 %v4444_v36, %v7284_v61 }
 0x824   :  { %4492 = vst.msk [vmem:[%s7758_s15 + $0x28] sm:$0xff] %vm111_vm0, %v4476_v4 }
 0x830   :  { %v4216_v58 = vpop.f32.mrf.mxu1 }
 0x831   :  { %v4217_v0 = vadd.f32 %v7529_v16, %v4216_v58 }
 0x833   :  { %v4238_v31 = vmul.f32 %v4217_v0, %v4217_v0 }
 0x835   :  { %v4254_v17 = vmul.f32 %v4238_v31, %v4217_v0 }
 0x837   :  { %v4270_v1 = vmul.f32 0.044715, %v4254_v17 }
 0x838   :  { %v4218_v26 = vpop.f32.mrf.mxu1 }
 0x839   :  { %v4286_v29 = vadd.f32 %v4270_v1, %v4217_v0  ;;  %v4219_v28 = vadd.f32 %v7529_v16, %v4218_v26 }
 0x83b   :  { %v4302_v32 = vmul.f32 0.7978846, %v4286_v29  ;;  %v4239_v59 = vmul.f32 %v4219_v28, %v4219_v28 }
 0x83d   :  { %v4255_v60 = vmul.f32 %v4239_v59, %v4219_v28  ;;  %5396 = vtanh.f32 %v4302_v32 }
 0x83f   :  { %v4271_v61 = vmul.f32 0.044715, %v4255_v60 }
 0x840   :  { %v4221_v23 = vpop.f32.mrf.mxu1 }
 0x841   :  { %v4287_v6 = vadd.f32 %v4271_v61, %v4219_v28  ;;  %v4222_v13 = vadd.f32 %v7529_v16, %v4221_v23 }
 0x843   :  { %v4303_v54 = vmul.f32 0.7978846, %v4287_v6  ;;  %v4240_v11 = vmul.f32 %v4222_v13, %v4222_v13  ;;  %v5397_v24 = vpop.eup %5396 }
 0x844   :  { %v4334_v21 = vadd.f32 1.0, %v5397_v24 }
 0x845   :  { %5398 = vtanh.f32 %v4303_v54  ;;  %v4256_v5 = vmul.f32 %v4240_v11, %v4222_v13 }
 0x846   :  { %v4350_v7 = vmul.f32 0.5, %v4334_v21 }
 0x847   :  { %v4272_v30 = vmul.f32 0.044715, %v4256_v5 }
 0x848   :  { %v4223_v57 = vpop.f32.mrf.mxu1  ;;  %v4366_v2 = vmul.f32 %v4350_v7, %v4217_v0 }
 0x849   :  { %v4288_v40 = vadd.f32 %v4272_v30, %v4222_v13  ;;  %v4224_v19 = vadd.f32 %v7529_v16, %v4223_v57 }
 0x84b   :  { %v5399_v41 = vpop.eup %5398  ;;  %v4304_v63 = vmul.f32 0.7978846, %v4288_v40  ;;  %v4241_v62 = vmul.f32 %v4224_v19, %v4224_v19 }
 0x84c   :  { %v4335_v25 = vadd.f32 1.0, %v5399_v41 }
 0x84d   :  { %v4257_v22 = vmul.f32 %v4241_v62, %v4224_v19  ;;  %5400 = vtanh.f32 %v4304_v63 }
 0x84e   :  { %v4351_v43 = vmul.f32 0.5, %v4335_v25 }
 0x84f   :  { %v4273_v53 = vmul.f32 0.044715, %v4257_v22 }
 0x850   :  { %v4367_v39 = vmul.f32 %v4351_v43, %v4219_v28 }
 0x851   :  { %v4289_v46 = vadd.f32 %v4273_v53, %v4224_v19 }
 0x852   :  { %v4376_v56 = vpack.c.bf16 %v4367_v39, %v4366_v2 }
 0x853   :  { %v4305_v15 = vmul.f32 0.7978846, %v4289_v46  ;;  %v5401_v35 = vpop.eup %5400 }
 0x854   :  { %4681 = vmatmul.msk.bf16.vlgmr.msra.gmra.mxu3 %vm111_vm0, %v4376_v56  ;;  %v4336_v50 = vadd.f32 1.0, %v5401_v35 }
 0x855   :  { %5402 = vtanh.f32 %v4305_v15 }
 0x856   :  { %v4352_v38 = vmul.f32 0.5, %v4336_v50 }
 0x858   :  { %v4368_v49 = vmul.f32 %v4352_v38, %v4222_v13 }
 0x85b   :  { %v5403_v16 = vpop.eup %5402 }
 0x85c   :  { %v4337_v27 = vadd.f32 1.0, %v5403_v16  ;;  %v4446_v3 = vpop.f32.mrf.mxu2 }
 0x85d   :  { %v4447_v37 = vadd.f32 %v7626_v33, %v4446_v3 }
 0x85e   :  { %v4353_v9 = vmul.f32 0.5, %v4337_v27 }
 0x85f   :  { %v4477_v44 = vadd.f32 %v4447_v37, %v7326_v14 }
 0x860   :  { %v4369_v34 = vmul.f32 %v4353_v9, %v4224_v19 }
 0x861   :  { %4493 = vst.msk [vmem:[%s7758_s15 + $0x30] sm:$0xff] %vm111_vm0, %v4477_v44 }
 0x862   :  { %v4377_v52 = vpack.c.bf16 %v4369_v34, %v4368_v49 }
 0x864   :  { %v4448_v8 = vpop.f32.mrf.mxu2  ;;  %4682 = vmatmul.msk.bf16.gmra.mxu3 %vm111_vm0, %v4377_v52 }
 0x865   :  { %v4449_v45 = vadd.f32 %v7626_v33, %v4448_v8 }
 0x867   :  { %v4478_v36 = vadd.f32 %v4449_v45, %v7334_v47 }
 0x869   :  { %4494 = vst.msk [vmem:[%s7758_s15 + $0x38] sm:$0xff] %vm111_vm0, %v4478_v36 }
 0x86f   :  { %v4451_v14 = vpop.f32.mrf.mxu2 }
 0x870   :  { %v4452_v4 = vadd.f32 %v7626_v33, %v4451_v14 }
 0x872   :  { %v4479_v58 = vadd.f32 %v4452_v4, %v7343_v12 }
 0x874   :  { %4495 = vst.msk [vmem:[%s7758_s15 + $0x40] sm:$0xff] %vm111_vm0, %v4479_v58 }
 0x877   :  { %v4453_v0 = vpop.f32.mrf.mxu2 }
 0x878   :  { %v4454_v31 = vadd.f32 %v7626_v33, %v4453_v0 }
 0x87a   :  { %v4480_v47 = vadd.f32 %v4454_v31, %v7358_v51 }
 0x87c   :  { %4496 = vst.msk [vmem:[%s7758_s15 + $0x48] sm:$0xff] %vm111_vm0, %v4480_v47 }
 0x892   :  { %v4456_v17 = vpop.f32.mrf.mxu2 }
 0x893   :  { %v4457_v1 = vadd.f32 %v7626_v33, %v4456_v17 }
 0x895   :  { %v4481_v12 = vadd.f32 %v4457_v1, %v7372_v18 }
 0x897   :  { %4497 = vst.msk [vmem:[%s7758_s15 + $0x50] sm:$0xff] %vm111_vm0, %v4481_v12 }
 0x89a   :  { %v4458_v26 = vpop.f32.mrf.mxu2 }
 0x89b   :  { %v4459_v29 = vadd.f32 %v7626_v33, %v4458_v26 }
 0x89d   :  { %v4482_v51 = vadd.f32 %v4459_v29, %v7388_v20 }
 0x89f   :  { %4498 = vst.msk [vmem:[%s7758_s15 + $0x58] sm:$0xff] %vm111_vm0, %v4482_v51 }
 0x8d7   :  { %v4461_v28 = vpop.f32.mrf.mxu3 }
 0x8d8   :  { %v4462_v32 = vadd.f32 %v7626_v33, %v4461_v28 }
 0x8da   :  { %v4483_v18 = vadd.f32 %v4462_v32, %v7402_v10 }
 0x8dc   :  { %4499 = vst.msk [vmem:[%s7758_s15 + $0x60] sm:$0xff] %vm111_vm0, %v4483_v18 }
 0x8df   :  { %v4463_v59 = vpop.f32.mrf.mxu3 }
 0x8e0   :  { %v4464_v60 = vadd.f32 %v7626_v33, %v4463_v59 }
 0x8e2   :  { %v4484_v20 = vadd.f32 %v4464_v60, %v7443_v55 }
 0x8e4   :  { %4500 = vst.msk [vmem:[%s7758_s15 + $0x68] sm:$0xff] %vm111_vm0, %v4484_v20 }
 0x8e7   :  { %v4466_v61 = vpop.f32.mrf.mxu3 }
 0x8e8   :  { %v4467_v23 = vadd.f32 %v7626_v33, %v4466_v61 }
 0x8ea   :  { %v4485_v10 = vadd.f32 %v4467_v23, %v7458_v42 }
 0x8ec   :  { %4501 = vst.msk [vmem:[%s7758_s15 + $0x70] sm:$0xff] %vm111_vm0, %v4485_v10 }
 0x8ef   :  { %v4468_v6 = vpop.f32.mrf.mxu3 }
 0x8f0   :  { %v4469_v13 = vadd.f32 %v7626_v33, %v4468_v6 }
 0x8f2   :  { %v4486_v55 = vadd.f32 %v4469_v13, %v7473_v48 }
 0x8f4   :  { %4502 = vst.msk [vmem:[%s7758_s15 + $0x78] sm:$0xff] %vm111_vm0, %v4486_v55 }

</bundles_post_ra>
